<compile_context>
chip_gen: v6e
topology: v6e:2x2x1
jax: 0.10.0
libtpu: 0.0.40
codegen_flags: <defaults>
</compile_context>

<pallas_src>
import functools
import math

import jax
import jax.numpy as jnp
from jax import lax
from jax.experimental import pallas as pl
from jax.experimental.pallas import tpu as pltpu

COMPUTE_DTYPE = jnp.bfloat16
LN_EPS = 1e-5


# ----------------------------------------------------------------------------
# Tiling helpers
# ----------------------------------------------------------------------------
def _pick_tile(dim, target, base):
    """Largest multiple of `base` <= target that evenly divides dim, else the full dim.

    Full-dim blocks are always legal (full-extent exemption of the (8,128) rule);
    tiles < dim are kept multiples of `base` for sublane/lane alignment.
    """
    if dim <= target:
        return dim
    t = (target // base) * base
    while t >= base:
        if dim % t == 0:
            return t
        t -= base
    return dim


def _heads_per_group(num_heads, dh, target_lanes=512):
    """Heads per MHA grid step: group width must be a multiple of 128 lanes
    (BlockSpec legality) unless it's the full feature dim."""
    valid = [hp for hp in range(1, num_heads + 1)
             if num_heads % hp == 0 and (hp * dh) % 128 == 0]
    if not valid:
        return num_heads                       # single group == full D (always legal)
    under = [hp for hp in valid if hp * dh <= target_lanes]
    return max(under) if under else min(valid)


# ----------------------------------------------------------------------------
# Tiled matmul (optionally fused residual add in the epilogue)
# grid (M/tm, N/tn, K/tk), f32 VMEM accumulator, K-axis reduction
# ----------------------------------------------------------------------------
def _matmul_kernel(*refs, has_res):
    if has_res:
        x_ref, w_ref, r_ref, o_ref, acc_ref = refs
    else:
        x_ref, w_ref, o_ref, acc_ref = refs
        r_ref = None

    @pl.when(pl.program_id(2) == 0)
    def _():
        acc_ref[...] = jnp.zeros_like(acc_ref)

    acc_ref[...] += jnp.dot(x_ref[...], w_ref[...], preferred_element_type=jnp.float32)

    @pl.when(pl.program_id(2) == pl.num_programs(2) - 1)
    def _():
        out = acc_ref[...]
        if has_res:
            out = out + r_ref[...].astype(jnp.float32)
        o_ref[...] = out.astype(o_ref.dtype)


def pallas_matmul(x, w, res=None, out_dtype=jnp.float32):
    """x: (M, K), w: (K, N) -> (M, N) [+ res (M, N), added in the epilogue]."""
    M, K = x.shape
    K2, N = w.shape
    assert K == K2
    tm = _pick_tile(M, 512, 16)
    tn = _pick_tile(N, 512, 128)
    tk = _pick_tile(K, 1024, 128)
    has_res = res is not None

    in_specs = [pl.BlockSpec((tm, tk), lambda i, j, k: (i, k)),
                pl.BlockSpec((tk, tn), lambda i, j, k: (k, j))]
    args = [x, w]
    if has_res:
        in_specs.append(pl.BlockSpec((tm, tn), lambda i, j, k: (i, j)))
        args.append(res)

    return pl.pallas_call(
        functools.partial(_matmul_kernel, has_res=has_res),
        out_shape=jax.ShapeDtypeStruct((M, N), out_dtype),
        grid=(M // tm, N // tn, K // tk),
        in_specs=in_specs,
        out_specs=pl.BlockSpec((tm, tn), lambda i, j, k: (i, j)),
        scratch_shapes=[pltpu.VMEM((tm, tn), jnp.float32)],
        compiler_params=pltpu.CompilerParams(
            dimension_semantics=("parallel", "parallel", "arbitrary")),
    )(*args)


# ----------------------------------------------------------------------------
# Standalone LayerNorm (fallback when D is too large to fuse), byte-budgeted tm
# ----------------------------------------------------------------------------
def _layernorm_kernel(x_ref, g_ref, b_ref, o_ref):
    x = x_ref[...].astype(jnp.float32)
    mean = jnp.mean(x, axis=-1, keepdims=True)
    var = jnp.mean(jnp.square(x - mean), axis=-1, keepdims=True)
    y = (x - mean) * lax.rsqrt(var + LN_EPS)
    o_ref[...] = (y * g_ref[...].astype(jnp.float32)
                  + b_ref[...].astype(jnp.float32)).astype(o_ref.dtype)


def pallas_layernorm(x, gamma, beta, out_dtype=COMPUTE_DTYPE):
    M, D = x.shape
    tm_budget = max(8, (4 << 20) // max(D * 4, 1))     # keep input block ~<=4 MiB
    tm = _pick_tile(M, max(8, min(1024, tm_budget)), 8)
    return pl.pallas_call(
        _layernorm_kernel,
        out_shape=jax.ShapeDtypeStruct((M, D), out_dtype),
        grid=(M // tm,),
        in_specs=[pl.BlockSpec((tm, D), lambda i: (i, 0)),
                  pl.BlockSpec((1, D), lambda i: (0, 0)),
                  pl.BlockSpec((1, D), lambda i: (0, 0))],
        out_specs=pl.BlockSpec((tm, D), lambda i: (i, 0)),
        compiler_params=pltpu.CompilerParams(dimension_semantics=("parallel",)),
    )(x, gamma, beta)


def _ln_in_kernel(x_ref, g_ref, b_ref):
    x = x_ref[...].astype(jnp.float32)
    mean = jnp.mean(x, axis=-1, keepdims=True)
    var = jnp.mean(jnp.square(x - mean), axis=-1, keepdims=True)
    return ((x - mean) * lax.rsqrt(var + LN_EPS) * g_ref[...].astype(jnp.float32)
            + b_ref[...].astype(jnp.float32)).astype(COMPUTE_DTYPE)


# ----------------------------------------------------------------------------
# Fused LayerNorm + matmul (K = D handled in a single tile)
# ----------------------------------------------------------------------------
def _ln_matmul_kernel(x_ref, g_ref, b_ref, w_ref, o_ref):
    xn = _ln_in_kernel(x_ref, g_ref, b_ref)
    o_ref[...] = jnp.dot(xn, w_ref[...], preferred_element_type=jnp.float32).astype(o_ref.dtype)


def pallas_ln_matmul(x, gamma, beta, w, out_dtype=COMPUTE_DTYPE):
    M, D = x.shape
    _, N = w.shape
    if D > 4096:                                        # fused single-K-tile would blow VMEM
        return pallas_matmul(pallas_layernorm(x, gamma, beta), w, out_dtype=out_dtype)
    tn = _pick_tile(N, 512, 128)
    tm_budget = max(16, (2 << 20) // max(D * 4, 1))     # x block ~<=2 MiB (f32 input)
    tm = _pick_tile(M, max(16, min(512, tm_budget)), 16)
    return pl.pallas_call(
        _ln_matmul_kernel,
        out_shape=jax.ShapeDtypeStruct((M, N), out_dtype),
        grid=(M // tm, N // tn),
        in_specs=[pl.BlockSpec((tm, D), lambda i, j: (i, 0)),
                  pl.BlockSpec((1, D), lambda i, j: (0, 0)),
                  pl.BlockSpec((1, D), lambda i, j: (0, 0)),
                  pl.BlockSpec((D, tn), lambda i, j: (0, j))],
        out_specs=pl.BlockSpec((tm, tn), lambda i, j: (i, j)),
        compiler_params=pltpu.CompilerParams(
            dimension_semantics=("parallel", "parallel")),
    )(x, gamma, beta, w)


# ----------------------------------------------------------------------------
# Fused LayerNorm + feed-forward input projection + GEGLU gate
# (u/g intermediates never hit HBM, LN never hits HBM)
# ----------------------------------------------------------------------------
def _ln_geglu_kernel(x_ref, g_ref, b_ref, wu_ref, wg_ref, o_ref):
    xn = _ln_in_kernel(x_ref, g_ref, b_ref)
    u = jnp.dot(xn, wu_ref[...], preferred_element_type=jnp.float32)
    g = jnp.dot(xn, wg_ref[...], preferred_element_type=jnp.float32)
    o_ref[...] = (u * jax.nn.gelu(g)).astype(o_ref.dtype)


def _ff_geglu_kernel(x_ref, wu_ref, wg_ref, o_ref, acc_u, acc_g):
    @pl.when(pl.program_id(2) == 0)
    def _():
        acc_u[...] = jnp.zeros_like(acc_u)
        acc_g[...] = jnp.zeros_like(acc_g)

    x = x_ref[...]
    acc_u[...] += jnp.dot(x, wu_ref[...], preferred_element_type=jnp.float32)
    acc_g[...] += jnp.dot(x, wg_ref[...], preferred_element_type=jnp.float32)

    @pl.when(pl.program_id(2) == pl.num_programs(2) - 1)
    def _():
        o_ref[...] = (acc_u[...] * jax.nn.gelu(acc_g[...])).astype(o_ref.dtype)


def pallas_ln_ff_geglu(x, gamma, beta, wu, wg, out_dtype=COMPUTE_DTYPE):
    M, D = x.shape
    _, N = wu.shape
    if D > 4096:                                        # fallback: LN then K-tiled GEGLU
        xn = pallas_layernorm(x, gamma, beta)
        tm = _pick_tile(M, 512, 16)
        tn = _pick_tile(N, 512, 128)
        tk = _pick_tile(D, 1024, 128)
        return pl.pallas_call(
            _ff_geglu_kernel,
            out_shape=jax.ShapeDtypeStruct((M, N), out_dtype),
            grid=(M // tm, N // tn, D // tk),
            in_specs=[pl.BlockSpec((tm, tk), lambda i, j, k: (i, k)),
                      pl.BlockSpec((tk, tn), lambda i, j, k: (k, j)),
                      pl.BlockSpec((tk, tn), lambda i, j, k: (k, j))],
            out_specs=pl.BlockSpec((tm, tn), lambda i, j, k: (i, j)),
            scratch_shapes=[pltpu.VMEM((tm, tn), jnp.float32),
                            pltpu.VMEM((tm, tn), jnp.float32)],
            compiler_params=pltpu.CompilerParams(
                dimension_semantics=("parallel", "parallel", "arbitrary")),
        )(xn, wu, wg)

    tn = _pick_tile(N, 512, 128)
    tm_budget = max(16, (2 << 20) // max(D * 4, 1))
    tm = _pick_tile(M, max(16, min(512, tm_budget)), 16)
    return pl.pallas_call(
        _ln_geglu_kernel,
        out_shape=jax.ShapeDtypeStruct((M, N), out_dtype),
        grid=(M // tm, N // tn),
        in_specs=[pl.BlockSpec((tm, D), lambda i, j: (i, 0)),
                  pl.BlockSpec((1, D), lambda i, j: (0, 0)),
                  pl.BlockSpec((1, D), lambda i, j: (0, 0)),
                  pl.BlockSpec((D, tn), lambda i, j: (0, j)),
                  pl.BlockSpec((D, tn), lambda i, j: (0, j))],
        out_specs=pl.BlockSpec((tm, tn), lambda i, j: (i, j)),
        compiler_params=pltpu.CompilerParams(
            dimension_semantics=("parallel", "parallel")),
    )(x, gamma, beta, wu, wg)


# ----------------------------------------------------------------------------
# Multi-head attention with fused rotary embedding.
# Grid (batch, head_group) both "parallel"; bf16 MXU operands; dot_general (no k.T);
# single lane-dense output store per grid step; cached K/V from the previous window
# are rotated in-kernel with the previous window's cos/sin tables (cache stores the
# raw projections, never a rotated copy in HBM).
# ----------------------------------------------------------------------------
def _mha_kernel(*refs, dh, scale, causal, has_cache, has_rope):
    i = 0
    q_ref = refs[i]; i += 1
    k_ref = refs[i]; i += 1
    v_ref = refs[i]; i += 1
    if has_rope:
        cos_ref, sin_ref = refs[i], refs[i + 1]; i += 2
    if has_cache:
        kp_ref, vp_ref = refs[i], refs[i + 1]; i += 2
        if has_rope:
            cosp_ref, sinp_ref = refs[i], refs[i + 1]; i += 2
    o_ref = refs[i]

    Lq, Dg = q_ref.shape
    Lk = k_ref.shape[0]
    nheads = Dg // dh
    half = dh // 2

    if causal:
        qi = lax.broadcasted_iota(jnp.int32, (Lq, Lk), 0)
        ki = lax.broadcasted_iota(jnp.int32, (Lq, Lk), 1)
        # finite additive mask: no inf-inf -> NaN risk even for fully-masked rows
        mask_add = jnp.where(ki <= qi + (Lk - Lq), 0.0, -1e30).astype(jnp.float32)

    if has_rope:
        cos = cos_ref[...].astype(jnp.float32)      # (Lq, dh), shared by all heads
        sin = sin_ref[...].astype(jnp.float32)
        if has_cache:
            cosp = cosp_ref[...].astype(jnp.float32)
            sinp = sinp_ref[...].astype(jnp.float32)

    def rope(x, c, s):
        # rotate-half on a bf16 (L, dh) slice; math in f32, result back to bf16 for the MXU
        xf = x.astype(jnp.float32)
        rot = jnp.concatenate([-xf[:, half:], xf[:, :half]], axis=-1)
        return (xf * c + rot * s).astype(x.dtype)

    dims = (((1,), (1,)), ((), ()))                 # contract last axes: q @ k^T without k.T

    out_heads = []
    for h in range(nheads):
        lo, hi = h * dh, (h + 1) * dh
        q = q_ref[:, lo:hi]                         # bf16
        k = k_ref[:, lo:hi]
        v = v_ref[:, lo:hi]
        if has_rope:
            q = rope(q, cos, sin)
            k = rope(k, cos, sin)

        s = lax.dot_general(q, k, dims, preferred_element_type=jnp.float32) * scale
        if causal:
            s = s + mask_add

        if has_cache:
            kp = kp_ref[:, lo:hi]
            vp = vp_ref[:, lo:hi]
            if has_rope:
                kp = rope(kp, cosp, sinp)
            # cached keys are strictly in the past -> unmasked
            sp = lax.dot_general(q, kp, dims, preferred_element_type=jnp.float32) * scale
            m = jnp.maximum(jnp.max(s, axis=-1, keepdims=True),
                            jnp.max(sp, axis=-1, keepdims=True))
            p = jnp.exp(s - m)
            pp = jnp.exp(sp - m)
            denom = jnp.sum(p, axis=-1, keepdims=True) + jnp.sum(pp, axis=-1, keepdims=True)
            acc = (jnp.dot(p.astype(v.dtype), v, preferred_element_type=jnp.float32)
                   + jnp.dot(pp.astype(vp.dtype), vp, preferred_element_type=jnp.float32))
        else:
            m = jnp.max(s, axis=-1, keepdims=True)
            p = jnp.exp(s - m)
            denom = jnp.sum(p, axis=-1, keepdims=True)
            acc = jnp.dot(p.astype(v.dtype), v, preferred_element_type=jnp.float32)

        out_heads.append(acc * pl.reciprocal(denom, approx=True))

    o = out_heads[0] if nheads == 1 else jnp.concatenate(out_heads, axis=-1)
    o_ref[...] = o.astype(o_ref.dtype)              # one lane-dense store


def pallas_mha(q, k, v, *, num_heads, scale, causal, rope=None,
               k_prev=None, v_prev=None, rope_prev=None, out_dtype=COMPUTE_DTYPE):
    """q: (B, Lq, D); k/v: (Bk, Lk, D) with Bk in {1, B}; rope = (cos, sin) of shape (Lq, dh);
    optional previous-window cache k_prev/v_prev (B, Lp, D) with rope_prev (Lp, dh) tables."""
    B, Lq, D = q.shape
    Bk, Lk, _ = k.shape
    dh = D // num_heads
    hpg = _heads_per_group(num_heads, dh)
    Dg = hpg * dh
    G = D // Dg
    has_cache = k_prev is not None
    has_rope = rope is not None

    q_map = lambda b, g: (b, 0, g)
    kv_map = (lambda b, g: (0, 0, g)) if Bk == 1 else (lambda b, g: (b, 0, g))
    tbl_map = lambda b, g: (0, 0)

    in_specs = [pl.BlockSpec((None, Lq, Dg), q_map),
                pl.BlockSpec((None, Lk, Dg), kv_map),
                pl.BlockSpec((None, Lk, Dg), kv_map)]
    args = [q, k, v]
    if has_rope:
        cos, sin = rope
        in_specs += [pl.BlockSpec(cos.shape, tbl_map), pl.BlockSpec(sin.shape, tbl_map)]
        args += [cos, sin]
    if has_cache:
        Lp = k_prev.shape[1]
        in_specs += [pl.BlockSpec((None, Lp, Dg), q_map),
                     pl.BlockSpec((None, Lp, Dg), q_map)]
        args += [k_prev, v_prev]
        if has_rope:
            cosp, sinp = rope_prev
            in_specs += [pl.BlockSpec(cosp.shape, tbl_map), pl.BlockSpec(sinp.shape, tbl_map)]
            args += [cosp, sinp]

    kernel = functools.partial(_mha_kernel, dh=dh, scale=scale, causal=causal,
                               has_cache=has_cache, has_rope=has_rope)
    # TODO(synk): for very long windows a flash-style inner KV tiling would further
    # bound VMEM; the head-group grid axis already caps the per-step working set.
    return pl.pallas_call(
        kernel,
        out_shape=jax.ShapeDtypeStruct((B, Lq, D), out_dtype),
        grid=(B, G),
        in_specs=in_specs,
        out_specs=pl.BlockSpec((None, Lq, Dg), q_map),
        compiler_params=pltpu.CompilerParams(
            dimension_semantics=("parallel", "parallel")),
    )(*args)


# ----------------------------------------------------------------------------
# Plain-JAX glue: rotary tables (tiny (W, dh), hoisted per window), params, model
# ----------------------------------------------------------------------------
def rotary_tables(pos, dh):
    """(W, dh) cos / sin tables (shared by all heads; consumed inside the MHA kernel)."""
    # TODO(synk): upstream uses xpos-scaled rotary; plain rotate-half rotary used here.
    inv_freq = 1.0 / (10000.0 ** (jnp.arange(0, dh, 2, dtype=jnp.float32) / dh))
    freqs = pos[:, None] * inv_freq[None, :]                  # (W, dh/2)
    emb = jnp.concatenate([freqs, freqs], axis=-1)            # (W, dh)
    return jnp.cos(emb), jnp.sin(emb)


def init_params(key, cfg):
    I, D, O = cfg["input_size"], cfg["d_model"], cfg["output_size"]
    S = cfg["num_state_vectors"]
    inner = int(D * 4 * 2 / 3)  # GEGLU feed-forward inner dim (mult=4)
    keys = iter(jax.random.split(key, 8 + 16 * cfg["num_layers"]))

    def nrm(shape, std, dtype=COMPUTE_DTYPE):
        return (jax.random.normal(next(keys), shape, jnp.float32) * std).astype(dtype)

    std_d = 1.0 / math.sqrt(D)
    params = {
        # torch kaiming_normal_(mode='fan_out', 'linear') on (D, I) -> std = 1/sqrt(D)
        "token_emb": nrm((I, D), std_d),
        "final_ln_g": jnp.ones((1, D), jnp.float32),
        "final_ln_b": jnp.zeros((1, D), jnp.float32),
        "to_logits": nrm((D, O), std_d),
        "layers": [],
    }
    for li in range(cfg["num_layers"]):
        is_rec = (li + 1) == cfg["recurrent_layer_index"]
        proj = [nrm((D, D), std_d) for _ in range(3)]           # q, k, v
        lp = {
            "ln_g": jnp.ones((1, D), jnp.float32),
            "ln_b": jnp.zeros((1, D), jnp.float32),
            "wo": nrm((D, D), std_d),
            "ff_ln_g": jnp.ones((1, D), jnp.float32),
            "ff_ln_b": jnp.zeros((1, D), jnp.float32),
            "ff_w1a": nrm((D, inner), std_d),
            "ff_w1b": nrm((D, inner), std_d),
            "ff_w2": nrm((inner, D), 1.0 / math.sqrt(inner)),
        }
        if is_rec:
            # torch kaiming_normal_(mode='fan_in', 'linear') on (S, D) -> std = 1/sqrt(D)
            lp["init_state"] = nrm((S, D), std_d, dtype=jnp.float32)
            lp["state_ln_g"] = jnp.ones((1, D), jnp.float32)
            lp["state_ln_b"] = jnp.zeros((1, D), jnp.float32)
            proj.append(nrm((D, D), std_d))                     # q_to_state fused into QKV
            lp["w_kv_state"] = jnp.concatenate([nrm((D, D), std_d), nrm((D, D), std_d)], axis=1)
            lp["wo_state"] = nrm((D, D), std_d)
        lp["w_qkv"] = jnp.concatenate(proj, axis=1)             # (D, 3D) or (D, 4D)
        params["layers"].append(lp)
    return params


def _attn_block(hw, lp, cache, rot, rot_prev, is_recurrent, state_kv, cfg):
    B, W, D = hw.shape
    H = cfg["num_heads"]
    dh = D // H
    scale = 1.0 / math.sqrt(dh)
    hw_flat = hw.reshape(B * W, D)

    # fused LayerNorm + QKV (+ q_to_state on the recurrent layer) projection
    qkv = pallas_ln_matmul(hw_flat, lp["ln_g"], lp["ln_b"], lp["w_qkv"],
                           out_dtype=COMPUTE_DTYPE).reshape(B, W, lp["w_qkv"].shape[1])
    q, k, v = qkv[..., :D], qkv[..., D:2 * D], qkv[..., 2 * D:3 * D]

    # TODO(synk): qk-rmsnorm used on the recurrent layer upstream is omitted.
    # XL-style cache of the *raw* current-window K/V; rotary is applied in-kernel
    # (next window rotates these with this window's tables -> no rotated copy in HBM).
    new_cache = (k, v)
    if cache is None:
        a = pallas_mha(q, k, v, num_heads=H, scale=scale, causal=True, rope=rot)
    else:
        a = pallas_mha(q, k, v, num_heads=H, scale=scale, causal=True, rope=rot,
                       k_prev=cache[0], v_prev=cache[1], rope_prev=rot_prev)

    # residual add fused into the output-projection epilogue
    out = pallas_matmul(a.reshape(B * W, D), lp["wo"], res=hw_flat, out_dtype=jnp.float32)

    if is_recurrent:
        qs = qkv[..., 3 * D:]
        ks, vs = state_kv
        r = pallas_mha(qs, ks, vs, num_heads=H, scale=scale, causal=False)
        out = pallas_matmul(r.reshape(B * W, D), lp["wo_state"], res=out, out_dtype=jnp.float32)
        # TODO(synk): gated-EMA state write-back omitted; with
        # return_memories_and_states=False the next-block state is never consumed.

    return out.reshape(B, W, D), new_cache


def _ff_block(hw, lp):
    B, W, D = hw.shape
    hw_flat = hw.reshape(B * W, D)
    h1 = pallas_ln_ff_geglu(hw_flat, lp["ff_ln_g"], lp["ff_ln_b"],
                            lp["ff_w1a"], lp["ff_w1b"])           # fused LN + GEGLU
    out = pallas_matmul(h1, lp["ff_w2"], res=hw_flat, out_dtype=jnp.float32)
    return out.reshape(B, W, D)


def block_recurrent_forward(params, x, cfg, last_only):
    B, L, I = x.shape
    D, O = cfg["d_model"], cfg["output_size"]
    W = cfg["chunk_size"]
    H = cfg["num_heads"]
    dh = D // H
    assert L % W == 0, "sequence length must be a multiple of block_width"
    n_windows = L // W

    # residual stream kept in f32; matmul operands in bf16
    h = pallas_matmul(x.astype(COMPUTE_DTYPE).reshape(B * L, I),
                      params["token_emb"], out_dtype=jnp.float32).reshape(B, L, D)

    # state K/V computed once (batch/window independent without state write-back)
    state_kv = {}
    for li, lp in enumerate(params["layers"]):
        if (li + 1) == cfg["recurrent_layer_index"]:
            S = lp["init_state"].shape[0]
            kv = pallas_ln_matmul(lp["init_state"], lp["state_ln_g"], lp["state_ln_b"],
                                  lp["w_kv_state"], out_dtype=COMPUTE_DTYPE)     # (S, 2D)
            state_kv[li] = (kv[:, :D].reshape(1, S, D), kv[:, D:].reshape(1, S, D))

    # TODO(synk): weights are still re-fetched from HBM per window; keeping them
    # VMEM-resident across the window loop is a further restructuring not done here.
    caches = [None] * len(params["layers"])
    rot_prev = None
    outs = []
    for wi in range(n_windows):
        hw = h[:, wi * W:(wi + 1) * W, :]
        pos = jnp.arange(wi * W, (wi + 1) * W, dtype=jnp.float32)
        rot = rotary_tables(pos, dh)             # tiny (W, dh) tables, shared by all layers
        for li, lp in enumerate(params["layers"]):
            is_rec = (li + 1) == cfg["recurrent_layer_index"]
            hw, caches[li] = _attn_block(hw, lp, caches[li], rot, rot_prev, is_rec,
                                         state_kv.get(li), cfg)
            hw = _ff_block(hw, lp)
        outs.append(hw)
        rot_prev = rot

    if last_only:
        # only the last token goes through the final LayerNorm + logits matmul
        h_tail = outs[-1][:, -1, :]                              # (B, D)
        return pallas_ln_matmul(h_tail, params["final_ln_g"], params["final_ln_b"],
                                params["to_logits"], out_dtype=jnp.float32)       # (B, O)

    h_all = jnp.concatenate(outs, axis=1).reshape(B * L, D)
    logits = pallas_ln_matmul(h_all, params["final_ln_g"], params["final_ln_b"],
                              params["to_logits"], out_dtype=jnp.float32)
    return logits.reshape(B, L, O)


class BlockRecurrentTransformerWrapperPallas:
    def __init__(self, output_size, return_all_outputs, input_size, d_model,
                 num_heads, num_layers, chunk_size, num_state_vectors,
                 recurrent_layer_index, max_sequence_length=512, seed=0):
        self.cfg = dict(
            output_size=output_size,
            input_size=input_size,
            d_model=d_model,
            num_heads=num_heads,
            num_layers=num_layers,
            chunk_size=chunk_size,
            num_state_vectors=num_state_vectors,
            recurrent_layer_index=recurrent_layer_index,
            max_sequence_length=max_sequence_length,
        )
        self.return_all_outputs = return_all_outputs
        self.params = init_params(jax.random.PRNGKey(seed), self.cfg)
        self._forward = jax.jit(functools.partial(
            block_recurrent_forward, cfg=self.cfg, last_only=not return_all_outputs))

    def __call__(self, x_BLI):
        # returns (B, L, O) if return_all_outputs else (B, O)
        return self._forward(self.params, x_BLI)


if __name__ == "__main__":
    B, L, I = 2, 16, 16   # two windows of chunk_size=8 -> exercises the XL-cache path
    model = BlockRecurrentTransformerWrapperPallas(
        output_size=10,
        return_all_outputs=False,
        input_size=I,
        d_model=32,
        num_heads=4,
        num_layers=2,
        chunk_size=8,
        num_state_vectors=8,
        recurrent_layer_index=1,
        max_sequence_length=64,
    )
    x = jax.random.normal(jax.random.PRNGKey(0), (B, L, I), dtype=jnp.float32)
    out = model(x)
    out = jax.block_until_ready(out)
    assert out.shape == (B, 10), out.shape
    assert bool(jnp.all(jnp.isfinite(out)))
    print("KERNEL_OK")
</pallas_src>

<mosaic_0001>
module attributes {stable_mosaic.version = 11 : i64} {
  func.func @_ln_matmul_kernel(%arg0: i32, %arg1: i32, %arg2: memref<16x32xf32, #tpu.memory_space<vmem>>, %arg3: memref<1x32xf32, #tpu.memory_space<vmem>>, %arg4: memref<1x32xf32, #tpu.memory_space<vmem>>, %arg5: memref<32x128xbf16, #tpu.memory_space<vmem>>, %arg6: memref<16x128xbf16, #tpu.memory_space<vmem>>) attributes {dimension_semantics = [#tpu.dimension_semantics<parallel>, #tpu.dimension_semantics<parallel>], iteration_bounds = array<i64: 1, 1>, scalar_prefetch = 0 : i64, scratch_operands = 0 : i64, tpu.core_type = #tpu.core_type<tc>, window_params = [{transform_indices = @transform_0, window_bounds = array<i64: 16, 32>}, {pipeline_mode = #tpu.pipeline_mode<synchronous>, transform_indices = @transform_1, window_bounds = array<i64: 1, 32>}, {pipeline_mode = #tpu.pipeline_mode<synchronous>, transform_indices = @transform_2, window_bounds = array<i64: 1, 32>}, {transform_indices = @transform_3, window_bounds = array<i64: 32, 128>}, {transform_indices = @transform_4, window_bounds = array<i64: 16, 128>}]} {
    %c0 = arith.constant 0 : index
    %c0_0 = arith.constant 0 : index
    %0 = vector.load %arg2[%c0, %c0_0] : memref<16x32xf32, #tpu.memory_space<vmem>>, vector<16x32xf32>
    %cst = arith.constant dense<0.000000e+00> : vector<16xf32>
    %1 = vector.multi_reduction <add>, %0, %cst [1] : vector<16x32xf32> to vector<16xf32>
    %2 = vector.shape_cast %1 : vector<16xf32> to vector<16x1xf32>
    %cst_1 = arith.constant 3.200000e+01 : f32
    %3 = vector.broadcast %cst_1 : f32 to vector<16x1xf32>
    %4 = arith.divf %2, %3 : vector<16x1xf32>
    %5 = vector.broadcast %4 : vector<16x1xf32> to vector<16x32xf32>
    %6 = arith.subf %0, %5 : vector<16x32xf32>
    %7 = arith.mulf %6, %6 : vector<16x32xf32>
    %cst_2 = arith.constant dense<0.000000e+00> : vector<16xf32>
    %8 = vector.multi_reduction <add>, %7, %cst_2 [1] : vector<16x32xf32> to vector<16xf32>
    %9 = vector.shape_cast %8 : vector<16xf32> to vector<16x1xf32>
    %cst_3 = arith.constant 3.200000e+01 : f32
    %10 = vector.broadcast %cst_3 : f32 to vector<16x1xf32>
    %11 = arith.divf %9, %10 : vector<16x1xf32>
    %12 = vector.broadcast %4 : vector<16x1xf32> to vector<16x32xf32>
    %13 = arith.subf %0, %12 : vector<16x32xf32>
    %cst_4 = arith.constant 9.99999974E-6 : f32
    %14 = vector.broadcast %cst_4 : f32 to vector<16x1xf32>
    %15 = arith.addf %11, %14 : vector<16x1xf32>
    %16 = math.rsqrt %15 : vector<16x1xf32>
    %17 = vector.broadcast %16 : vector<16x1xf32> to vector<16x32xf32>
    %18 = arith.mulf %13, %17 : vector<16x32xf32>
    %c0_5 = arith.constant 0 : index
    %c0_6 = arith.constant 0 : index
    %19 = vector.load %arg3[%c0_5, %c0_6] : memref<1x32xf32, #tpu.memory_space<vmem>>, vector<1x32xf32>
    %20 = vector.broadcast %19 : vector<1x32xf32> to vector<16x32xf32>
    %21 = arith.mulf %18, %20 : vector<16x32xf32>
    %c0_7 = arith.constant 0 : index
    %c0_8 = arith.constant 0 : index
    %22 = vector.load %arg4[%c0_7, %c0_8] : memref<1x32xf32, #tpu.memory_space<vmem>>, vector<1x32xf32>
    %23 = vector.broadcast %22 : vector<1x32xf32> to vector<16x32xf32>
    %24 = arith.addf %21, %23 : vector<16x32xf32>
    %25 = arith.truncf %24 : vector<16x32xf32> to vector<16x32xbf16>
    %c0_9 = arith.constant 0 : index
    %c0_10 = arith.constant 0 : index
    %26 = vector.load %arg5[%c0_9, %c0_10] : memref<32x128xbf16, #tpu.memory_space<vmem>>, vector<32x128xbf16>
    %cst_11 = arith.constant dense<0.000000e+00> : vector<16x128xf32>
    %27 = tpu.matmul %25, %26, %cst_11 {dimension_numbers = #tpu.dot_dimension_numbers<[1], [0], [0], [1], [0, 0, 1, 1], [], []>} : vector<16x32xbf16>, vector<32x128xbf16>, vector<16x128xf32> -> vector<16x128xf32>
    %28 = arith.truncf %27 : vector<16x128xf32> to vector<16x128xbf16>
    %c0_12 = arith.constant 0 : index
    %c0_13 = arith.constant 0 : index
    %29 = vector.load %arg6[%c0_12, %c0_13] : memref<16x128xbf16, #tpu.memory_space<vmem>>, vector<16x128xbf16>
    tpu.vector_store %arg6[%c0_12, %c0_13], %28 {strides = array<i32>} : memref<16x128xbf16, #tpu.memory_space<vmem>>, vector<16x128xbf16>,
    return
  }
  func.func @transform_0(%arg0: i32, %arg1: i32) -> (i32, i32) {
    %c0_i32 = arith.constant 0 : i32
    %c0_i32_0 = arith.constant 0 : i32
    return %arg0, %c0_i32 : i32, i32
  }
  func.func @transform_1(%arg0: i32, %arg1: i32) -> (i32, i32) {
    %c0_i32 = arith.constant 0 : i32
    %c0_i32_0 = arith.constant 0 : i32
    %c0_i32_1 = arith.constant 0 : i32
    return %c0_i32, %c0_i32_0 : i32, i32
  }
  func.func @transform_2(%arg0: i32, %arg1: i32) -> (i32, i32) {
    %c0_i32 = arith.constant 0 : i32
    %c0_i32_0 = arith.constant 0 : i32
    %c0_i32_1 = arith.constant 0 : i32
    return %c0_i32, %c0_i32_0 : i32, i32
  }
  func.func @transform_3(%arg0: i32, %arg1: i32) -> (i32, i32) {
    %c0_i32 = arith.constant 0 : i32
    %c0_i32_0 = arith.constant 0 : i32
    return %c0_i32, %arg1 : i32, i32
  }
  func.func @transform_4(%arg0: i32, %arg1: i32) -> (i32, i32) {
    %c0_i32 = arith.constant 0 : i32
    return %arg0, %arg1 : i32, i32
  }
}

module attributes {stable_mosaic.version = 11 : i64} {
  func.func @_matmul_kernel(%arg0: i32, %arg1: i32, %arg2: i32, %arg3: memref<32x16xbf16, #tpu.memory_space<vmem>>, %arg4: memref<16x32xbf16, #tpu.memory_space<vmem>>, %arg5: memref<32x32xf32, #tpu.memory_space<vmem>>, %arg6: memref<32x32xf32, #tpu.memory_space<vmem>>) attributes {dimension_semantics = [#tpu.dimension_semantics<parallel>, #tpu.dimension_semantics<parallel>, #tpu.dimension_semantics<arbitrary>], iteration_bounds = array<i64: 1, 1, 1>, scalar_prefetch = 0 : i64, scratch_operands = 1 : i64, tpu.core_type = #tpu.core_type<tc>, window_params = [{transform_indices = @transform_0, window_bounds = array<i64: 32, 16>}, {transform_indices = @transform_1, window_bounds = array<i64: 16, 32>}, {transform_indices = @transform_2, window_bounds = array<i64: 32, 32>}]} {
    %c0_i32 = arith.constant 0 : i32
    %0 = arith.cmpi eq, %arg2, %c0_i32 : i32
    %1 = arith.extui %0 : i1 to i32
    %c0_i32_0 = arith.constant 0 : i32
    %2 = arith.cmpi ne, %1, %c0_i32_0 : i32
    scf.if %2 {
      %cst_10 = arith.constant 0.000000e+00 : f32
      %12 = vector.broadcast %cst_10 : f32 to vector<32x32xf32>
      %c0_11 = arith.constant 0 : index
      %c0_12 = arith.constant 0 : index
      %13 = vector.load %arg6[%c0_11, %c0_12] : memref<32x32xf32, #tpu.memory_space<vmem>>, vector<32x32xf32>
      tpu.vector_store %arg6[%c0_11, %c0_12], %12 {strides = array<i32>} : memref<32x32xf32, #tpu.memory_space<vmem>>, vector<32x32xf32>,
    } else {
    }
    %c0 = arith.constant 0 : index
    %c0_1 = arith.constant 0 : index
    %3 = vector.load %arg6[%c0, %c0_1] : memref<32x32xf32, #tpu.memory_space<vmem>>, vector<32x32xf32>
    %c0_2 = arith.constant 0 : index
    %c0_3 = arith.constant 0 : index
    %4 = vector.load %arg3[%c0_2, %c0_3] : memref<32x16xbf16, #tpu.memory_space<vmem>>, vector<32x16xbf16>
    %c0_4 = arith.constant 0 : index
    %c0_5 = arith.constant 0 : index
    %5 = vector.load %arg4[%c0_4, %c0_5] : memref<16x32xbf16, #tpu.memory_space<vmem>>, vector<16x32xbf16>
    %cst = arith.constant dense<0.000000e+00> : vector<32x32xf32>
    %6 = tpu.matmul %4, %5, %cst {dimension_numbers = #tpu.dot_dimension_numbers<[1], [0], [0], [1], [0, 0, 1, 1], [], []>} : vector<32x16xbf16>, vector<16x32xbf16>, vector<32x32xf32> -> vector<32x32xf32>
    %7 = arith.addf %3, %6 : vector<32x32xf32>
    %c0_6 = arith.constant 0 : index
    %c0_7 = arith.constant 0 : index
    %8 = vector.load %arg6[%c0_6, %c0_7] : memref<32x32xf32, #tpu.memory_space<vmem>>, vector<32x32xf32>
    tpu.vector_store %arg6[%c0_6, %c0_7], %7 {strides = array<i32>} : memref<32x32xf32, #tpu.memory_space<vmem>>, vector<32x32xf32>,
    %c0_i32_8 = arith.constant 0 : i32
    %9 = arith.cmpi eq, %arg2, %c0_i32_8 : i32
    %10 = arith.extui %9 : i1 to i32
    %c0_i32_9 = arith.constant 0 : i32
    %11 = arith.cmpi ne, %10, %c0_i32_9 : i32
    scf.if %11 {
      %c0_10 = arith.constant 0 : index
      %c0_11 = arith.constant 0 : index
      %12 = vector.load %arg6[%c0_10, %c0_11] : memref<32x32xf32, #tpu.memory_space<vmem>>, vector<32x32xf32>
      %c0_12 = arith.constant 0 : index
      %c0_13 = arith.constant 0 : index
      %13 = vector.load %arg5[%c0_12, %c0_13] : memref<32x32xf32, #tpu.memory_space<vmem>>, vector<32x32xf32>
      tpu.vector_store %arg5[%c0_12, %c0_13], %12 {strides = array<i32>} : memref<32x32xf32, #tpu.memory_space<vmem>>, vector<32x32xf32>,
    } else {
    }
    return
  }
  func.func @transform_0(%arg0: i32, %arg1: i32, %arg2: i32) -> (i32, i32) {
    %c0_i32 = arith.constant 0 : i32
    return %arg0, %arg2 : i32, i32
  }
  func.func @transform_1(%arg0: i32, %arg1: i32, %arg2: i32) -> (i32, i32) {
    %c0_i32 = arith.constant 0 : i32
    return %arg2, %arg1 : i32, i32
  }
  func.func @transform_2(%arg0: i32, %arg1: i32, %arg2: i32) -> (i32, i32) {
    %c0_i32 = arith.constant 0 : i32
    return %arg0, %arg1 : i32, i32
  }
}

module attributes {stable_mosaic.version = 11 : i64} {
  func.func @_ln_matmul_kernel(%arg0: i32, %arg1: i32, %arg2: memref<8x32xf32, #tpu.memory_space<vmem>>, %arg3: memref<1x32xf32, #tpu.memory_space<vmem>>, %arg4: memref<1x32xf32, #tpu.memory_space<vmem>>, %arg5: memref<32x64xbf16, #tpu.memory_space<vmem>>, %arg6: memref<8x64xbf16, #tpu.memory_space<vmem>>) attributes {dimension_semantics = [#tpu.dimension_semantics<parallel>, #tpu.dimension_semantics<parallel>], iteration_bounds = array<i64: 1, 1>, scalar_prefetch = 0 : i64, scratch_operands = 0 : i64, tpu.core_type = #tpu.core_type<tc>, window_params = [{transform_indices = @transform_0, window_bounds = array<i64: 8, 32>}, {pipeline_mode = #tpu.pipeline_mode<synchronous>, transform_indices = @transform_1, window_bounds = array<i64: 1, 32>}, {pipeline_mode = #tpu.pipeline_mode<synchronous>, transform_indices = @transform_2, window_bounds = array<i64: 1, 32>}, {transform_indices = @transform_3, window_bounds = array<i64: 32, 64>}, {transform_indices = @transform_4, window_bounds = array<i64: 8, 64>}]} {
    %c0 = arith.constant 0 : index
    %c0_0 = arith.constant 0 : index
    %0 = vector.load %arg2[%c0, %c0_0] : memref<8x32xf32, #tpu.memory_space<vmem>>, vector<8x32xf32>
    %cst = arith.constant dense<0.000000e+00> : vector<8xf32>
    %1 = vector.multi_reduction <add>, %0, %cst [1] : vector<8x32xf32> to vector<8xf32>
    %2 = vector.shape_cast %1 : vector<8xf32> to vector<8x1xf32>
    %cst_1 = arith.constant 3.200000e+01 : f32
    %3 = vector.broadcast %cst_1 : f32 to vector<8x1xf32>
    %4 = arith.divf %2, %3 : vector<8x1xf32>
    %5 = vector.broadcast %4 : vector<8x1xf32> to vector<8x32xf32>
    %6 = arith.subf %0, %5 : vector<8x32xf32>
    %7 = arith.mulf %6, %6 : vector<8x32xf32>
    %cst_2 = arith.constant dense<0.000000e+00> : vector<8xf32>
    %8 = vector.multi_reduction <add>, %7, %cst_2 [1] : vector<8x32xf32> to vector<8xf32>
    %9 = vector.shape_cast %8 : vector<8xf32> to vector<8x1xf32>
    %cst_3 = arith.constant 3.200000e+01 : f32
    %10 = vector.broadcast %cst_3 : f32 to vector<8x1xf32>
    %11 = arith.divf %9, %10 : vector<8x1xf32>
    %12 = vector.broadcast %4 : vector<8x1xf32> to vector<8x32xf32>
    %13 = arith.subf %0, %12 : vector<8x32xf32>
    %cst_4 = arith.constant 9.99999974E-6 : f32
    %14 = vector.broadcast %cst_4 : f32 to vector<8x1xf32>
    %15 = arith.addf %11, %14 : vector<8x1xf32>
    %16 = math.rsqrt %15 : vector<8x1xf32>
    %17 = vector.broadcast %16 : vector<8x1xf32> to vector<8x32xf32>
    %18 = arith.mulf %13, %17 : vector<8x32xf32>
    %c0_5 = arith.constant 0 : index
    %c0_6 = arith.constant 0 : index
    %19 = vector.load %arg3[%c0_5, %c0_6] : memref<1x32xf32, #tpu.memory_space<vmem>>, vector<1x32xf32>
    %20 = vector.broadcast %19 : vector<1x32xf32> to vector<8x32xf32>
    %21 = arith.mulf %18, %20 : vector<8x32xf32>
    %c0_7 = arith.constant 0 : index
    %c0_8 = arith.constant 0 : index
    %22 = vector.load %arg4[%c0_7, %c0_8] : memref<1x32xf32, #tpu.memory_space<vmem>>, vector<1x32xf32>
    %23 = vector.broadcast %22 : vector<1x32xf32> to vector<8x32xf32>
    %24 = arith.addf %21, %23 : vector<8x32xf32>
    %25 = arith.truncf %24 : vector<8x32xf32> to vector<8x32xbf16>
    %c0_9 = arith.constant 0 : index
    %c0_10 = arith.constant 0 : index
    %26 = vector.load %arg5[%c0_9, %c0_10] : memref<32x64xbf16, #tpu.memory_space<vmem>>, vector<32x64xbf16>
    %cst_11 = arith.constant dense<0.000000e+00> : vector<8x64xf32>
    %27 = tpu.matmul %25, %26, %cst_11 {dimension_numbers = #tpu.dot_dimension_numbers<[1], [0], [0], [1], [0, 0, 1, 1], [], []>} : vector<8x32xbf16>, vector<32x64xbf16>, vector<8x64xf32> -> vector<8x64xf32>
    %28 = arith.truncf %27 : vector<8x64xf32> to vector<8x64xbf16>
    %c0_12 = arith.constant 0 : index
    %c0_13 = arith.constant 0 : index
    %29 = vector.load %arg6[%c0_12, %c0_13] : memref<8x64xbf16, #tpu.memory_space<vmem>>, vector<8x64xbf16>
    tpu.vector_store %arg6[%c0_12, %c0_13], %28 {strides = array<i32>} : memref<8x64xbf16, #tpu.memory_space<vmem>>, vector<8x64xbf16>,
    return
  }
  func.func @transform_0(%arg0: i32, %arg1: i32) -> (i32, i32) {
    %c0_i32 = arith.constant 0 : i32
    %c0_i32_0 = arith.constant 0 : i32
    return %arg0, %c0_i32 : i32, i32
  }
  func.func @transform_1(%arg0: i32, %arg1: i32) -> (i32, i32) {
    %c0_i32 = arith.constant 0 : i32
    %c0_i32_0 = arith.constant 0 : i32
    %c0_i32_1 = arith.constant 0 : i32
    return %c0_i32, %c0_i32_0 : i32, i32
  }
  func.func @transform_2(%arg0: i32, %arg1: i32) -> (i32, i32) {
    %c0_i32 = arith.constant 0 : i32
    %c0_i32_0 = arith.constant 0 : i32
    %c0_i32_1 = arith.constant 0 : i32
    return %c0_i32, %c0_i32_0 : i32, i32
  }
  func.func @transform_3(%arg0: i32, %arg1: i32) -> (i32, i32) {
    %c0_i32 = arith.constant 0 : i32
    %c0_i32_0 = arith.constant 0 : i32
    return %c0_i32, %arg1 : i32, i32
  }
  func.func @transform_4(%arg0: i32, %arg1: i32) -> (i32, i32) {
    %c0_i32 = arith.constant 0 : i32
    return %arg0, %arg1 : i32, i32
  }
}

module attributes {stable_mosaic.version = 11 : i64} {
  func.func @_mha_kernel(%arg0: i32, %arg1: i32, %arg2: memref<1x8x32xbf16, #tpu.memory_space<vmem>>, %arg3: memref<1x8x32xbf16, #tpu.memory_space<vmem>>, %arg4: memref<1x8x32xbf16, #tpu.memory_space<vmem>>, %arg5: memref<1x8x32xbf16, #tpu.memory_space<vmem>>) attributes {dimension_semantics = [#tpu.dimension_semantics<parallel>, #tpu.dimension_semantics<parallel>], iteration_bounds = array<i64: 2, 1>, scalar_prefetch = 0 : i64, scratch_operands = 0 : i64, tpu.core_type = #tpu.core_type<tc>, window_params = [{transform_indices = @transform_0, window_bounds = array<i64: 1, 8, 32>}, {transform_indices = @transform_1, window_bounds = array<i64: 1, 8, 32>}, {transform_indices = @transform_2, window_bounds = array<i64: 1, 8, 32>}, {transform_indices = @transform_3, window_bounds = array<i64: 1, 8, 32>}]} {
    %c0 = arith.constant 0 : index
    %c0_0 = arith.constant 0 : index
    %c0_1 = arith.constant 0 : index
    %0 = vector.load %arg2[%c0, %c0_0, %c0_1] : memref<1x8x32xbf16, #tpu.memory_space<vmem>>, vector<1x8x8xbf16>
    %1 = vector.shape_cast %0 : vector<1x8x8xbf16> to vector<8x8xbf16>
    %c0_2 = arith.constant 0 : index
    %c0_3 = arith.constant 0 : index
    %c0_4 = arith.constant 0 : index
    %2 = vector.load %arg3[%c0_2, %c0_3, %c0_4] : memref<1x8x32xbf16, #tpu.memory_space<vmem>>, vector<1x8x8xbf16>
    %3 = vector.shape_cast %2 : vector<1x8x8xbf16> to vector<8x8xbf16>
    %c0_5 = arith.constant 0 : index
    %c0_6 = arith.constant 0 : index
    %c0_7 = arith.constant 0 : index
    %4 = vector.load %arg4[%c0_5, %c0_6, %c0_7] : memref<1x8x32xbf16, #tpu.memory_space<vmem>>, vector<1x8x8xbf16>
    %5 = vector.shape_cast %4 : vector<1x8x8xbf16> to vector<8x8xbf16>
    %cst = arith.constant dense<0.000000e+00> : vector<8x8xf32>
    %6 = tpu.matmul %1, %3, %cst {dimension_numbers = #tpu.dot_dimension_numbers<[1], [1], [0], [0], [0, 0, 1, 0], [], []>} : vector<8x8xbf16>, vector<8x8xbf16>, vector<8x8xf32> -> vector<8x8xf32>
    %cst_8 = arith.constant 0.353553385 : f32
    %7 = vector.broadcast %cst_8 : f32 to vector<8x8xf32>
    %8 = arith.mulf %6, %7 : vector<8x8xf32>
    %cst_9 = arith.constant dense<0xFF800000> : vector<8xf32>
    %9 = vector.multi_reduction <maximumf>, %8, %cst_9 [1] : vector<8x8xf32> to vector<8xf32>
    %10 = vector.shape_cast %9 : vector<8xf32> to vector<8x1xf32>
    %11 = vector.broadcast %10 : vector<8x1xf32> to vector<8x8xf32>
    %12 = arith.subf %8, %11 : vector<8x8xf32>
    %13 = math.exp %12 : vector<8x8xf32>
    %cst_10 = arith.constant dense<0.000000e+00> : vector<8xf32>
    %14 = vector.multi_reduction <add>, %13, %cst_10 [1] : vector<8x8xf32> to vector<8xf32>
    %15 = vector.shape_cast %14 : vector<8xf32> to vector<8x1xf32>
    %16 = arith.truncf %13 : vector<8x8xf32> to vector<8x8xbf16>
    %cst_11 = arith.constant dense<0.000000e+00> : vector<8x8xf32>
    %17 = tpu.matmul %16, %5, %cst_11 {dimension_numbers = #tpu.dot_dimension_numbers<[1], [0], [0], [1], [0, 0, 1, 1], [], []>} : vector<8x8xbf16>, vector<8x8xbf16>, vector<8x8xf32> -> vector<8x8xf32>
    %18 = tpu.reciprocal %15 {approx = true} : vector<8x1xf32> -> vector<8x1xf32>
    %19 = vector.broadcast %18 : vector<8x1xf32> to vector<8x8xf32>
    %20 = arith.mulf %17, %19 : vector<8x8xf32>
    %c0_12 = arith.constant 0 : index
    %c0_13 = arith.constant 0 : index
    %c8 = arith.constant 8 : index
    %21 = vector.load %arg2[%c0_12, %c0_13, %c8] : memref<1x8x32xbf16, #tpu.memory_space<vmem>>, vector<1x8x8xbf16>
    %22 = vector.shape_cast %21 : vector<1x8x8xbf16> to vector<8x8xbf16>
    %c0_14 = arith.constant 0 : index
    %c0_15 = arith.constant 0 : index
    %c8_16 = arith.constant 8 : index
    %23 = vector.load %arg3[%c0_14, %c0_15, %c8_16] : memref<1x8x32xbf16, #tpu.memory_space<vmem>>, vector<1x8x8xbf16>
    %24 = vector.shape_cast %23 : vector<1x8x8xbf16> to vector<8x8xbf16>
    %c0_17 = arith.constant 0 : index
    %c0_18 = arith.constant 0 : index
    %c8_19 = arith.constant 8 : index
    %25 = vector.load %arg4[%c0_17, %c0_18, %c8_19] : memref<1x8x32xbf16, #tpu.memory_space<vmem>>, vector<1x8x8xbf16>
    %26 = vector.shape_cast %25 : vector<1x8x8xbf16> to vector<8x8xbf16>
    %cst_20 = arith.constant dense<0.000000e+00> : vector<8x8xf32>
    %27 = tpu.matmul %22, %24, %cst_20 {dimension_numbers = #tpu.dot_dimension_numbers<[1], [1], [0], [0], [0, 0, 1, 0], [], []>} : vector<8x8xbf16>, vector<8x8xbf16>, vector<8x8xf32> -> vector<8x8xf32>
    %cst_21 = arith.constant 0.353553385 : f32
    %28 = vector.broadcast %cst_21 : f32 to vector<8x8xf32>
    %29 = arith.mulf %27, %28 : vector<8x8xf32>
    %cst_22 = arith.constant dense<0xFF800000> : vector<8xf32>
    %30 = vector.multi_reduction <maximumf>, %29, %cst_22 [1] : vector<8x8xf32> to vector<8xf32>
    %31 = vector.shape_cast %30 : vector<8xf32> to vector<8x1xf32>
    %32 = vector.broadcast %31 : vector<8x1xf32> to vector<8x8xf32>
    %33 = arith.subf %29, %32 : vector<8x8xf32>
    %34 = math.exp %33 : vector<8x8xf32>
    %cst_23 = arith.constant dense<0.000000e+00> : vector<8xf32>
    %35 = vector.multi_reduction <add>, %34, %cst_23 [1] : vector<8x8xf32> to vector<8xf32>
    %36 = vector.shape_cast %35 : vector<8xf32> to vector<8x1xf32>
    %37 = arith.truncf %34 : vector<8x8xf32> to vector<8x8xbf16>
    %cst_24 = arith.constant dense<0.000000e+00> : vector<8x8xf32>
    %38 = tpu.matmul %37, %26, %cst_24 {dimension_numbers = #tpu.dot_dimension_numbers<[1], [0], [0], [1], [0, 0, 1, 1], [], []>} : vector<8x8xbf16>, vector<8x8xbf16>, vector<8x8xf32> -> vector<8x8xf32>
    %39 = tpu.reciprocal %36 {approx = true} : vector<8x1xf32> -> vector<8x1xf32>
    %40 = vector.broadcast %39 : vector<8x1xf32> to vector<8x8xf32>
    %41 = arith.mulf %38, %40 : vector<8x8xf32>
    %c0_25 = arith.constant 0 : index
    %c0_26 = arith.constant 0 : index
    %c16 = arith.constant 16 : index
    %42 = vector.load %arg2[%c0_25, %c0_26, %c16] : memref<1x8x32xbf16, #tpu.memory_space<vmem>>, vector<1x8x8xbf16>
    %43 = vector.shape_cast %42 : vector<1x8x8xbf16> to vector<8x8xbf16>
    %c0_27 = arith.constant 0 : index
    %c0_28 = arith.constant 0 : index
    %c16_29 = arith.constant 16 : index
    %44 = vector.load %arg3[%c0_27, %c0_28, %c16_29] : memref<1x8x32xbf16, #tpu.memory_space<vmem>>, vector<1x8x8xbf16>
    %45 = vector.shape_cast %44 : vector<1x8x8xbf16> to vector<8x8xbf16>
    %c0_30 = arith.constant 0 : index
    %c0_31 = arith.constant 0 : index
    %c16_32 = arith.constant 16 : index
    %46 = vector.load %arg4[%c0_30, %c0_31, %c16_32] : memref<1x8x32xbf16, #tpu.memory_space<vmem>>, vector<1x8x8xbf16>
    %47 = vector.shape_cast %46 : vector<1x8x8xbf16> to vector<8x8xbf16>
    %cst_33 = arith.constant dense<0.000000e+00> : vector<8x8xf32>
    %48 = tpu.matmul %43, %45, %cst_33 {dimension_numbers = #tpu.dot_dimension_numbers<[1], [1], [0], [0], [0, 0, 1, 0], [], []>} : vector<8x8xbf16>, vector<8x8xbf16>, vector<8x8xf32> -> vector<8x8xf32>
    %cst_34 = arith.constant 0.353553385 : f32
    %49 = vector.broadcast %cst_34 : f32 to vector<8x8xf32>
    %50 = arith.mulf %48, %49 : vector<8x8xf32>
    %cst_35 = arith.constant dense<0xFF800000> : vector<8xf32>
    %51 = vector.multi_reduction <maximumf>, %50, %cst_35 [1] : vector<8x8xf32> to vector<8xf32>
    %52 = vector.shape_cast %51 : vector<8xf32> to vector<8x1xf32>
    %53 = vector.broadcast %52 : vector<8x1xf32> to vector<8x8xf32>
    %54 = arith.subf %50, %53 : vector<8x8xf32>
    %55 = math.exp %54 : vector<8x8xf32>
    %cst_36 = arith.constant dense<0.000000e+00> : vector<8xf32>
    %56 = vector.multi_reduction <add>, %55, %cst_36 [1] : vector<8x8xf32> to vector<8xf32>
    %57 = vector.shape_cast %56 : vector<8xf32> to vector<8x1xf32>
    %58 = arith.truncf %55 : vector<8x8xf32> to vector<8x8xbf16>
    %cst_37 = arith.constant dense<0.000000e+00> : vector<8x8xf32>
    %59 = tpu.matmul %58, %47, %cst_37 {dimension_numbers = #tpu.dot_dimension_numbers<[1], [0], [0], [1], [0, 0, 1, 1], [], []>} : vector<8x8xbf16>, vector<8x8xbf16>, vector<8x8xf32> -> vector<8x8xf32>
    %60 = tpu.reciprocal %57 {approx = true} : vector<8x1xf32> -> vector<8x1xf32>
    %61 = vector.broadcast %60 : vector<8x1xf32> to vector<8x8xf32>
    %62 = arith.mulf %59, %61 : vector<8x8xf32>
    %c0_38 = arith.constant 0 : index
    %c0_39 = arith.constant 0 : index
    %c24 = arith.constant 24 : index
    %63 = vector.load %arg2[%c0_38, %c0_39, %c24] : memref<1x8x32xbf16, #tpu.memory_space<vmem>>, vector<1x8x8xbf16>
    %64 = vector.shape_cast %63 : vector<1x8x8xbf16> to vector<8x8xbf16>
    %c0_40 = arith.constant 0 : index
    %c0_41 = arith.constant 0 : index
    %c24_42 = arith.constant 24 : index
    %65 = vector.load %arg3[%c0_40, %c0_41, %c24_42] : memref<1x8x32xbf16, #tpu.memory_space<vmem>>, vector<1x8x8xbf16>
    %66 = vector.shape_cast %65 : vector<1x8x8xbf16> to vector<8x8xbf16>
    %c0_43 = arith.constant 0 : index
    %c0_44 = arith.constant 0 : index
    %c24_45 = arith.constant 24 : index
    %67 = vector.load %arg4[%c0_43, %c0_44, %c24_45] : memref<1x8x32xbf16, #tpu.memory_space<vmem>>, vector<1x8x8xbf16>
    %68 = vector.shape_cast %67 : vector<1x8x8xbf16> to vector<8x8xbf16>
    %cst_46 = arith.constant dense<0.000000e+00> : vector<8x8xf32>
    %69 = tpu.matmul %64, %66, %cst_46 {dimension_numbers = #tpu.dot_dimension_numbers<[1], [1], [0], [0], [0, 0, 1, 0], [], []>} : vector<8x8xbf16>, vector<8x8xbf16>, vector<8x8xf32> -> vector<8x8xf32>
    %cst_47 = arith.constant 0.353553385 : f32
    %70 = vector.broadcast %cst_47 : f32 to vector<8x8xf32>
    %71 = arith.mulf %69, %70 : vector<8x8xf32>
    %cst_48 = arith.constant dense<0xFF800000> : vector<8xf32>
    %72 = vector.multi_reduction <maximumf>, %71, %cst_48 [1] : vector<8x8xf32> to vector<8xf32>
    %73 = vector.shape_cast %72 : vector<8xf32> to vector<8x1xf32>
    %74 = vector.broadcast %73 : vector<8x1xf32> to vector<8x8xf32>
    %75 = arith.subf %71, %74 : vector<8x8xf32>
    %76 = math.exp %75 : vector<8x8xf32>
    %cst_49 = arith.constant dense<0.000000e+00> : vector<8xf32>
    %77 = vector.multi_reduction <add>, %76, %cst_49 [1] : vector<8x8xf32> to vector<8xf32>
    %78 = vector.shape_cast %77 : vector<8xf32> to vector<8x1xf32>
    %79 = arith.truncf %76 : vector<8x8xf32> to vector<8x8xbf16>
    %cst_50 = arith.constant dense<0.000000e+00> : vector<8x8xf32>
    %80 = tpu.matmul %79, %68, %cst_50 {dimension_numbers = #tpu.dot_dimension_numbers<[1], [0], [0], [1], [0, 0, 1, 1], [], []>} : vector<8x8xbf16>, vector<8x8xbf16>, vector<8x8xf32> -> vector<8x8xf32>
    %81 = tpu.reciprocal %78 {approx = true} : vector<8x1xf32> -> vector<8x1xf32>
    %82 = vector.broadcast %81 : vector<8x1xf32> to vector<8x8xf32>
    %83 = arith.mulf %80, %82 : vector<8x8xf32>
    %84 = tpu.concatenate %20, %41, %62, %83 in 1 : vector<8x8xf32>, vector<8x8xf32>, vector<8x8xf32>, vector<8x8xf32> -> vector<8x32xf32>
    %85 = arith.truncf %84 : vector<8x32xf32> to vector<8x32xbf16>
    %c0_51 = arith.constant 0 : index
    %c0_52 = arith.constant 0 : index
    %c0_53 = arith.constant 0 : index
    %86 = vector.load %arg5[%c0_51, %c0_52, %c0_53] : memref<1x8x32xbf16, #tpu.memory_space<vmem>>, vector<1x8x32xbf16>
    %87 = vector.shape_cast %86 : vector<1x8x32xbf16> to vector<8x32xbf16>
    %88 = vector.shape_cast %85 : vector<8x32xbf16> to vector<1x8x32xbf16>
    tpu.vector_store %arg5[%c0_51, %c0_52, %c0_53], %88 {strides = array<i32>} : memref<1x8x32xbf16, #tpu.memory_space<vmem>>, vector<1x8x32xbf16>,
    return
  }
  func.func @transform_0(%arg0: i32, %arg1: i32) -> (i32, i32, i32) {
    %c0_i32 = arith.constant 0 : i32
    %c0_i32_0 = arith.constant 0 : i32
    return %arg0, %c0_i32, %arg1 : i32, i32, i32
  }
  func.func @transform_1(%arg0: i32, %arg1: i32) -> (i32, i32, i32) {
    %c0_i32 = arith.constant 0 : i32
    %c0_i32_0 = arith.constant 0 : i32
    %c0_i32_1 = arith.constant 0 : i32
    return %c0_i32, %c0_i32_0, %arg1 : i32, i32, i32
  }
  func.func @transform_2(%arg0: i32, %arg1: i32) -> (i32, i32, i32) {
    %c0_i32 = arith.constant 0 : i32
    %c0_i32_0 = arith.constant 0 : i32
    %c0_i32_1 = arith.constant 0 : i32
    return %c0_i32, %c0_i32_0, %arg1 : i32, i32, i32
  }
  func.func @transform_3(%arg0: i32, %arg1: i32) -> (i32, i32, i32) {
    %c0_i32 = arith.constant 0 : i32
    %c0_i32_0 = arith.constant 0 : i32
    return %arg0, %c0_i32, %arg1 : i32, i32, i32
  }
}

module attributes {stable_mosaic.version = 11 : i64} {
  func.func @_mha_kernel(%arg0: i32, %arg1: i32, %arg2: memref<1x8x32xbf16, #tpu.memory_space<vmem>>, %arg3: memref<1x8x32xbf16, #tpu.memory_space<vmem>>, %arg4: memref<1x8x32xbf16, #tpu.memory_space<vmem>>, %arg5: memref<8x8xf32, #tpu.memory_space<vmem>>, %arg6: memref<8x8xf32, #tpu.memory_space<vmem>>, %arg7: memref<1x8x32xbf16, #tpu.memory_space<vmem>>, %arg8: memref<1x8x32xbf16, #tpu.memory_space<vmem>>, %arg9: memref<8x8xf32, #tpu.memory_space<vmem>>, %arg10: memref<8x8xf32, #tpu.memory_space<vmem>>, %arg11: memref<1x8x32xbf16, #tpu.memory_space<vmem>>) attributes {dimension_semantics = [#tpu.dimension_semantics<parallel>, #tpu.dimension_semantics<parallel>], iteration_bounds = array<i64: 2, 1>, scalar_prefetch = 0 : i64, scratch_operands = 0 : i64, tpu.core_type = #tpu.core_type<tc>, window_params = [{transform_indices = @transform_0, window_bounds = array<i64: 1, 8, 32>}, {transform_indices = @transform_1, window_bounds = array<i64: 1, 8, 32>}, {transform_indices = @transform_2, window_bounds = array<i64: 1, 8, 32>}, {pipeline_mode = #tpu.pipeline_mode<synchronous>, transform_indices = @transform_3, window_bounds = array<i64: 8, 8>}, {pipeline_mode = #tpu.pipeline_mode<synchronous>, transform_indices = @transform_4, window_bounds = array<i64: 8, 8>}, {transform_indices = @transform_5, window_bounds = array<i64: 1, 8, 32>}, {transform_indices = @transform_6, window_bounds = array<i64: 1, 8, 32>}, {pipeline_mode = #tpu.pipeline_mode<synchronous>, transform_indices = @transform_7, window_bounds = array<i64: 8, 8>}, {pipeline_mode = #tpu.pipeline_mode<synchronous>, transform_indices = @transform_8, window_bounds = array<i64: 8, 8>}, {transform_indices = @transform_9, window_bounds = array<i64: 1, 8, 32>}]} {
    %0 = tpu.iota {dimensions = array<i32: 0>} : vector<8x8xi32>
    %1 = tpu.iota {dimensions = array<i32: 1>} : vector<8x8xi32>
    %c0_i32 = arith.constant 0 : i32
    %2 = vector.broadcast %c0_i32 : i32 to vector<8x8xi32>
    %3 = arith.addi %0, %2 : vector<8x8xi32>
    %4 = arith.cmpi sle, %1, %3 : vector<8x8xi32>
    %cst = arith.constant 0.000000e+00 : f32
    %cst_0 = arith.constant -1.000000e+30 : f32
    %5 = vector.broadcast %cst : f32 to vector<8x8xf32>
    %6 = vector.broadcast %cst_0 : f32 to vector<8x8xf32>
    %7 = arith.select %4, %5, %6 : vector<8x8xi1>, vector<8x8xf32>
    %c0 = arith.constant 0 : index
    %c0_1 = arith.constant 0 : index
    %8 = vector.load %arg5[%c0, %c0_1] : memref<8x8xf32, #tpu.memory_space<vmem>>, vector<8x8xf32>
    %c0_2 = arith.constant 0 : index
    %c0_3 = arith.constant 0 : index
    %9 = vector.load %arg6[%c0_2, %c0_3] : memref<8x8xf32, #tpu.memory_space<vmem>>, vector<8x8xf32>
    %c0_4 = arith.constant 0 : index
    %c0_5 = arith.constant 0 : index
    %10 = vector.load %arg9[%c0_4, %c0_5] : memref<8x8xf32, #tpu.memory_space<vmem>>, vector<8x8xf32>
    %c0_6 = arith.constant 0 : index
    %c0_7 = arith.constant 0 : index
    %11 = vector.load %arg10[%c0_6, %c0_7] : memref<8x8xf32, #tpu.memory_space<vmem>>, vector<8x8xf32>
    %c0_8 = arith.constant 0 : index
    %c0_9 = arith.constant 0 : index
    %c0_10 = arith.constant 0 : index
    %12 = vector.load %arg2[%c0_8, %c0_9, %c0_10] : memref<1x8x32xbf16, #tpu.memory_space<vmem>>, vector<1x8x8xbf16>
    %13 = vector.shape_cast %12 : vector<1x8x8xbf16> to vector<8x8xbf16>
    %c0_11 = arith.constant 0 : index
    %c0_12 = arith.constant 0 : index
    %c0_13 = arith.constant 0 : index
    %14 = vector.load %arg3[%c0_11, %c0_12, %c0_13] : memref<1x8x32xbf16, #tpu.memory_space<vmem>>, vector<1x8x8xbf16>
    %15 = vector.shape_cast %14 : vector<1x8x8xbf16> to vector<8x8xbf16>
    %c0_14 = arith.constant 0 : index
    %c0_15 = arith.constant 0 : index
    %c0_16 = arith.constant 0 : index
    %16 = vector.load %arg4[%c0_14, %c0_15, %c0_16] : memref<1x8x32xbf16, #tpu.memory_space<vmem>>, vector<1x8x8xbf16>
    %17 = vector.shape_cast %16 : vector<1x8x8xbf16> to vector<8x8xbf16>
    %18 = arith.extf %13 : vector<8x8xbf16> to vector<8x8xf32>
    %19 = vector.extract_strided_slice %18 {offsets = [0, 4], sizes = [8, 4], strides = [1, 1]} : vector<8x8xf32> to vector<8x4xf32>
    %cst_17 = arith.constant 0.000000e+00 : f32
    %20 = vector.broadcast %cst_17 : f32 to vector<8x4xf32>
    %21 = arith.subf %20, %19 : vector<8x4xf32>
    %22 = vector.extract_strided_slice %18 {offsets = [0, 0], sizes = [8, 4], strides = [1, 1]} : vector<8x8xf32> to vector<8x4xf32>
    %23 = tpu.concatenate %21, %22 in 1 : vector<8x4xf32>, vector<8x4xf32> -> vector<8x8xf32>
    %24 = arith.mulf %18, %8 : vector<8x8xf32>
    %25 = arith.mulf %23, %9 : vector<8x8xf32>
    %26 = arith.addf %24, %25 : vector<8x8xf32>
    %27 = arith.truncf %26 : vector<8x8xf32> to vector<8x8xbf16>
    %28 = arith.extf %15 : vector<8x8xbf16> to vector<8x8xf32>
    %29 = vector.extract_strided_slice %28 {offsets = [0, 4], sizes = [8, 4], strides = [1, 1]} : vector<8x8xf32> to vector<8x4xf32>
    %cst_18 = arith.constant 0.000000e+00 : f32
    %30 = vector.broadcast %cst_18 : f32 to vector<8x4xf32>
    %31 = arith.subf %30, %29 : vector<8x4xf32>
    %32 = vector.extract_strided_slice %28 {offsets = [0, 0], sizes = [8, 4], strides = [1, 1]} : vector<8x8xf32> to vector<8x4xf32>
    %33 = tpu.concatenate %31, %32 in 1 : vector<8x4xf32>, vector<8x4xf32> -> vector<8x8xf32>
    %34 = arith.mulf %28, %8 : vector<8x8xf32>
    %35 = arith.mulf %33, %9 : vector<8x8xf32>
    %36 = arith.addf %34, %35 : vector<8x8xf32>
    %37 = arith.truncf %36 : vector<8x8xf32> to vector<8x8xbf16>
    %cst_19 = arith.constant dense<0.000000e+00> : vector<8x8xf32>
    %38 = tpu.matmul %27, %37, %cst_19 {dimension_numbers = #tpu.dot_dimension_numbers<[1], [1], [0], [0], [0, 0, 1, 0], [], []>} : vector<8x8xbf16>, vector<8x8xbf16>, vector<8x8xf32> -> vector<8x8xf32>
    %cst_20 = arith.constant 0.353553385 : f32
    %39 = vector.broadcast %cst_20 : f32 to vector<8x8xf32>
    %40 = arith.mulf %38, %39 : vector<8x8xf32>
    %41 = arith.addf %40, %7 : vector<8x8xf32>
    %c0_21 = arith.constant 0 : index
    %c0_22 = arith.constant 0 : index
    %c0_23 = arith.constant 0 : index
    %42 = vector.load %arg7[%c0_21, %c0_22, %c0_23] : memref<1x8x32xbf16, #tpu.memory_space<vmem>>, vector<1x8x8xbf16>
    %43 = vector.shape_cast %42 : vector<1x8x8xbf16> to vector<8x8xbf16>
    %c0_24 = arith.constant 0 : index
    %c0_25 = arith.constant 0 : index
    %c0_26 = arith.constant 0 : index
    %44 = vector.load %arg8[%c0_24, %c0_25, %c0_26] : memref<1x8x32xbf16, #tpu.memory_space<vmem>>, vector<1x8x8xbf16>
    %45 = vector.shape_cast %44 : vector<1x8x8xbf16> to vector<8x8xbf16>
    %46 = arith.extf %43 : vector<8x8xbf16> to vector<8x8xf32>
    %47 = vector.extract_strided_slice %46 {offsets = [0, 4], sizes = [8, 4], strides = [1, 1]} : vector<8x8xf32> to vector<8x4xf32>
    %cst_27 = arith.constant 0.000000e+00 : f32
    %48 = vector.broadcast %cst_27 : f32 to vector<8x4xf32>
    %49 = arith.subf %48, %47 : vector<8x4xf32>
    %50 = vector.extract_strided_slice %46 {offsets = [0, 0], sizes = [8, 4], strides = [1, 1]} : vector<8x8xf32> to vector<8x4xf32>
    %51 = tpu.concatenate %49, %50 in 1 : vector<8x4xf32>, vector<8x4xf32> -> vector<8x8xf32>
    %52 = arith.mulf %46, %10 : vector<8x8xf32>
    %53 = arith.mulf %51, %11 : vector<8x8xf32>
    %54 = arith.addf %52, %53 : vector<8x8xf32>
    %55 = arith.truncf %54 : vector<8x8xf32> to vector<8x8xbf16>
    %cst_28 = arith.constant dense<0.000000e+00> : vector<8x8xf32>
    %56 = tpu.matmul %27, %55, %cst_28 {dimension_numbers = #tpu.dot_dimension_numbers<[1], [1], [0], [0], [0, 0, 1, 0], [], []>} : vector<8x8xbf16>, vector<8x8xbf16>, vector<8x8xf32> -> vector<8x8xf32>
    %cst_29 = arith.constant 0.353553385 : f32
    %57 = vector.broadcast %cst_29 : f32 to vector<8x8xf32>
    %58 = arith.mulf %56, %57 : vector<8x8xf32>
    %cst_30 = arith.constant dense<0xFF800000> : vector<8xf32>
    %59 = vector.multi_reduction <maximumf>, %41, %cst_30 [1] : vector<8x8xf32> to vector<8xf32>
    %60 = vector.shape_cast %59 : vector<8xf32> to vector<8x1xf32>
    %cst_31 = arith.constant dense<0xFF800000> : vector<8xf32>
    %61 = vector.multi_reduction <maximumf>, %58, %cst_31 [1] : vector<8x8xf32> to vector<8xf32>
    %62 = vector.shape_cast %61 : vector<8xf32> to vector<8x1xf32>
    %63 = arith.maximumf %60, %62 : vector<8x1xf32>
    %64 = vector.broadcast %63 : vector<8x1xf32> to vector<8x8xf32>
    %65 = arith.subf %41, %64 : vector<8x8xf32>
    %66 = math.exp %65 : vector<8x8xf32>
    %67 = vector.broadcast %63 : vector<8x1xf32> to vector<8x8xf32>
    %68 = arith.subf %58, %67 : vector<8x8xf32>
    %69 = math.exp %68 : vector<8x8xf32>
    %cst_32 = arith.constant dense<0.000000e+00> : vector<8xf32>
    %70 = vector.multi_reduction <add>, %66, %cst_32 [1] : vector<8x8xf32> to vector<8xf32>
    %71 = vector.shape_cast %70 : vector<8xf32> to vector<8x1xf32>
    %cst_33 = arith.constant dense<0.000000e+00> : vector<8xf32>
    %72 = vector.multi_reduction <add>, %69, %cst_33 [1] : vector<8x8xf32> to vector<8xf32>
    %73 = vector.shape_cast %72 : vector<8xf32> to vector<8x1xf32>
    %74 = arith.addf %71, %73 : vector<8x1xf32>
    %75 = arith.truncf %66 : vector<8x8xf32> to vector<8x8xbf16>
    %cst_34 = arith.constant dense<0.000000e+00> : vector<8x8xf32>
    %76 = tpu.matmul %75, %17, %cst_34 {dimension_numbers = #tpu.dot_dimension_numbers<[1], [0], [0], [1], [0, 0, 1, 1], [], []>} : vector<8x8xbf16>, vector<8x8xbf16>, vector<8x8xf32> -> vector<8x8xf32>
    %77 = arith.truncf %69 : vector<8x8xf32> to vector<8x8xbf16>
    %cst_35 = arith.constant dense<0.000000e+00> : vector<8x8xf32>
    %78 = tpu.matmul %77, %45, %cst_35 {dimension_numbers = #tpu.dot_dimension_numbers<[1], [0], [0], [1], [0, 0, 1, 1], [], []>} : vector<8x8xbf16>, vector<8x8xbf16>, vector<8x8xf32> -> vector<8x8xf32>
    %79 = arith.addf %76, %78 : vector<8x8xf32>
    %80 = tpu.reciprocal %74 {approx = true} : vector<8x1xf32> -> vector<8x1xf32>
    %81 = vector.broadcast %80 : vector<8x1xf32> to vector<8x8xf32>
    %82 = arith.mulf %79, %81 : vector<8x8xf32>
    %c0_36 = arith.constant 0 : index
    %c0_37 = arith.constant 0 : index
    %c8 = arith.constant 8 : index
    %83 = vector.load %arg2[%c0_36, %c0_37, %c8] : memref<1x8x32xbf16, #tpu.memory_space<vmem>>, vector<1x8x8xbf16>
    %84 = vector.shape_cast %83 : vector<1x8x8xbf16> to vector<8x8xbf16>
    %c0_38 = arith.constant 0 : index
    %c0_39 = arith.constant 0 : index
    %c8_40 = arith.constant 8 : index
    %85 = vector.load %arg3[%c0_38, %c0_39, %c8_40] : memref<1x8x32xbf16, #tpu.memory_space<vmem>>, vector<1x8x8xbf16>
    %86 = vector.shape_cast %85 : vector<1x8x8xbf16> to vector<8x8xbf16>
    %c0_41 = arith.constant 0 : index
    %c0_42 = arith.constant 0 : index
    %c8_43 = arith.constant 8 : index
    %87 = vector.load %arg4[%c0_41, %c0_42, %c8_43] : memref<1x8x32xbf16, #tpu.memory_space<vmem>>, vector<1x8x8xbf16>
    %88 = vector.shape_cast %87 : vector<1x8x8xbf16> to vector<8x8xbf16>
    %89 = arith.extf %84 : vector<8x8xbf16> to vector<8x8xf32>
    %90 = vector.extract_strided_slice %89 {offsets = [0, 4], sizes = [8, 4], strides = [1, 1]} : vector<8x8xf32> to vector<8x4xf32>
    %cst_44 = arith.constant 0.000000e+00 : f32
    %91 = vector.broadcast %cst_44 : f32 to vector<8x4xf32>
    %92 = arith.subf %91, %90 : vector<8x4xf32>
    %93 = vector.extract_strided_slice %89 {offsets = [0, 0], sizes = [8, 4], strides = [1, 1]} : vector<8x8xf32> to vector<8x4xf32>
    %94 = tpu.concatenate %92, %93 in 1 : vector<8x4xf32>, vector<8x4xf32> -> vector<8x8xf32>
    %95 = arith.mulf %89, %8 : vector<8x8xf32>
    %96 = arith.mulf %94, %9 : vector<8x8xf32>
    %97 = arith.addf %95, %96 : vector<8x8xf32>
    %98 = arith.truncf %97 : vector<8x8xf32> to vector<8x8xbf16>
    %99 = arith.extf %86 : vector<8x8xbf16> to vector<8x8xf32>
    %100 = vector.extract_strided_slice %99 {offsets = [0, 4], sizes = [8, 4], strides = [1, 1]} : vector<8x8xf32> to vector<8x4xf32>
    %cst_45 = arith.constant 0.000000e+00 : f32
    %101 = vector.broadcast %cst_45 : f32 to vector<8x4xf32>
    %102 = arith.subf %101, %100 : vector<8x4xf32>
    %103 = vector.extract_strided_slice %99 {offsets = [0, 0], sizes = [8, 4], strides = [1, 1]} : vector<8x8xf32> to vector<8x4xf32>
    %104 = tpu.concatenate %102, %103 in 1 : vector<8x4xf32>, vector<8x4xf32> -> vector<8x8xf32>
    %105 = arith.mulf %99, %8 : vector<8x8xf32>
    %106 = arith.mulf %104, %9 : vector<8x8xf32>
    %107 = arith.addf %105, %106 : vector<8x8xf32>
    %108 = arith.truncf %107 : vector<8x8xf32> to vector<8x8xbf16>
    %cst_46 = arith.constant dense<0.000000e+00> : vector<8x8xf32>
    %109 = tpu.matmul %98, %108, %cst_46 {dimension_numbers = #tpu.dot_dimension_numbers<[1], [1], [0], [0], [0, 0, 1, 0], [], []>} : vector<8x8xbf16>, vector<8x8xbf16>, vector<8x8xf32> -> vector<8x8xf32>
    %cst_47 = arith.constant 0.353553385 : f32
    %110 = vector.broadcast %cst_47 : f32 to vector<8x8xf32>
    %111 = arith.mulf %109, %110 : vector<8x8xf32>
    %112 = arith.addf %111, %7 : vector<8x8xf32>
    %c0_48 = arith.constant 0 : index
    %c0_49 = arith.constant 0 : index
    %c8_50 = arith.constant 8 : index
    %113 = vector.load %arg7[%c0_48, %c0_49, %c8_50] : memref<1x8x32xbf16, #tpu.memory_space<vmem>>, vector<1x8x8xbf16>
    %114 = vector.shape_cast %113 : vector<1x8x8xbf16> to vector<8x8xbf16>
    %c0_51 = arith.constant 0 : index
    %c0_52 = arith.constant 0 : index
    %c8_53 = arith.constant 8 : index
    %115 = vector.load %arg8[%c0_51, %c0_52, %c8_53] : memref<1x8x32xbf16, #tpu.memory_space<vmem>>, vector<1x8x8xbf16>
    %116 = vector.shape_cast %115 : vector<1x8x8xbf16> to vector<8x8xbf16>
    %117 = arith.extf %114 : vector<8x8xbf16> to vector<8x8xf32>
    %118 = vector.extract_strided_slice %117 {offsets = [0, 4], sizes = [8, 4], strides = [1, 1]} : vector<8x8xf32> to vector<8x4xf32>
    %cst_54 = arith.constant 0.000000e+00 : f32
    %119 = vector.broadcast %cst_54 : f32 to vector<8x4xf32>
    %120 = arith.subf %119, %118 : vector<8x4xf32>
    %121 = vector.extract_strided_slice %117 {offsets = [0, 0], sizes = [8, 4], strides = [1, 1]} : vector<8x8xf32> to vector<8x4xf32>
    %122 = tpu.concatenate %120, %121 in 1 : vector<8x4xf32>, vector<8x4xf32> -> vector<8x8xf32>
    %123 = arith.mulf %117, %10 : vector<8x8xf32>
    %124 = arith.mulf %122, %11 : vector<8x8xf32>
    %125 = arith.addf %123, %124 : vector<8x8xf32>
    %126 = arith.truncf %125 : vector<8x8xf32> to vector<8x8xbf16>
    %cst_55 = arith.constant dense<0.000000e+00> : vector<8x8xf32>
    %127 = tpu.matmul %98, %126, %cst_55 {dimension_numbers = #tpu.dot_dimension_numbers<[1], [1], [0], [0], [0, 0, 1, 0], [], []>} : vector<8x8xbf16>, vector<8x8xbf16>, vector<8x8xf32> -> vector<8x8xf32>
    %cst_56 = arith.constant 0.353553385 : f32
    %128 = vector.broadcast %cst_56 : f32 to vector<8x8xf32>
    %129 = arith.mulf %127, %128 : vector<8x8xf32>
    %cst_57 = arith.constant dense<0xFF800000> : vector<8xf32>
    %130 = vector.multi_reduction <maximumf>, %112, %cst_57 [1] : vector<8x8xf32> to vector<8xf32>
    %131 = vector.shape_cast %130 : vector<8xf32> to vector<8x1xf32>
    %cst_58 = arith.constant dense<0xFF800000> : vector<8xf32>
    %132 = vector.multi_reduction <maximumf>, %129, %cst_58 [1] : vector<8x8xf32> to vector<8xf32>
    %133 = vector.shape_cast %132 : vector<8xf32> to vector<8x1xf32>
    %134 = arith.maximumf %131, %133 : vector<8x1xf32>
    %135 = vector.broadcast %134 : vector<8x1xf32> to vector<8x8xf32>
    %136 = arith.subf %112, %135 : vector<8x8xf32>
    %137 = math.exp %136 : vector<8x8xf32>
    %138 = vector.broadcast %134 : vector<8x1xf32> to vector<8x8xf32>
    %139 = arith.subf %129, %138 : vector<8x8xf32>
    %140 = math.exp %139 : vector<8x8xf32>
    %cst_59 = arith.constant dense<0.000000e+00> : vector<8xf32>
    %141 = vector.multi_reduction <add>, %137, %cst_59 [1] : vector<8x8xf32> to vector<8xf32>
    %142 = vector.shape_cast %141 : vector<8xf32> to vector<8x1xf32>
    %cst_60 = arith.constant dense<0.000000e+00> : vector<8xf32>
    %143 = vector.multi_reduction <add>, %140, %cst_60 [1] : vector<8x8xf32> to vector<8xf32>
    %144 = vector.shape_cast %143 : vector<8xf32> to vector<8x1xf32>
    %145 = arith.addf %142, %144 : vector<8x1xf32>
    %146 = arith.truncf %137 : vector<8x8xf32> to vector<8x8xbf16>
    %cst_61 = arith.constant dense<0.000000e+00> : vector<8x8xf32>
    %147 = tpu.matmul %146, %88, %cst_61 {dimension_numbers = #tpu.dot_dimension_numbers<[1], [0], [0], [1], [0, 0, 1, 1], [], []>} : vector<8x8xbf16>, vector<8x8xbf16>, vector<8x8xf32> -> vector<8x8xf32>
    %148 = arith.truncf %140 : vector<8x8xf32> to vector<8x8xbf16>
    %cst_62 = arith.constant dense<0.000000e+00> : vector<8x8xf32>
    %149 = tpu.matmul %148, %116, %cst_62 {dimension_numbers = #tpu.dot_dimension_numbers<[1], [0], [0], [1], [0, 0, 1, 1], [], []>} : vector<8x8xbf16>, vector<8x8xbf16>, vector<8x8xf32> -> vector<8x8xf32>
    %150 = arith.addf %147, %149 : vector<8x8xf32>
    %151 = tpu.reciprocal %145 {approx = true} : vector<8x1xf32> -> vector<8x1xf32>
    %152 = vector.broadcast %151 : vector<8x1xf32> to vector<8x8xf32>
    %153 = arith.mulf %150, %152 : vector<8x8xf32>
    %c0_63 = arith.constant 0 : index
    %c0_64 = arith.constant 0 : index
    %c16 = arith.constant 16 : index
    %154 = vector.load %arg2[%c0_63, %c0_64, %c16] : memref<1x8x32xbf16, #tpu.memory_space<vmem>>, vector<1x8x8xbf16>
    %155 = vector.shape_cast %154 : vector<1x8x8xbf16> to vector<8x8xbf16>
    %c0_65 = arith.constant 0 : index
    %c0_66 = arith.constant 0 : index
    %c16_67 = arith.constant 16 : index
    %156 = vector.load %arg3[%c0_65, %c0_66, %c16_67] : memref<1x8x32xbf16, #tpu.memory_space<vmem>>, vector<1x8x8xbf16>
    %157 = vector.shape_cast %156 : vector<1x8x8xbf16> to vector<8x8xbf16>
    %c0_68 = arith.constant 0 : index
    %c0_69 = arith.constant 0 : index
    %c16_70 = arith.constant 16 : index
    %158 = vector.load %arg4[%c0_68, %c0_69, %c16_70] : memref<1x8x32xbf16, #tpu.memory_space<vmem>>, vector<1x8x8xbf16>
    %159 = vector.shape_cast %158 : vector<1x8x8xbf16> to vector<8x8xbf16>
    %160 = arith.extf %155 : vector<8x8xbf16> to vector<8x8xf32>
    %161 = vector.extract_strided_slice %160 {offsets = [0, 4], sizes = [8, 4], strides = [1, 1]} : vector<8x8xf32> to vector<8x4xf32>
    %cst_71 = arith.constant 0.000000e+00 : f32
    %162 = vector.broadcast %cst_71 : f32 to vector<8x4xf32>
    %163 = arith.subf %162, %161 : vector<8x4xf32>
    %164 = vector.extract_strided_slice %160 {offsets = [0, 0], sizes = [8, 4], strides = [1, 1]} : vector<8x8xf32> to vector<8x4xf32>
    %165 = tpu.concatenate %163, %164 in 1 : vector<8x4xf32>, vector<8x4xf32> -> vector<8x8xf32>
    %166 = arith.mulf %160, %8 : vector<8x8xf32>
    %167 = arith.mulf %165, %9 : vector<8x8xf32>
    %168 = arith.addf %166, %167 : vector<8x8xf32>
    %169 = arith.truncf %168 : vector<8x8xf32> to vector<8x8xbf16>
    %170 = arith.extf %157 : vector<8x8xbf16> to vector<8x8xf32>
    %171 = vector.extract_strided_slice %170 {offsets = [0, 4], sizes = [8, 4], strides = [1, 1]} : vector<8x8xf32> to vector<8x4xf32>
    %cst_72 = arith.constant 0.000000e+00 : f32
    %172 = vector.broadcast %cst_72 : f32 to vector<8x4xf32>
    %173 = arith.subf %172, %171 : vector<8x4xf32>
    %174 = vector.extract_strided_slice %170 {offsets = [0, 0], sizes = [8, 4], strides = [1, 1]} : vector<8x8xf32> to vector<8x4xf32>
    %175 = tpu.concatenate %173, %174 in 1 : vector<8x4xf32>, vector<8x4xf32> -> vector<8x8xf32>
    %176 = arith.mulf %170, %8 : vector<8x8xf32>
    %177 = arith.mulf %175, %9 : vector<8x8xf32>
    %178 = arith.addf %176, %177 : vector<8x8xf32>
    %179 = arith.truncf %178 : vector<8x8xf32> to vector<8x8xbf16>
    %cst_73 = arith.constant dense<0.000000e+00> : vector<8x8xf32>
    %180 = tpu.matmul %169, %179, %cst_73 {dimension_numbers = #tpu.dot_dimension_numbers<[1], [1], [0], [0], [0, 0, 1, 0], [], []>} : vector<8x8xbf16>, vector<8x8xbf16>, vector<8x8xf32> -> vector<8x8xf32>
    %cst_74 = arith.constant 0.353553385 : f32
    %181 = vector.broadcast %cst_74 : f32 to vector<8x8xf32>
    %182 = arith.mulf %180, %181 : vector<8x8xf32>
    %183 = arith.addf %182, %7 : vector<8x8xf32>
    %c0_75 = arith.constant 0 : index
    %c0_76 = arith.constant 0 : index
    %c16_77 = arith.constant 16 : index
    %184 = vector.load %arg7[%c0_75, %c0_76, %c16_77] : memref<1x8x32xbf16, #tpu.memory_space<vmem>>, vector<1x8x8xbf16>
    %185 = vector.shape_cast %184 : vector<1x8x8xbf16> to vector<8x8xbf16>
    %c0_78 = arith.constant 0 : index
    %c0_79 = arith.constant 0 : index
    %c16_80 = arith.constant 16 : index
    %186 = vector.load %arg8[%c0_78, %c0_79, %c16_80] : memref<1x8x32xbf16, #tpu.memory_space<vmem>>, vector<1x8x8xbf16>
    %187 = vector.shape_cast %186 : vector<1x8x8xbf16> to vector<8x8xbf16>
    %188 = arith.extf %185 : vector<8x8xbf16> to vector<8x8xf32>
    %189 = vector.extract_strided_slice %188 {offsets = [0, 4], sizes = [8, 4], strides = [1, 1]} : vector<8x8xf32> to vector<8x4xf32>
    %cst_81 = arith.constant 0.000000e+00 : f32
    %190 = vector.broadcast %cst_81 : f32 to vector<8x4xf32>
    %191 = arith.subf %190, %189 : vector<8x4xf32>
    %192 = vector.extract_strided_slice %188 {offsets = [0, 0], sizes = [8, 4], strides = [1, 1]} : vector<8x8xf32> to vector<8x4xf32>
    %193 = tpu.concatenate %191, %192 in 1 : vector<8x4xf32>, vector<8x4xf32> -> vector<8x8xf32>
    %194 = arith.mulf %188, %10 : vector<8x8xf32>
    %195 = arith.mulf %193, %11 : vector<8x8xf32>
    %196 = arith.addf %194, %195 : vector<8x8xf32>
    %197 = arith.truncf %196 : vector<8x8xf32> to vector<8x8xbf16>
    %cst_82 = arith.constant dense<0.000000e+00> : vector<8x8xf32>
    %198 = tpu.matmul %169, %197, %cst_82 {dimension_numbers = #tpu.dot_dimension_numbers<[1], [1], [0], [0], [0, 0, 1, 0], [], []>} : vector<8x8xbf16>, vector<8x8xbf16>, vector<8x8xf32> -> vector<8x8xf32>
    %cst_83 = arith.constant 0.353553385 : f32
    %199 = vector.broadcast %cst_83 : f32 to vector<8x8xf32>
    %200 = arith.mulf %198, %199 : vector<8x8xf32>
    %cst_84 = arith.constant dense<0xFF800000> : vector<8xf32>
    %201 = vector.multi_reduction <maximumf>, %183, %cst_84 [1] : vector<8x8xf32> to vector<8xf32>
    %202 = vector.shape_cast %201 : vector<8xf32> to vector<8x1xf32>
    %cst_85 = arith.constant dense<0xFF800000> : vector<8xf32>
    %203 = vector.multi_reduction <maximumf>, %200, %cst_85 [1] : vector<8x8xf32> to vector<8xf32>
    %204 = vector.shape_cast %203 : vector<8xf32> to vector<8x1xf32>
    %205 = arith.maximumf %202, %204 : vector<8x1xf32>
    %206 = vector.broadcast %205 : vector<8x1xf32> to vector<8x8xf32>
    %207 = arith.subf %183, %206 : vector<8x8xf32>
    %208 = math.exp %207 : vector<8x8xf32>
    %209 = vector.broadcast %205 : vector<8x1xf32> to vector<8x8xf32>
    %210 = arith.subf %200, %209 : vector<8x8xf32>
    %211 = math.exp %210 : vector<8x8xf32>
    %cst_86 = arith.constant dense<0.000000e+00> : vector<8xf32>
    %212 = vector.multi_reduction <add>, %208, %cst_86 [1] : vector<8x8xf32> to vector<8xf32>
    %213 = vector.shape_cast %212 : vector<8xf32> to vector<8x1xf32>
    %cst_87 = arith.constant dense<0.000000e+00> : vector<8xf32>
    %214 = vector.multi_reduction <add>, %211, %cst_87 [1] : vector<8x8xf32> to vector<8xf32>
    %215 = vector.shape_cast %214 : vector<8xf32> to vector<8x1xf32>
    %216 = arith.addf %213, %215 : vector<8x1xf32>
    %217 = arith.truncf %208 : vector<8x8xf32> to vector<8x8xbf16>
    %cst_88 = arith.constant dense<0.000000e+00> : vector<8x8xf32>
    %218 = tpu.matmul %217, %159, %cst_88 {dimension_numbers = #tpu.dot_dimension_numbers<[1], [0], [0], [1], [0, 0, 1, 1], [], []>} : vector<8x8xbf16>, vector<8x8xbf16>, vector<8x8xf32> -> vector<8x8xf32>
    %219 = arith.truncf %211 : vector<8x8xf32> to vector<8x8xbf16>
    %cst_89 = arith.constant dense<0.000000e+00> : vector<8x8xf32>
    %220 = tpu.matmul %219, %187, %cst_89 {dimension_numbers = #tpu.dot_dimension_numbers<[1], [0], [0], [1], [0, 0, 1, 1], [], []>} : vector<8x8xbf16>, vector<8x8xbf16>, vector<8x8xf32> -> vector<8x8xf32>
    %221 = arith.addf %218, %220 : vector<8x8xf32>
    %222 = tpu.reciprocal %216 {approx = true} : vector<8x1xf32> -> vector<8x1xf32>
    %223 = vector.broadcast %222 : vector<8x1xf32> to vector<8x8xf32>
    %224 = arith.mulf %221, %223 : vector<8x8xf32>
    %c0_90 = arith.constant 0 : index
    %c0_91 = arith.constant 0 : index
    %c24 = arith.constant 24 : index
    %225 = vector.load %arg2[%c0_90, %c0_91, %c24] : memref<1x8x32xbf16, #tpu.memory_space<vmem>>, vector<1x8x8xbf16>
    %226 = vector.shape_cast %225 : vector<1x8x8xbf16> to vector<8x8xbf16>
    %c0_92 = arith.constant 0 : index
    %c0_93 = arith.constant 0 : index
    %c24_94 = arith.constant 24 : index
    %227 = vector.load %arg3[%c0_92, %c0_93, %c24_94] : memref<1x8x32xbf16, #tpu.memory_space<vmem>>, vector<1x8x8xbf16>
    %228 = vector.shape_cast %227 : vector<1x8x8xbf16> to vector<8x8xbf16>
    %c0_95 = arith.constant 0 : index
    %c0_96 = arith.constant 0 : index
    %c24_97 = arith.constant 24 : index
    %229 = vector.load %arg4[%c0_95, %c0_96, %c24_97] : memref<1x8x32xbf16, #tpu.memory_space<vmem>>, vector<1x8x8xbf16>
    %230 = vector.shape_cast %229 : vector<1x8x8xbf16> to vector<8x8xbf16>
    %231 = arith.extf %226 : vector<8x8xbf16> to vector<8x8xf32>
    %232 = vector.extract_strided_slice %231 {offsets = [0, 4], sizes = [8, 4], strides = [1, 1]} : vector<8x8xf32> to vector<8x4xf32>
    %cst_98 = arith.constant 0.000000e+00 : f32
    %233 = vector.broadcast %cst_98 : f32 to vector<8x4xf32>
    %234 = arith.subf %233, %232 : vector<8x4xf32>
    %235 = vector.extract_strided_slice %231 {offsets = [0, 0], sizes = [8, 4], strides = [1, 1]} : vector<8x8xf32> to vector<8x4xf32>
    %236 = tpu.concatenate %234, %235 in 1 : vector<8x4xf32>, vector<8x4xf32> -> vector<8x8xf32>
    %237 = arith.mulf %231, %8 : vector<8x8xf32>
    %238 = arith.mulf %236, %9 : vector<8x8xf32>
    %239 = arith.addf %237, %238 : vector<8x8xf32>
    %240 = arith.truncf %239 : vector<8x8xf32> to vector<8x8xbf16>
    %241 = arith.extf %228 : vector<8x8xbf16> to vector<8x8xf32>
    %242 = vector.extract_strided_slice %241 {offsets = [0, 4], sizes = [8, 4], strides = [1, 1]} : vector<8x8xf32> to vector<8x4xf32>
    %cst_99 = arith.constant 0.000000e+00 : f32
    %243 = vector.broadcast %cst_99 : f32 to vector<8x4xf32>
    %244 = arith.subf %243, %242 : vector<8x4xf32>
    %245 = vector.extract_strided_slice %241 {offsets = [0, 0], sizes = [8, 4], strides = [1, 1]} : vector<8x8xf32> to vector<8x4xf32>
    %246 = tpu.concatenate %244, %245 in 1 : vector<8x4xf32>, vector<8x4xf32> -> vector<8x8xf32>
    %247 = arith.mulf %241, %8 : vector<8x8xf32>
    %248 = arith.mulf %246, %9 : vector<8x8xf32>
    %249 = arith.addf %247, %248 : vector<8x8xf32>
    %250 = arith.truncf %249 : vector<8x8xf32> to vector<8x8xbf16>
    %cst_100 = arith.constant dense<0.000000e+00> : vector<8x8xf32>
    %251 = tpu.matmul %240, %250, %cst_100 {dimension_numbers = #tpu.dot_dimension_numbers<[1], [1], [0], [0], [0, 0, 1, 0], [], []>} : vector<8x8xbf16>, vector<8x8xbf16>, vector<8x8xf32> -> vector<8x8xf32>
    %cst_101 = arith.constant 0.353553385 : f32
    %252 = vector.broadcast %cst_101 : f32 to vector<8x8xf32>
    %253 = arith.mulf %251, %252 : vector<8x8xf32>
    %254 = arith.addf %253, %7 : vector<8x8xf32>
    %c0_102 = arith.constant 0 : index
    %c0_103 = arith.constant 0 : index
    %c24_104 = arith.constant 24 : index
    %255 = vector.load %arg7[%c0_102, %c0_103, %c24_104] : memref<1x8x32xbf16, #tpu.memory_space<vmem>>, vector<1x8x8xbf16>
    %256 = vector.shape_cast %255 : vector<1x8x8xbf16> to vector<8x8xbf16>
    %c0_105 = arith.constant 0 : index
    %c0_106 = arith.constant 0 : index
    %c24_107 = arith.constant 24 : index
    %257 = vector.load %arg8[%c0_105, %c0_106, %c24_107] : memref<1x8x32xbf16, #tpu.memory_space<vmem>>, vector<1x8x8xbf16>
    %258 = vector.shape_cast %257 : vector<1x8x8xbf16> to vector<8x8xbf16>
    %259 = arith.extf %256 : vector<8x8xbf16> to vector<8x8xf32>
    %260 = vector.extract_strided_slice %259 {offsets = [0, 4], sizes = [8, 4], strides = [1, 1]} : vector<8x8xf32> to vector<8x4xf32>
    %cst_108 = arith.constant 0.000000e+00 : f32
    %261 = vector.broadcast %cst_108 : f32 to vector<8x4xf32>
    %262 = arith.subf %261, %260 : vector<8x4xf32>
    %263 = vector.extract_strided_slice %259 {offsets = [0, 0], sizes = [8, 4], strides = [1, 1]} : vector<8x8xf32> to vector<8x4xf32>
    %264 = tpu.concatenate %262, %263 in 1 : vector<8x4xf32>, vector<8x4xf32> -> vector<8x8xf32>
    %265 = arith.mulf %259, %10 : vector<8x8xf32>
    %266 = arith.mulf %264, %11 : vector<8x8xf32>
    %267 = arith.addf %265, %266 : vector<8x8xf32>
    %268 = arith.truncf %267 : vector<8x8xf32> to vector<8x8xbf16>
    %cst_109 = arith.constant dense<0.000000e+00> : vector<8x8xf32>
    %269 = tpu.matmul %240, %268, %cst_109 {dimension_numbers = #tpu.dot_dimension_numbers<[1], [1], [0], [0], [0, 0, 1, 0], [], []>} : vector<8x8xbf16>, vector<8x8xbf16>, vector<8x8xf32> -> vector<8x8xf32>
    %cst_110 = arith.constant 0.353553385 : f32
    %270 = vector.broadcast %cst_110 : f32 to vector<8x8xf32>
    %271 = arith.mulf %269, %270 : vector<8x8xf32>
    %cst_111 = arith.constant dense<0xFF800000> : vector<8xf32>
    %272 = vector.multi_reduction <maximumf>, %254, %cst_111 [1] : vector<8x8xf32> to vector<8xf32>
    %273 = vector.shape_cast %272 : vector<8xf32> to vector<8x1xf32>
    %cst_112 = arith.constant dense<0xFF800000> : vector<8xf32>
    %274 = vector.multi_reduction <maximumf>, %271, %cst_112 [1] : vector<8x8xf32> to vector<8xf32>
    %275 = vector.shape_cast %274 : vector<8xf32> to vector<8x1xf32>
    %276 = arith.maximumf %273, %275 : vector<8x1xf32>
    %277 = vector.broadcast %276 : vector<8x1xf32> to vector<8x8xf32>
    %278 = arith.subf %254, %277 : vector<8x8xf32>
    %279 = math.exp %278 : vector<8x8xf32>
    %280 = vector.broadcast %276 : vector<8x1xf32> to vector<8x8xf32>
    %281 = arith.subf %271, %280 : vector<8x8xf32>
    %282 = math.exp %281 : vector<8x8xf32>
    %cst_113 = arith.constant dense<0.000000e+00> : vector<8xf32>
    %283 = vector.multi_reduction <add>, %279, %cst_113 [1] : vector<8x8xf32> to vector<8xf32>
    %284 = vector.shape_cast %283 : vector<8xf32> to vector<8x1xf32>
    %cst_114 = arith.constant dense<0.000000e+00> : vector<8xf32>
    %285 = vector.multi_reduction <add>, %282, %cst_114 [1] : vector<8x8xf32> to vector<8xf32>
    %286 = vector.shape_cast %285 : vector<8xf32> to vector<8x1xf32>
    %287 = arith.addf %284, %286 : vector<8x1xf32>
    %288 = arith.truncf %279 : vector<8x8xf32> to vector<8x8xbf16>
    %cst_115 = arith.constant dense<0.000000e+00> : vector<8x8xf32>
    %289 = tpu.matmul %288, %230, %cst_115 {dimension_numbers = #tpu.dot_dimension_numbers<[1], [0], [0], [1], [0, 0, 1, 1], [], []>} : vector<8x8xbf16>, vector<8x8xbf16>, vector<8x8xf32> -> vector<8x8xf32>
    %290 = arith.truncf %282 : vector<8x8xf32> to vector<8x8xbf16>
    %cst_116 = arith.constant dense<0.000000e+00> : vector<8x8xf32>
    %291 = tpu.matmul %290, %258, %cst_116 {dimension_numbers = #tpu.dot_dimension_numbers<[1], [0], [0], [1], [0, 0, 1, 1], [], []>} : vector<8x8xbf16>, vector<8x8xbf16>, vector<8x8xf32> -> vector<8x8xf32>
    %292 = arith.addf %289, %291 : vector<8x8xf32>
    %293 = tpu.reciprocal %287 {approx = true} : vector<8x1xf32> -> vector<8x1xf32>
    %294 = vector.broadcast %293 : vector<8x1xf32> to vector<8x8xf32>
    %295 = arith.mulf %292, %294 : vector<8x8xf32>
    %296 = tpu.concatenate %82, %153, %224, %295 in 1 : vector<8x8xf32>, vector<8x8xf32>, vector<8x8xf32>, vector<8x8xf32> -> vector<8x32xf32>
    %297 = arith.truncf %296 : vector<8x32xf32> to vector<8x32xbf16>
    %c0_117 = arith.constant 0 : index
    %c0_118 = arith.constant 0 : index
    %c0_119 = arith.constant 0 : index
    %298 = vector.load %arg11[%c0_117, %c0_118, %c0_119] : memref<1x8x32xbf16, #tpu.memory_space<vmem>>, vector<1x8x32xbf16>
    %299 = vector.shape_cast %298 : vector<1x8x32xbf16> to vector<8x32xbf16>
    %300 = vector.shape_cast %297 : vector<8x32xbf16> to vector<1x8x32xbf16>
    tpu.vector_store %arg11[%c0_117, %c0_118, %c0_119], %300 {strides = array<i32>} : memref<1x8x32xbf16, #tpu.memory_space<vmem>>, vector<1x8x32xbf16>,
    return
  }
  func.func @transform_0(%arg0: i32, %arg1: i32) -> (i32, i32, i32) {
    %c0_i32 = arith.constant 0 : i32
    %c0_i32_0 = arith.constant 0 : i32
    return %arg0, %c0_i32, %arg1 : i32, i32, i32
  }
  func.func @transform_1(%arg0: i32, %arg1: i32) -> (i32, i32, i32) {
    %c0_i32 = arith.constant 0 : i32
    %c0_i32_0 = arith.constant 0 : i32
    return %arg0, %c0_i32, %arg1 : i32, i32, i32
  }
  func.func @transform_2(%arg0: i32, %arg1: i32) -> (i32, i32, i32) {
    %c0_i32 = arith.constant 0 : i32
    %c0_i32_0 = arith.constant 0 : i32
    return %arg0, %c0_i32, %arg1 : i32, i32, i32
  }
  func.func @transform_3(%arg0: i32, %arg1: i32) -> (i32, i32) {
    %c0_i32 = arith.constant 0 : i32
    %c0_i32_0 = arith.constant 0 : i32
    %c0_i32_1 = arith.constant 0 : i32
    return %c0_i32, %c0_i32_0 : i32, i32
  }
  func.func @transform_4(%arg0: i32, %arg1: i32) -> (i32, i32) {
    %c0_i32 = arith.constant 0 : i32
    %c0_i32_0 = arith.constant 0 : i32
    %c0_i32_1 = arith.constant 0 : i32
    return %c0_i32, %c0_i32_0 : i32, i32
  }
  func.func @transform_5(%arg0: i32, %arg1: i32) -> (i32, i32, i32) {
    %c0_i32 = arith.constant 0 : i32
    %c0_i32_0 = arith.constant 0 : i32
    return %arg0, %c0_i32, %arg1 : i32, i32, i32
  }
  func.func @transform_6(%arg0: i32, %arg1: i32) -> (i32, i32, i32) {
    %c0_i32 = arith.constant 0 : i32
    %c0_i32_0 = arith.constant 0 : i32
    return %arg0, %c0_i32, %arg1 : i32, i32, i32
  }
  func.func @transform_7(%arg0: i32, %arg1: i32) -> (i32, i32) {
    %c0_i32 = arith.constant 0 : i32
    %c0_i32_0 = arith.constant 0 : i32
    %c0_i32_1 = arith.constant 0 : i32
    return %c0_i32, %c0_i32_0 : i32, i32
  }
  func.func @transform_8(%arg0: i32, %arg1: i32) -> (i32, i32) {
    %c0_i32 = arith.constant 0 : i32
    %c0_i32_0 = arith.constant 0 : i32
    %c0_i32_1 = arith.constant 0 : i32
    return %c0_i32, %c0_i32_0 : i32, i32
  }
  func.func @transform_9(%arg0: i32, %arg1: i32) -> (i32, i32, i32) {
    %c0_i32 = arith.constant 0 : i32
    %c0_i32_0 = arith.constant 0 : i32
    return %arg0, %c0_i32, %arg1 : i32, i32, i32
  }
}

module attributes {stable_mosaic.version = 11 : i64} {
  func.func @_matmul_kernel(%arg0: i32, %arg1: i32, %arg2: i32, %arg3: memref<16x32xbf16, #tpu.memory_space<vmem>>, %arg4: memref<32x32xbf16, #tpu.memory_space<vmem>>, %arg5: memref<16x32xf32, #tpu.memory_space<vmem>>, %arg6: memref<16x32xf32, #tpu.memory_space<vmem>>, %arg7: memref<16x32xf32, #tpu.memory_space<vmem>>) attributes {dimension_semantics = [#tpu.dimension_semantics<parallel>, #tpu.dimension_semantics<parallel>, #tpu.dimension_semantics<arbitrary>], iteration_bounds = array<i64: 1, 1, 1>, scalar_prefetch = 0 : i64, scratch_operands = 1 : i64, tpu.core_type = #tpu.core_type<tc>, window_params = [{transform_indices = @transform_0, window_bounds = array<i64: 16, 32>}, {transform_indices = @transform_1, window_bounds = array<i64: 32, 32>}, {transform_indices = @transform_2, window_bounds = array<i64: 16, 32>}, {transform_indices = @transform_3, window_bounds = array<i64: 16, 32>}]} {
    %c0_i32 = arith.constant 0 : i32
    %0 = arith.cmpi eq, %arg2, %c0_i32 : i32
    %1 = arith.extui %0 : i1 to i32
    %c0_i32_0 = arith.constant 0 : i32
    %2 = arith.cmpi ne, %1, %c0_i32_0 : i32
    scf.if %2 {
      %cst_10 = arith.constant 0.000000e+00 : f32
      %12 = vector.broadcast %cst_10 : f32 to vector<16x32xf32>
      %c0_11 = arith.constant 0 : index
      %c0_12 = arith.constant 0 : index
      %13 = vector.load %arg7[%c0_11, %c0_12] : memref<16x32xf32, #tpu.memory_space<vmem>>, vector<16x32xf32>
      tpu.vector_store %arg7[%c0_11, %c0_12], %12 {strides = array<i32>} : memref<16x32xf32, #tpu.memory_space<vmem>>, vector<16x32xf32>,
    } else {
    }
    %c0 = arith.constant 0 : index
    %c0_1 = arith.constant 0 : index
    %3 = vector.load %arg7[%c0, %c0_1] : memref<16x32xf32, #tpu.memory_space<vmem>>, vector<16x32xf32>
    %c0_2 = arith.constant 0 : index
    %c0_3 = arith.constant 0 : index
    %4 = vector.load %arg3[%c0_2, %c0_3] : memref<16x32xbf16, #tpu.memory_space<vmem>>, vector<16x32xbf16>
    %c0_4 = arith.constant 0 : index
    %c0_5 = arith.constant 0 : index
    %5 = vector.load %arg4[%c0_4, %c0_5] : memref<32x32xbf16, #tpu.memory_space<vmem>>, vector<32x32xbf16>
    %cst = arith.constant dense<0.000000e+00> : vector<16x32xf32>
    %6 = tpu.matmul %4, %5, %cst {dimension_numbers = #tpu.dot_dimension_numbers<[1], [0], [0], [1], [0, 0, 1, 1], [], []>} : vector<16x32xbf16>, vector<32x32xbf16>, vector<16x32xf32> -> vector<16x32xf32>
    %7 = arith.addf %3, %6 : vector<16x32xf32>
    %c0_6 = arith.constant 0 : index
    %c0_7 = arith.constant 0 : index
    %8 = vector.load %arg7[%c0_6, %c0_7] : memref<16x32xf32, #tpu.memory_space<vmem>>, vector<16x32xf32>
    tpu.vector_store %arg7[%c0_6, %c0_7], %7 {strides = array<i32>} : memref<16x32xf32, #tpu.memory_space<vmem>>, vector<16x32xf32>,
    %c0_i32_8 = arith.constant 0 : i32
    %9 = arith.cmpi eq, %arg2, %c0_i32_8 : i32
    %10 = arith.extui %9 : i1 to i32
    %c0_i32_9 = arith.constant 0 : i32
    %11 = arith.cmpi ne, %10, %c0_i32_9 : i32
    scf.if %11 {
      %c0_10 = arith.constant 0 : index
      %c0_11 = arith.constant 0 : index
      %12 = vector.load %arg7[%c0_10, %c0_11] : memref<16x32xf32, #tpu.memory_space<vmem>>, vector<16x32xf32>
      %c0_12 = arith.constant 0 : index
      %c0_13 = arith.constant 0 : index
      %13 = vector.load %arg5[%c0_12, %c0_13] : memref<16x32xf32, #tpu.memory_space<vmem>>, vector<16x32xf32>
      %14 = arith.addf %12, %13 : vector<16x32xf32>
      %c0_14 = arith.constant 0 : index
      %c0_15 = arith.constant 0 : index
      %15 = vector.load %arg6[%c0_14, %c0_15] : memref<16x32xf32, #tpu.memory_space<vmem>>, vector<16x32xf32>
      tpu.vector_store %arg6[%c0_14, %c0_15], %14 {strides = array<i32>} : memref<16x32xf32, #tpu.memory_space<vmem>>, vector<16x32xf32>,
    } else {
    }
    return
  }
  func.func @transform_0(%arg0: i32, %arg1: i32, %arg2: i32) -> (i32, i32) {
    %c0_i32 = arith.constant 0 : i32
    return %arg0, %arg2 : i32, i32
  }
  func.func @transform_1(%arg0: i32, %arg1: i32, %arg2: i32) -> (i32, i32) {
    %c0_i32 = arith.constant 0 : i32
    return %arg2, %arg1 : i32, i32
  }
  func.func @transform_2(%arg0: i32, %arg1: i32, %arg2: i32) -> (i32, i32) {
    %c0_i32 = arith.constant 0 : i32
    return %arg0, %arg1 : i32, i32
  }
  func.func @transform_3(%arg0: i32, %arg1: i32, %arg2: i32) -> (i32, i32) {
    %c0_i32 = arith.constant 0 : i32
    return %arg0, %arg1 : i32, i32
  }
}

module attributes {stable_mosaic.version = 11 : i64} {
  func.func @_ln_geglu_kernel(%arg0: i32, %arg1: i32, %arg2: memref<16x32xf32, #tpu.memory_space<vmem>>, %arg3: memref<1x32xf32, #tpu.memory_space<vmem>>, %arg4: memref<1x32xf32, #tpu.memory_space<vmem>>, %arg5: memref<32x85xbf16, #tpu.memory_space<vmem>>, %arg6: memref<32x85xbf16, #tpu.memory_space<vmem>>, %arg7: memref<16x85xbf16, #tpu.memory_space<vmem>>) attributes {dimension_semantics = [#tpu.dimension_semantics<parallel>, #tpu.dimension_semantics<parallel>], iteration_bounds = array<i64: 1, 1>, scalar_prefetch = 0 : i64, scratch_operands = 0 : i64, tpu.core_type = #tpu.core_type<tc>, window_params = [{transform_indices = @transform_0, window_bounds = array<i64: 16, 32>}, {pipeline_mode = #tpu.pipeline_mode<synchronous>, transform_indices = @transform_1, window_bounds = array<i64: 1, 32>}, {pipeline_mode = #tpu.pipeline_mode<synchronous>, transform_indices = @transform_2, window_bounds = array<i64: 1, 32>}, {transform_indices = @transform_3, window_bounds = array<i64: 32, 85>}, {transform_indices = @transform_4, window_bounds = array<i64: 32, 85>}, {transform_indices = @transform_5, window_bounds = array<i64: 16, 85>}]} {
    %c0 = arith.constant 0 : index
    %c0_0 = arith.constant 0 : index
    %0 = vector.load %arg2[%c0, %c0_0] : memref<16x32xf32, #tpu.memory_space<vmem>>, vector<16x32xf32>
    %cst = arith.constant dense<0.000000e+00> : vector<16xf32>
    %1 = vector.multi_reduction <add>, %0, %cst [1] : vector<16x32xf32> to vector<16xf32>
    %2 = vector.shape_cast %1 : vector<16xf32> to vector<16x1xf32>
    %cst_1 = arith.constant 3.200000e+01 : f32
    %3 = vector.broadcast %cst_1 : f32 to vector<16x1xf32>
    %4 = arith.divf %2, %3 : vector<16x1xf32>
    %5 = vector.broadcast %4 : vector<16x1xf32> to vector<16x32xf32>
    %6 = arith.subf %0, %5 : vector<16x32xf32>
    %7 = arith.mulf %6, %6 : vector<16x32xf32>
    %cst_2 = arith.constant dense<0.000000e+00> : vector<16xf32>
    %8 = vector.multi_reduction <add>, %7, %cst_2 [1] : vector<16x32xf32> to vector<16xf32>
    %9 = vector.shape_cast %8 : vector<16xf32> to vector<16x1xf32>
    %cst_3 = arith.constant 3.200000e+01 : f32
    %10 = vector.broadcast %cst_3 : f32 to vector<16x1xf32>
    %11 = arith.divf %9, %10 : vector<16x1xf32>
    %12 = vector.broadcast %4 : vector<16x1xf32> to vector<16x32xf32>
    %13 = arith.subf %0, %12 : vector<16x32xf32>
    %cst_4 = arith.constant 9.99999974E-6 : f32
    %14 = vector.broadcast %cst_4 : f32 to vector<16x1xf32>
    %15 = arith.addf %11, %14 : vector<16x1xf32>
    %16 = math.rsqrt %15 : vector<16x1xf32>
    %17 = vector.broadcast %16 : vector<16x1xf32> to vector<16x32xf32>
    %18 = arith.mulf %13, %17 : vector<16x32xf32>
    %c0_5 = arith.constant 0 : index
    %c0_6 = arith.constant 0 : index
    %19 = vector.load %arg3[%c0_5, %c0_6] : memref<1x32xf32, #tpu.memory_space<vmem>>, vector<1x32xf32>
    %20 = vector.broadcast %19 : vector<1x32xf32> to vector<16x32xf32>
    %21 = arith.mulf %18, %20 : vector<16x32xf32>
    %c0_7 = arith.constant 0 : index
    %c0_8 = arith.constant 0 : index
    %22 = vector.load %arg4[%c0_7, %c0_8] : memref<1x32xf32, #tpu.memory_space<vmem>>, vector<1x32xf32>
    %23 = vector.broadcast %22 : vector<1x32xf32> to vector<16x32xf32>
    %24 = arith.addf %21, %23 : vector<16x32xf32>
    %25 = arith.truncf %24 : vector<16x32xf32> to vector<16x32xbf16>
    %c0_9 = arith.constant 0 : index
    %c0_10 = arith.constant 0 : index
    %26 = vector.load %arg5[%c0_9, %c0_10] : memref<32x85xbf16, #tpu.memory_space<vmem>>, vector<32x85xbf16>
    %cst_11 = arith.constant dense<0.000000e+00> : vector<16x85xf32>
    %27 = tpu.matmul %25, %26, %cst_11 {dimension_numbers = #tpu.dot_dimension_numbers<[1], [0], [0], [1], [0, 0, 1, 1], [], []>} : vector<16x32xbf16>, vector<32x85xbf16>, vector<16x85xf32> -> vector<16x85xf32>
    %c0_12 = arith.constant 0 : index
    %c0_13 = arith.constant 0 : index
    %28 = vector.load %arg6[%c0_12, %c0_13] : memref<32x85xbf16, #tpu.memory_space<vmem>>, vector<32x85xbf16>
    %cst_14 = arith.constant dense<0.000000e+00> : vector<16x85xf32>
    %29 = tpu.matmul %25, %28, %cst_14 {dimension_numbers = #tpu.dot_dimension_numbers<[1], [0], [0], [1], [0, 0, 1, 1], [], []>} : vector<16x32xbf16>, vector<32x85xbf16>, vector<16x85xf32> -> vector<16x85xf32>
    %30 = arith.mulf %29, %29 : vector<16x85xf32>
    %31 = arith.mulf %29, %30 : vector<16x85xf32>
    %cst_15 = arith.constant 4.471500e-02 : f32
    %32 = vector.broadcast %cst_15 : f32 to vector<16x85xf32>
    %33 = arith.mulf %32, %31 : vector<16x85xf32>
    %34 = arith.addf %29, %33 : vector<16x85xf32>
    %cst_16 = arith.constant 0.797884583 : f32
    %35 = vector.broadcast %cst_16 : f32 to vector<16x85xf32>
    %36 = arith.mulf %35, %34 : vector<16x85xf32>
    %37 = math.tanh %36 : vector<16x85xf32>
    %cst_17 = arith.constant 1.000000e+00 : f32
    %38 = vector.broadcast %cst_17 : f32 to vector<16x85xf32>
    %39 = arith.addf %38, %37 : vector<16x85xf32>
    %cst_18 = arith.constant 5.000000e-01 : f32
    %40 = vector.broadcast %cst_18 : f32 to vector<16x85xf32>
    %41 = arith.mulf %40, %39 : vector<16x85xf32>
    %42 = arith.mulf %29, %41 : vector<16x85xf32>
    %43 = arith.mulf %27, %42 : vector<16x85xf32>
    %44 = arith.truncf %43 : vector<16x85xf32> to vector<16x85xbf16>
    %c0_19 = arith.constant 0 : index
    %c0_20 = arith.constant 0 : index
    %45 = vector.load %arg7[%c0_19, %c0_20] : memref<16x85xbf16, #tpu.memory_space<vmem>>, vector<16x85xbf16>
    tpu.vector_store %arg7[%c0_19, %c0_20], %44 {strides = array<i32>} : memref<16x85xbf16, #tpu.memory_space<vmem>>, vector<16x85xbf16>,
    return
  }
  func.func @transform_0(%arg0: i32, %arg1: i32) -> (i32, i32) {
    %c0_i32 = arith.constant 0 : i32
    %c0_i32_0 = arith.constant 0 : i32
    return %arg0, %c0_i32 : i32, i32
  }
  func.func @transform_1(%arg0: i32, %arg1: i32) -> (i32, i32) {
    %c0_i32 = arith.constant 0 : i32
    %c0_i32_0 = arith.constant 0 : i32
    %c0_i32_1 = arith.constant 0 : i32
    return %c0_i32, %c0_i32_0 : i32, i32
  }
  func.func @transform_2(%arg0: i32, %arg1: i32) -> (i32, i32) {
    %c0_i32 = arith.constant 0 : i32
    %c0_i32_0 = arith.constant 0 : i32
    %c0_i32_1 = arith.constant 0 : i32
    return %c0_i32, %c0_i32_0 : i32, i32
  }
  func.func @transform_3(%arg0: i32, %arg1: i32) -> (i32, i32) {
    %c0_i32 = arith.constant 0 : i32
    %c0_i32_0 = arith.constant 0 : i32
    return %c0_i32, %arg1 : i32, i32
  }
  func.func @transform_4(%arg0: i32, %arg1: i32) -> (i32, i32) {
    %c0_i32 = arith.constant 0 : i32
    %c0_i32_0 = arith.constant 0 : i32
    return %c0_i32, %arg1 : i32, i32
  }
  func.func @transform_5(%arg0: i32, %arg1: i32) -> (i32, i32) {
    %c0_i32 = arith.constant 0 : i32
    return %arg0, %arg1 : i32, i32
  }
}

module attributes {stable_mosaic.version = 11 : i64} {
  func.func @_matmul_kernel(%arg0: i32, %arg1: i32, %arg2: i32, %arg3: memref<16x85xbf16, #tpu.memory_space<vmem>>, %arg4: memref<85x32xbf16, #tpu.memory_space<vmem>>, %arg5: memref<16x32xf32, #tpu.memory_space<vmem>>, %arg6: memref<16x32xf32, #tpu.memory_space<vmem>>, %arg7: memref<16x32xf32, #tpu.memory_space<vmem>>) attributes {dimension_semantics = [#tpu.dimension_semantics<parallel>, #tpu.dimension_semantics<parallel>, #tpu.dimension_semantics<arbitrary>], iteration_bounds = array<i64: 1, 1, 1>, scalar_prefetch = 0 : i64, scratch_operands = 1 : i64, tpu.core_type = #tpu.core_type<tc>, window_params = [{transform_indices = @transform_0, window_bounds = array<i64: 16, 85>}, {transform_indices = @transform_1, window_bounds = array<i64: 85, 32>}, {transform_indices = @transform_2, window_bounds = array<i64: 16, 32>}, {transform_indices = @transform_3, window_bounds = array<i64: 16, 32>}]} {
    %c0_i32 = arith.constant 0 : i32
    %0 = arith.cmpi eq, %arg2, %c0_i32 : i32
    %1 = arith.extui %0 : i1 to i32
    %c0_i32_0 = arith.constant 0 : i32
    %2 = arith.cmpi ne, %1, %c0_i32_0 : i32
    scf.if %2 {
      %cst_10 = arith.constant 0.000000e+00 : f32
      %12 = vector.broadcast %cst_10 : f32 to vector<16x32xf32>
      %c0_11 = arith.constant 0 : index
      %c0_12 = arith.constant 0 : index
      %13 = vector.load %arg7[%c0_11, %c0_12] : memref<16x32xf32, #tpu.memory_space<vmem>>, vector<16x32xf32>
      tpu.vector_store %arg7[%c0_11, %c0_12], %12 {strides = array<i32>} : memref<16x32xf32, #tpu.memory_space<vmem>>, vector<16x32xf32>,
    } else {
    }
    %c0 = arith.constant 0 : index
    %c0_1 = arith.constant 0 : index
    %3 = vector.load %arg7[%c0, %c0_1] : memref<16x32xf32, #tpu.memory_space<vmem>>, vector<16x32xf32>
    %c0_2 = arith.constant 0 : index
    %c0_3 = arith.constant 0 : index
    %4 = vector.load %arg3[%c0_2, %c0_3] : memref<16x85xbf16, #tpu.memory_space<vmem>>, vector<16x85xbf16>
    %c0_4 = arith.constant 0 : index
    %c0_5 = arith.constant 0 : index
    %5 = vector.load %arg4[%c0_4, %c0_5] : memref<85x32xbf16, #tpu.memory_space<vmem>>, vector<85x32xbf16>
    %cst = arith.constant dense<0.000000e+00> : vector<16x32xf32>
    %6 = tpu.matmul %4, %5, %cst {dimension_numbers = #tpu.dot_dimension_numbers<[1], [0], [0], [1], [0, 0, 1, 1], [], []>} : vector<16x85xbf16>, vector<85x32xbf16>, vector<16x32xf32> -> vector<16x32xf32>
    %7 = arith.addf %3, %6 : vector<16x32xf32>
    %c0_6 = arith.constant 0 : index
    %c0_7 = arith.constant 0 : index
    %8 = vector.load %arg7[%c0_6, %c0_7] : memref<16x32xf32, #tpu.memory_space<vmem>>, vector<16x32xf32>
    tpu.vector_store %arg7[%c0_6, %c0_7], %7 {strides = array<i32>} : memref<16x32xf32, #tpu.memory_space<vmem>>, vector<16x32xf32>,
    %c0_i32_8 = arith.constant 0 : i32
    %9 = arith.cmpi eq, %arg2, %c0_i32_8 : i32
    %10 = arith.extui %9 : i1 to i32
    %c0_i32_9 = arith.constant 0 : i32
    %11 = arith.cmpi ne, %10, %c0_i32_9 : i32
    scf.if %11 {
      %c0_10 = arith.constant 0 : index
      %c0_11 = arith.constant 0 : index
      %12 = vector.load %arg7[%c0_10, %c0_11] : memref<16x32xf32, #tpu.memory_space<vmem>>, vector<16x32xf32>
      %c0_12 = arith.constant 0 : index
      %c0_13 = arith.constant 0 : index
      %13 = vector.load %arg5[%c0_12, %c0_13] : memref<16x32xf32, #tpu.memory_space<vmem>>, vector<16x32xf32>
      %14 = arith.addf %12, %13 : vector<16x32xf32>
      %c0_14 = arith.constant 0 : index
      %c0_15 = arith.constant 0 : index
      %15 = vector.load %arg6[%c0_14, %c0_15] : memref<16x32xf32, #tpu.memory_space<vmem>>, vector<16x32xf32>
      tpu.vector_store %arg6[%c0_14, %c0_15], %14 {strides = array<i32>} : memref<16x32xf32, #tpu.memory_space<vmem>>, vector<16x32xf32>,
    } else {
    }
    return
  }
  func.func @transform_0(%arg0: i32, %arg1: i32, %arg2: i32) -> (i32, i32) {
    %c0_i32 = arith.constant 0 : i32
    return %arg0, %arg2 : i32, i32
  }
  func.func @transform_1(%arg0: i32, %arg1: i32, %arg2: i32) -> (i32, i32) {
    %c0_i32 = arith.constant 0 : i32
    return %arg2, %arg1 : i32, i32
  }
  func.func @transform_2(%arg0: i32, %arg1: i32, %arg2: i32) -> (i32, i32) {
    %c0_i32 = arith.constant 0 : i32
    return %arg0, %arg1 : i32, i32
  }
  func.func @transform_3(%arg0: i32, %arg1: i32, %arg2: i32) -> (i32, i32) {
    %c0_i32 = arith.constant 0 : i32
    return %arg0, %arg1 : i32, i32
  }
}

module attributes {stable_mosaic.version = 11 : i64} {
  func.func @_ln_matmul_kernel(%arg0: i32, %arg1: i32, %arg2: memref<16x32xf32, #tpu.memory_space<vmem>>, %arg3: memref<1x32xf32, #tpu.memory_space<vmem>>, %arg4: memref<1x32xf32, #tpu.memory_space<vmem>>, %arg5: memref<32x96xbf16, #tpu.memory_space<vmem>>, %arg6: memref<16x96xbf16, #tpu.memory_space<vmem>>) attributes {dimension_semantics = [#tpu.dimension_semantics<parallel>, #tpu.dimension_semantics<parallel>], iteration_bounds = array<i64: 1, 1>, scalar_prefetch = 0 : i64, scratch_operands = 0 : i64, tpu.core_type = #tpu.core_type<tc>, window_params = [{transform_indices = @transform_0, window_bounds = array<i64: 16, 32>}, {pipeline_mode = #tpu.pipeline_mode<synchronous>, transform_indices = @transform_1, window_bounds = array<i64: 1, 32>}, {pipeline_mode = #tpu.pipeline_mode<synchronous>, transform_indices = @transform_2, window_bounds = array<i64: 1, 32>}, {transform_indices = @transform_3, window_bounds = array<i64: 32, 96>}, {transform_indices = @transform_4, window_bounds = array<i64: 16, 96>}]} {
    %c0 = arith.constant 0 : index
    %c0_0 = arith.constant 0 : index
    %0 = vector.load %arg2[%c0, %c0_0] : memref<16x32xf32, #tpu.memory_space<vmem>>, vector<16x32xf32>
    %cst = arith.constant dense<0.000000e+00> : vector<16xf32>
    %1 = vector.multi_reduction <add>, %0, %cst [1] : vector<16x32xf32> to vector<16xf32>
    %2 = vector.shape_cast %1 : vector<16xf32> to vector<16x1xf32>
    %cst_1 = arith.constant 3.200000e+01 : f32
    %3 = vector.broadcast %cst_1 : f32 to vector<16x1xf32>
    %4 = arith.divf %2, %3 : vector<16x1xf32>
    %5 = vector.broadcast %4 : vector<16x1xf32> to vector<16x32xf32>
    %6 = arith.subf %0, %5 : vector<16x32xf32>
    %7 = arith.mulf %6, %6 : vector<16x32xf32>
    %cst_2 = arith.constant dense<0.000000e+00> : vector<16xf32>
    %8 = vector.multi_reduction <add>, %7, %cst_2 [1] : vector<16x32xf32> to vector<16xf32>
    %9 = vector.shape_cast %8 : vector<16xf32> to vector<16x1xf32>
    %cst_3 = arith.constant 3.200000e+01 : f32
    %10 = vector.broadcast %cst_3 : f32 to vector<16x1xf32>
    %11 = arith.divf %9, %10 : vector<16x1xf32>
    %12 = vector.broadcast %4 : vector<16x1xf32> to vector<16x32xf32>
    %13 = arith.subf %0, %12 : vector<16x32xf32>
    %cst_4 = arith.constant 9.99999974E-6 : f32
    %14 = vector.broadcast %cst_4 : f32 to vector<16x1xf32>
    %15 = arith.addf %11, %14 : vector<16x1xf32>
    %16 = math.rsqrt %15 : vector<16x1xf32>
    %17 = vector.broadcast %16 : vector<16x1xf32> to vector<16x32xf32>
    %18 = arith.mulf %13, %17 : vector<16x32xf32>
    %c0_5 = arith.constant 0 : index
    %c0_6 = arith.constant 0 : index
    %19 = vector.load %arg3[%c0_5, %c0_6] : memref<1x32xf32, #tpu.memory_space<vmem>>, vector<1x32xf32>
    %20 = vector.broadcast %19 : vector<1x32xf32> to vector<16x32xf32>
    %21 = arith.mulf %18, %20 : vector<16x32xf32>
    %c0_7 = arith.constant 0 : index
    %c0_8 = arith.constant 0 : index
    %22 = vector.load %arg4[%c0_7, %c0_8] : memref<1x32xf32, #tpu.memory_space<vmem>>, vector<1x32xf32>
    %23 = vector.broadcast %22 : vector<1x32xf32> to vector<16x32xf32>
    %24 = arith.addf %21, %23 : vector<16x32xf32>
    %25 = arith.truncf %24 : vector<16x32xf32> to vector<16x32xbf16>
    %c0_9 = arith.constant 0 : index
    %c0_10 = arith.constant 0 : index
    %26 = vector.load %arg5[%c0_9, %c0_10] : memref<32x96xbf16, #tpu.memory_space<vmem>>, vector<32x96xbf16>
    %cst_11 = arith.constant dense<0.000000e+00> : vector<16x96xf32>
    %27 = tpu.matmul %25, %26, %cst_11 {dimension_numbers = #tpu.dot_dimension_numbers<[1], [0], [0], [1], [0, 0, 1, 1], [], []>} : vector<16x32xbf16>, vector<32x96xbf16>, vector<16x96xf32> -> vector<16x96xf32>
    %28 = arith.truncf %27 : vector<16x96xf32> to vector<16x96xbf16>
    %c0_12 = arith.constant 0 : index
    %c0_13 = arith.constant 0 : index
    %29 = vector.load %arg6[%c0_12, %c0_13] : memref<16x96xbf16, #tpu.memory_space<vmem>>, vector<16x96xbf16>
    tpu.vector_store %arg6[%c0_12, %c0_13], %28 {strides = array<i32>} : memref<16x96xbf16, #tpu.memory_space<vmem>>, vector<16x96xbf16>,
    return
  }
  func.func @transform_0(%arg0: i32, %arg1: i32) -> (i32, i32) {
    %c0_i32 = arith.constant 0 : i32
    %c0_i32_0 = arith.constant 0 : i32
    return %arg0, %c0_i32 : i32, i32
  }
  func.func @transform_1(%arg0: i32, %arg1: i32) -> (i32, i32) {
    %c0_i32 = arith.constant 0 : i32
    %c0_i32_0 = arith.constant 0 : i32
    %c0_i32_1 = arith.constant 0 : i32
    return %c0_i32, %c0_i32_0 : i32, i32
  }
  func.func @transform_2(%arg0: i32, %arg1: i32) -> (i32, i32) {
    %c0_i32 = arith.constant 0 : i32
    %c0_i32_0 = arith.constant 0 : i32
    %c0_i32_1 = arith.constant 0 : i32
    return %c0_i32, %c0_i32_0 : i32, i32
  }
  func.func @transform_3(%arg0: i32, %arg1: i32) -> (i32, i32) {
    %c0_i32 = arith.constant 0 : i32
    %c0_i32_0 = arith.constant 0 : i32
    return %c0_i32, %arg1 : i32, i32
  }
  func.func @transform_4(%arg0: i32, %arg1: i32) -> (i32, i32) {
    %c0_i32 = arith.constant 0 : i32
    return %arg0, %arg1 : i32, i32
  }
}

module attributes {stable_mosaic.version = 11 : i64} {
  func.func @_ln_matmul_kernel(%arg0: i32, %arg1: i32, %arg2: memref<2x32xf32, #tpu.memory_space<vmem>>, %arg3: memref<1x32xf32, #tpu.memory_space<vmem>>, %arg4: memref<1x32xf32, #tpu.memory_space<vmem>>, %arg5: memref<32x10xbf16, #tpu.memory_space<vmem>>, %arg6: memref<2x10xf32, #tpu.memory_space<vmem>>) attributes {dimension_semantics = [#tpu.dimension_semantics<parallel>, #tpu.dimension_semantics<parallel>], iteration_bounds = array<i64: 1, 1>, scalar_prefetch = 0 : i64, scratch_operands = 0 : i64, tpu.core_type = #tpu.core_type<tc>, window_params = [{transform_indices = @transform_0, window_bounds = array<i64: 2, 32>}, {pipeline_mode = #tpu.pipeline_mode<synchronous>, transform_indices = @transform_1, window_bounds = array<i64: 1, 32>}, {pipeline_mode = #tpu.pipeline_mode<synchronous>, transform_indices = @transform_2, window_bounds = array<i64: 1, 32>}, {transform_indices = @transform_3, window_bounds = array<i64: 32, 10>}, {transform_indices = @transform_4, window_bounds = array<i64: 2, 10>}]} {
    %c0 = arith.constant 0 : index
    %c0_0 = arith.constant 0 : index
    %0 = vector.load %arg2[%c0, %c0_0] : memref<2x32xf32, #tpu.memory_space<vmem>>, vector<2x32xf32>
    %cst = arith.constant dense<0.000000e+00> : vector<2xf32>
    %1 = vector.multi_reduction <add>, %0, %cst [1] : vector<2x32xf32> to vector<2xf32>
    %2 = vector.shape_cast %1 : vector<2xf32> to vector<2x1xf32>
    %cst_1 = arith.constant 3.200000e+01 : f32
    %3 = vector.broadcast %cst_1 : f32 to vector<2x1xf32>
    %4 = arith.divf %2, %3 : vector<2x1xf32>
    %5 = vector.broadcast %4 : vector<2x1xf32> to vector<2x32xf32>
    %6 = arith.subf %0, %5 : vector<2x32xf32>
    %7 = arith.mulf %6, %6 : vector<2x32xf32>
    %cst_2 = arith.constant dense<0.000000e+00> : vector<2xf32>
    %8 = vector.multi_reduction <add>, %7, %cst_2 [1] : vector<2x32xf32> to vector<2xf32>
    %9 = vector.shape_cast %8 : vector<2xf32> to vector<2x1xf32>
    %cst_3 = arith.constant 3.200000e+01 : f32
    %10 = vector.broadcast %cst_3 : f32 to vector<2x1xf32>
    %11 = arith.divf %9, %10 : vector<2x1xf32>
    %12 = vector.broadcast %4 : vector<2x1xf32> to vector<2x32xf32>
    %13 = arith.subf %0, %12 : vector<2x32xf32>
    %cst_4 = arith.constant 9.99999974E-6 : f32
    %14 = vector.broadcast %cst_4 : f32 to vector<2x1xf32>
    %15 = arith.addf %11, %14 : vector<2x1xf32>
    %16 = math.rsqrt %15 : vector<2x1xf32>
    %17 = vector.broadcast %16 : vector<2x1xf32> to vector<2x32xf32>
    %18 = arith.mulf %13, %17 : vector<2x32xf32>
    %c0_5 = arith.constant 0 : index
    %c0_6 = arith.constant 0 : index
    %19 = vector.load %arg3[%c0_5, %c0_6] : memref<1x32xf32, #tpu.memory_space<vmem>>, vector<1x32xf32>
    %20 = vector.broadcast %19 : vector<1x32xf32> to vector<2x32xf32>
    %21 = arith.mulf %18, %20 : vector<2x32xf32>
    %c0_7 = arith.constant 0 : index
    %c0_8 = arith.constant 0 : index
    %22 = vector.load %arg4[%c0_7, %c0_8] : memref<1x32xf32, #tpu.memory_space<vmem>>, vector<1x32xf32>
    %23 = vector.broadcast %22 : vector<1x32xf32> to vector<2x32xf32>
    %24 = arith.addf %21, %23 : vector<2x32xf32>
    %25 = arith.truncf %24 : vector<2x32xf32> to vector<2x32xbf16>
    %c0_9 = arith.constant 0 : index
    %c0_10 = arith.constant 0 : index
    %26 = vector.load %arg5[%c0_9, %c0_10] : memref<32x10xbf16, #tpu.memory_space<vmem>>, vector<32x10xbf16>
    %cst_11 = arith.constant dense<0.000000e+00> : vector<2x10xf32>
    %27 = tpu.matmul %25, %26, %cst_11 {dimension_numbers = #tpu.dot_dimension_numbers<[1], [0], [0], [1], [0, 0, 1, 1], [], []>} : vector<2x32xbf16>, vector<32x10xbf16>, vector<2x10xf32> -> vector<2x10xf32>
    %c0_12 = arith.constant 0 : index
    %c0_13 = arith.constant 0 : index
    %28 = vector.load %arg6[%c0_12, %c0_13] : memref<2x10xf32, #tpu.memory_space<vmem>>, vector<2x10xf32>
    tpu.vector_store %arg6[%c0_12, %c0_13], %27 {strides = array<i32>} : memref<2x10xf32, #tpu.memory_space<vmem>>, vector<2x10xf32>,
    return
  }
  func.func @transform_0(%arg0: i32, %arg1: i32) -> (i32, i32) {
    %c0_i32 = arith.constant 0 : i32
    %c0_i32_0 = arith.constant 0 : i32
    return %arg0, %c0_i32 : i32, i32
  }
  func.func @transform_1(%arg0: i32, %arg1: i32) -> (i32, i32) {
    %c0_i32 = arith.constant 0 : i32
    %c0_i32_0 = arith.constant 0 : i32
    %c0_i32_1 = arith.constant 0 : i32
    return %c0_i32, %c0_i32_0 : i32, i32
  }
  func.func @transform_2(%arg0: i32, %arg1: i32) -> (i32, i32) {
    %c0_i32 = arith.constant 0 : i32
    %c0_i32_0 = arith.constant 0 : i32
    %c0_i32_1 = arith.constant 0 : i32
    return %c0_i32, %c0_i32_0 : i32, i32
  }
  func.func @transform_3(%arg0: i32, %arg1: i32) -> (i32, i32) {
    %c0_i32 = arith.constant 0 : i32
    %c0_i32_0 = arith.constant 0 : i32
    return %c0_i32, %arg1 : i32, i32
  }
  func.func @transform_4(%arg0: i32, %arg1: i32) -> (i32, i32) {
    %c0_i32 = arith.constant 0 : i32
    return %arg0, %arg1 : i32, i32
  }
}

module attributes {stable_mosaic.version = 11 : i64} {
  func.func @_mha_kernel(%arg0: i32, %arg1: i32, %arg2: memref<1x8x32xbf16, #tpu.memory_space<vmem>>, %arg3: memref<1x8x32xbf16, #tpu.memory_space<vmem>>, %arg4: memref<1x8x32xbf16, #tpu.memory_space<vmem>>, %arg5: memref<8x8xf32, #tpu.memory_space<vmem>>, %arg6: memref<8x8xf32, #tpu.memory_space<vmem>>, %arg7: memref<1x8x32xbf16, #tpu.memory_space<vmem>>) attributes {dimension_semantics = [#tpu.dimension_semantics<parallel>, #tpu.dimension_semantics<parallel>], iteration_bounds = array<i64: 2, 1>, scalar_prefetch = 0 : i64, scratch_operands = 0 : i64, tpu.core_type = #tpu.core_type<tc>, window_params = [{transform_indices = @transform_0, window_bounds = array<i64: 1, 8, 32>}, {transform_indices = @transform_1, window_bounds = array<i64: 1, 8, 32>}, {transform_indices = @transform_2, window_bounds = array<i64: 1, 8, 32>}, {pipeline_mode = #tpu.pipeline_mode<synchronous>, transform_indices = @transform_3, window_bounds = array<i64: 8, 8>}, {pipeline_mode = #tpu.pipeline_mode<synchronous>, transform_indices = @transform_4, window_bounds = array<i64: 8, 8>}, {transform_indices = @transform_5, window_bounds = array<i64: 1, 8, 32>}]} {
    %0 = tpu.iota {dimensions = array<i32: 0>} : vector<8x8xi32>
    %1 = tpu.iota {dimensions = array<i32: 1>} : vector<8x8xi32>
    %c0_i32 = arith.constant 0 : i32
    %2 = vector.broadcast %c0_i32 : i32 to vector<8x8xi32>
    %3 = arith.addi %0, %2 : vector<8x8xi32>
    %4 = arith.cmpi sle, %1, %3 : vector<8x8xi32>
    %cst = arith.constant 0.000000e+00 : f32
    %cst_0 = arith.constant -1.000000e+30 : f32
    %5 = vector.broadcast %cst : f32 to vector<8x8xf32>
    %6 = vector.broadcast %cst_0 : f32 to vector<8x8xf32>
    %7 = arith.select %4, %5, %6 : vector<8x8xi1>, vector<8x8xf32>
    %c0 = arith.constant 0 : index
    %c0_1 = arith.constant 0 : index
    %8 = vector.load %arg5[%c0, %c0_1] : memref<8x8xf32, #tpu.memory_space<vmem>>, vector<8x8xf32>
    %c0_2 = arith.constant 0 : index
    %c0_3 = arith.constant 0 : index
    %9 = vector.load %arg6[%c0_2, %c0_3] : memref<8x8xf32, #tpu.memory_space<vmem>>, vector<8x8xf32>
    %c0_4 = arith.constant 0 : index
    %c0_5 = arith.constant 0 : index
    %c0_6 = arith.constant 0 : index
    %10 = vector.load %arg2[%c0_4, %c0_5, %c0_6] : memref<1x8x32xbf16, #tpu.memory_space<vmem>>, vector<1x8x8xbf16>
    %11 = vector.shape_cast %10 : vector<1x8x8xbf16> to vector<8x8xbf16>
    %c0_7 = arith.constant 0 : index
    %c0_8 = arith.constant 0 : index
    %c0_9 = arith.constant 0 : index
    %12 = vector.load %arg3[%c0_7, %c0_8, %c0_9] : memref<1x8x32xbf16, #tpu.memory_space<vmem>>, vector<1x8x8xbf16>
    %13 = vector.shape_cast %12 : vector<1x8x8xbf16> to vector<8x8xbf16>
    %c0_10 = arith.constant 0 : index
    %c0_11 = arith.constant 0 : index
    %c0_12 = arith.constant 0 : index
    %14 = vector.load %arg4[%c0_10, %c0_11, %c0_12] : memref<1x8x32xbf16, #tpu.memory_space<vmem>>, vector<1x8x8xbf16>
    %15 = vector.shape_cast %14 : vector<1x8x8xbf16> to vector<8x8xbf16>
    %16 = arith.extf %11 : vector<8x8xbf16> to vector<8x8xf32>
    %17 = vector.extract_strided_slice %16 {offsets = [0, 4], sizes = [8, 4], strides = [1, 1]} : vector<8x8xf32> to vector<8x4xf32>
    %cst_13 = arith.constant 0.000000e+00 : f32
    %18 = vector.broadcast %cst_13 : f32 to vector<8x4xf32>
    %19 = arith.subf %18, %17 : vector<8x4xf32>
    %20 = vector.extract_strided_slice %16 {offsets = [0, 0], sizes = [8, 4], strides = [1, 1]} : vector<8x8xf32> to vector<8x4xf32>
    %21 = tpu.concatenate %19, %20 in 1 : vector<8x4xf32>, vector<8x4xf32> -> vector<8x8xf32>
    %22 = arith.mulf %16, %8 : vector<8x8xf32>
    %23 = arith.mulf %21, %9 : vector<8x8xf32>
    %24 = arith.addf %22, %23 : vector<8x8xf32>
    %25 = arith.truncf %24 : vector<8x8xf32> to vector<8x8xbf16>
    %26 = arith.extf %13 : vector<8x8xbf16> to vector<8x8xf32>
    %27 = vector.extract_strided_slice %26 {offsets = [0, 4], sizes = [8, 4], strides = [1, 1]} : vector<8x8xf32> to vector<8x4xf32>
    %cst_14 = arith.constant 0.000000e+00 : f32
    %28 = vector.broadcast %cst_14 : f32 to vector<8x4xf32>
    %29 = arith.subf %28, %27 : vector<8x4xf32>
    %30 = vector.extract_strided_slice %26 {offsets = [0, 0], sizes = [8, 4], strides = [1, 1]} : vector<8x8xf32> to vector<8x4xf32>
    %31 = tpu.concatenate %29, %30 in 1 : vector<8x4xf32>, vector<8x4xf32> -> vector<8x8xf32>
    %32 = arith.mulf %26, %8 : vector<8x8xf32>
    %33 = arith.mulf %31, %9 : vector<8x8xf32>
    %34 = arith.addf %32, %33 : vector<8x8xf32>
    %35 = arith.truncf %34 : vector<8x8xf32> to vector<8x8xbf16>
    %cst_15 = arith.constant dense<0.000000e+00> : vector<8x8xf32>
    %36 = tpu.matmul %25, %35, %cst_15 {dimension_numbers = #tpu.dot_dimension_numbers<[1], [1], [0], [0], [0, 0, 1, 0], [], []>} : vector<8x8xbf16>, vector<8x8xbf16>, vector<8x8xf32> -> vector<8x8xf32>
    %cst_16 = arith.constant 0.353553385 : f32
    %37 = vector.broadcast %cst_16 : f32 to vector<8x8xf32>
    %38 = arith.mulf %36, %37 : vector<8x8xf32>
    %39 = arith.addf %38, %7 : vector<8x8xf32>
    %cst_17 = arith.constant dense<0xFF800000> : vector<8xf32>
    %40 = vector.multi_reduction <maximumf>, %39, %cst_17 [1] : vector<8x8xf32> to vector<8xf32>
    %41 = vector.shape_cast %40 : vector<8xf32> to vector<8x1xf32>
    %42 = vector.broadcast %41 : vector<8x1xf32> to vector<8x8xf32>
    %43 = arith.subf %39, %42 : vector<8x8xf32>
    %44 = math.exp %43 : vector<8x8xf32>
    %cst_18 = arith.constant dense<0.000000e+00> : vector<8xf32>
    %45 = vector.multi_reduction <add>, %44, %cst_18 [1] : vector<8x8xf32> to vector<8xf32>
    %46 = vector.shape_cast %45 : vector<8xf32> to vector<8x1xf32>
    %47 = arith.truncf %44 : vector<8x8xf32> to vector<8x8xbf16>
    %cst_19 = arith.constant dense<0.000000e+00> : vector<8x8xf32>
    %48 = tpu.matmul %47, %15, %cst_19 {dimension_numbers = #tpu.dot_dimension_numbers<[1], [0], [0], [1], [0, 0, 1, 1], [], []>} : vector<8x8xbf16>, vector<8x8xbf16>, vector<8x8xf32> -> vector<8x8xf32>
    %49 = tpu.reciprocal %46 {approx = true} : vector<8x1xf32> -> vector<8x1xf32>
    %50 = vector.broadcast %49 : vector<8x1xf32> to vector<8x8xf32>
    %51 = arith.mulf %48, %50 : vector<8x8xf32>
    %c0_20 = arith.constant 0 : index
    %c0_21 = arith.constant 0 : index
    %c8 = arith.constant 8 : index
    %52 = vector.load %arg2[%c0_20, %c0_21, %c8] : memref<1x8x32xbf16, #tpu.memory_space<vmem>>, vector<1x8x8xbf16>
    %53 = vector.shape_cast %52 : vector<1x8x8xbf16> to vector<8x8xbf16>
    %c0_22 = arith.constant 0 : index
    %c0_23 = arith.constant 0 : index
    %c8_24 = arith.constant 8 : index
    %54 = vector.load %arg3[%c0_22, %c0_23, %c8_24] : memref<1x8x32xbf16, #tpu.memory_space<vmem>>, vector<1x8x8xbf16>
    %55 = vector.shape_cast %54 : vector<1x8x8xbf16> to vector<8x8xbf16>
    %c0_25 = arith.constant 0 : index
    %c0_26 = arith.constant 0 : index
    %c8_27 = arith.constant 8 : index
    %56 = vector.load %arg4[%c0_25, %c0_26, %c8_27] : memref<1x8x32xbf16, #tpu.memory_space<vmem>>, vector<1x8x8xbf16>
    %57 = vector.shape_cast %56 : vector<1x8x8xbf16> to vector<8x8xbf16>
    %58 = arith.extf %53 : vector<8x8xbf16> to vector<8x8xf32>
    %59 = vector.extract_strided_slice %58 {offsets = [0, 4], sizes = [8, 4], strides = [1, 1]} : vector<8x8xf32> to vector<8x4xf32>
    %cst_28 = arith.constant 0.000000e+00 : f32
    %60 = vector.broadcast %cst_28 : f32 to vector<8x4xf32>
    %61 = arith.subf %60, %59 : vector<8x4xf32>
    %62 = vector.extract_strided_slice %58 {offsets = [0, 0], sizes = [8, 4], strides = [1, 1]} : vector<8x8xf32> to vector<8x4xf32>
    %63 = tpu.concatenate %61, %62 in 1 : vector<8x4xf32>, vector<8x4xf32> -> vector<8x8xf32>
    %64 = arith.mulf %58, %8 : vector<8x8xf32>
    %65 = arith.mulf %63, %9 : vector<8x8xf32>
    %66 = arith.addf %64, %65 : vector<8x8xf32>
    %67 = arith.truncf %66 : vector<8x8xf32> to vector<8x8xbf16>
    %68 = arith.extf %55 : vector<8x8xbf16> to vector<8x8xf32>
    %69 = vector.extract_strided_slice %68 {offsets = [0, 4], sizes = [8, 4], strides = [1, 1]} : vector<8x8xf32> to vector<8x4xf32>
    %cst_29 = arith.constant 0.000000e+00 : f32
    %70 = vector.broadcast %cst_29 : f32 to vector<8x4xf32>
    %71 = arith.subf %70, %69 : vector<8x4xf32>
    %72 = vector.extract_strided_slice %68 {offsets = [0, 0], sizes = [8, 4], strides = [1, 1]} : vector<8x8xf32> to vector<8x4xf32>
    %73 = tpu.concatenate %71, %72 in 1 : vector<8x4xf32>, vector<8x4xf32> -> vector<8x8xf32>
    %74 = arith.mulf %68, %8 : vector<8x8xf32>
    %75 = arith.mulf %73, %9 : vector<8x8xf32>
    %76 = arith.addf %74, %75 : vector<8x8xf32>
    %77 = arith.truncf %76 : vector<8x8xf32> to vector<8x8xbf16>
    %cst_30 = arith.constant dense<0.000000e+00> : vector<8x8xf32>
    %78 = tpu.matmul %67, %77, %cst_30 {dimension_numbers = #tpu.dot_dimension_numbers<[1], [1], [0], [0], [0, 0, 1, 0], [], []>} : vector<8x8xbf16>, vector<8x8xbf16>, vector<8x8xf32> -> vector<8x8xf32>
    %cst_31 = arith.constant 0.353553385 : f32
    %79 = vector.broadcast %cst_31 : f32 to vector<8x8xf32>
    %80 = arith.mulf %78, %79 : vector<8x8xf32>
    %81 = arith.addf %80, %7 : vector<8x8xf32>
    %cst_32 = arith.constant dense<0xFF800000> : vector<8xf32>
    %82 = vector.multi_reduction <maximumf>, %81, %cst_32 [1] : vector<8x8xf32> to vector<8xf32>
    %83 = vector.shape_cast %82 : vector<8xf32> to vector<8x1xf32>
    %84 = vector.broadcast %83 : vector<8x1xf32> to vector<8x8xf32>
    %85 = arith.subf %81, %84 : vector<8x8xf32>
    %86 = math.exp %85 : vector<8x8xf32>
    %cst_33 = arith.constant dense<0.000000e+00> : vector<8xf32>
    %87 = vector.multi_reduction <add>, %86, %cst_33 [1] : vector<8x8xf32> to vector<8xf32>
    %88 = vector.shape_cast %87 : vector<8xf32> to vector<8x1xf32>
    %89 = arith.truncf %86 : vector<8x8xf32> to vector<8x8xbf16>
    %cst_34 = arith.constant dense<0.000000e+00> : vector<8x8xf32>
    %90 = tpu.matmul %89, %57, %cst_34 {dimension_numbers = #tpu.dot_dimension_numbers<[1], [0], [0], [1], [0, 0, 1, 1], [], []>} : vector<8x8xbf16>, vector<8x8xbf16>, vector<8x8xf32> -> vector<8x8xf32>
    %91 = tpu.reciprocal %88 {approx = true} : vector<8x1xf32> -> vector<8x1xf32>
    %92 = vector.broadcast %91 : vector<8x1xf32> to vector<8x8xf32>
    %93 = arith.mulf %90, %92 : vector<8x8xf32>
    %c0_35 = arith.constant 0 : index
    %c0_36 = arith.constant 0 : index
    %c16 = arith.constant 16 : index
    %94 = vector.load %arg2[%c0_35, %c0_36, %c16] : memref<1x8x32xbf16, #tpu.memory_space<vmem>>, vector<1x8x8xbf16>
    %95 = vector.shape_cast %94 : vector<1x8x8xbf16> to vector<8x8xbf16>
    %c0_37 = arith.constant 0 : index
    %c0_38 = arith.constant 0 : index
    %c16_39 = arith.constant 16 : index
    %96 = vector.load %arg3[%c0_37, %c0_38, %c16_39] : memref<1x8x32xbf16, #tpu.memory_space<vmem>>, vector<1x8x8xbf16>
    %97 = vector.shape_cast %96 : vector<1x8x8xbf16> to vector<8x8xbf16>
    %c0_40 = arith.constant 0 : index
    %c0_41 = arith.constant 0 : index
    %c16_42 = arith.constant 16 : index
    %98 = vector.load %arg4[%c0_40, %c0_41, %c16_42] : memref<1x8x32xbf16, #tpu.memory_space<vmem>>, vector<1x8x8xbf16>
    %99 = vector.shape_cast %98 : vector<1x8x8xbf16> to vector<8x8xbf16>
    %100 = arith.extf %95 : vector<8x8xbf16> to vector<8x8xf32>
    %101 = vector.extract_strided_slice %100 {offsets = [0, 4], sizes = [8, 4], strides = [1, 1]} : vector<8x8xf32> to vector<8x4xf32>
    %cst_43 = arith.constant 0.000000e+00 : f32
    %102 = vector.broadcast %cst_43 : f32 to vector<8x4xf32>
    %103 = arith.subf %102, %101 : vector<8x4xf32>
    %104 = vector.extract_strided_slice %100 {offsets = [0, 0], sizes = [8, 4], strides = [1, 1]} : vector<8x8xf32> to vector<8x4xf32>
    %105 = tpu.concatenate %103, %104 in 1 : vector<8x4xf32>, vector<8x4xf32> -> vector<8x8xf32>
    %106 = arith.mulf %100, %8 : vector<8x8xf32>
    %107 = arith.mulf %105, %9 : vector<8x8xf32>
    %108 = arith.addf %106, %107 : vector<8x8xf32>
    %109 = arith.truncf %108 : vector<8x8xf32> to vector<8x8xbf16>
    %110 = arith.extf %97 : vector<8x8xbf16> to vector<8x8xf32>
    %111 = vector.extract_strided_slice %110 {offsets = [0, 4], sizes = [8, 4], strides = [1, 1]} : vector<8x8xf32> to vector<8x4xf32>
    %cst_44 = arith.constant 0.000000e+00 : f32
    %112 = vector.broadcast %cst_44 : f32 to vector<8x4xf32>
    %113 = arith.subf %112, %111 : vector<8x4xf32>
    %114 = vector.extract_strided_slice %110 {offsets = [0, 0], sizes = [8, 4], strides = [1, 1]} : vector<8x8xf32> to vector<8x4xf32>
    %115 = tpu.concatenate %113, %114 in 1 : vector<8x4xf32>, vector<8x4xf32> -> vector<8x8xf32>
    %116 = arith.mulf %110, %8 : vector<8x8xf32>
    %117 = arith.mulf %115, %9 : vector<8x8xf32>
    %118 = arith.addf %116, %117 : vector<8x8xf32>
    %119 = arith.truncf %118 : vector<8x8xf32> to vector<8x8xbf16>
    %cst_45 = arith.constant dense<0.000000e+00> : vector<8x8xf32>
    %120 = tpu.matmul %109, %119, %cst_45 {dimension_numbers = #tpu.dot_dimension_numbers<[1], [1], [0], [0], [0, 0, 1, 0], [], []>} : vector<8x8xbf16>, vector<8x8xbf16>, vector<8x8xf32> -> vector<8x8xf32>
    %cst_46 = arith.constant 0.353553385 : f32
    %121 = vector.broadcast %cst_46 : f32 to vector<8x8xf32>
    %122 = arith.mulf %120, %121 : vector<8x8xf32>
    %123 = arith.addf %122, %7 : vector<8x8xf32>
    %cst_47 = arith.constant dense<0xFF800000> : vector<8xf32>
    %124 = vector.multi_reduction <maximumf>, %123, %cst_47 [1] : vector<8x8xf32> to vector<8xf32>
    %125 = vector.shape_cast %124 : vector<8xf32> to vector<8x1xf32>
    %126 = vector.broadcast %125 : vector<8x1xf32> to vector<8x8xf32>
    %127 = arith.subf %123, %126 : vector<8x8xf32>
    %128 = math.exp %127 : vector<8x8xf32>
    %cst_48 = arith.constant dense<0.000000e+00> : vector<8xf32>
    %129 = vector.multi_reduction <add>, %128, %cst_48 [1] : vector<8x8xf32> to vector<8xf32>
    %130 = vector.shape_cast %129 : vector<8xf32> to vector<8x1xf32>
    %131 = arith.truncf %128 : vector<8x8xf32> to vector<8x8xbf16>
    %cst_49 = arith.constant dense<0.000000e+00> : vector<8x8xf32>
    %132 = tpu.matmul %131, %99, %cst_49 {dimension_numbers = #tpu.dot_dimension_numbers<[1], [0], [0], [1], [0, 0, 1, 1], [], []>} : vector<8x8xbf16>, vector<8x8xbf16>, vector<8x8xf32> -> vector<8x8xf32>
    %133 = tpu.reciprocal %130 {approx = true} : vector<8x1xf32> -> vector<8x1xf32>
    %134 = vector.broadcast %133 : vector<8x1xf32> to vector<8x8xf32>
    %135 = arith.mulf %132, %134 : vector<8x8xf32>
    %c0_50 = arith.constant 0 : index
    %c0_51 = arith.constant 0 : index
    %c24 = arith.constant 24 : index
    %136 = vector.load %arg2[%c0_50, %c0_51, %c24] : memref<1x8x32xbf16, #tpu.memory_space<vmem>>, vector<1x8x8xbf16>
    %137 = vector.shape_cast %136 : vector<1x8x8xbf16> to vector<8x8xbf16>
    %c0_52 = arith.constant 0 : index
    %c0_53 = arith.constant 0 : index
    %c24_54 = arith.constant 24 : index
    %138 = vector.load %arg3[%c0_52, %c0_53, %c24_54] : memref<1x8x32xbf16, #tpu.memory_space<vmem>>, vector<1x8x8xbf16>
    %139 = vector.shape_cast %138 : vector<1x8x8xbf16> to vector<8x8xbf16>
    %c0_55 = arith.constant 0 : index
    %c0_56 = arith.constant 0 : index
    %c24_57 = arith.constant 24 : index
    %140 = vector.load %arg4[%c0_55, %c0_56, %c24_57] : memref<1x8x32xbf16, #tpu.memory_space<vmem>>, vector<1x8x8xbf16>
    %141 = vector.shape_cast %140 : vector<1x8x8xbf16> to vector<8x8xbf16>
    %142 = arith.extf %137 : vector<8x8xbf16> to vector<8x8xf32>
    %143 = vector.extract_strided_slice %142 {offsets = [0, 4], sizes = [8, 4], strides = [1, 1]} : vector<8x8xf32> to vector<8x4xf32>
    %cst_58 = arith.constant 0.000000e+00 : f32
    %144 = vector.broadcast %cst_58 : f32 to vector<8x4xf32>
    %145 = arith.subf %144, %143 : vector<8x4xf32>
    %146 = vector.extract_strided_slice %142 {offsets = [0, 0], sizes = [8, 4], strides = [1, 1]} : vector<8x8xf32> to vector<8x4xf32>
    %147 = tpu.concatenate %145, %146 in 1 : vector<8x4xf32>, vector<8x4xf32> -> vector<8x8xf32>
    %148 = arith.mulf %142, %8 : vector<8x8xf32>
    %149 = arith.mulf %147, %9 : vector<8x8xf32>
    %150 = arith.addf %148, %149 : vector<8x8xf32>
    %151 = arith.truncf %150 : vector<8x8xf32> to vector<8x8xbf16>
    %152 = arith.extf %139 : vector<8x8xbf16> to vector<8x8xf32>
    %153 = vector.extract_strided_slice %152 {offsets = [0, 4], sizes = [8, 4], strides = [1, 1]} : vector<8x8xf32> to vector<8x4xf32>
    %cst_59 = arith.constant 0.000000e+00 : f32
    %154 = vector.broadcast %cst_59 : f32 to vector<8x4xf32>
    %155 = arith.subf %154, %153 : vector<8x4xf32>
    %156 = vector.extract_strided_slice %152 {offsets = [0, 0], sizes = [8, 4], strides = [1, 1]} : vector<8x8xf32> to vector<8x4xf32>
    %157 = tpu.concatenate %155, %156 in 1 : vector<8x4xf32>, vector<8x4xf32> -> vector<8x8xf32>
    %158 = arith.mulf %152, %8 : vector<8x8xf32>
    %159 = arith.mulf %157, %9 : vector<8x8xf32>
    %160 = arith.addf %158, %159 : vector<8x8xf32>
    %161 = arith.truncf %160 : vector<8x8xf32> to vector<8x8xbf16>
    %cst_60 = arith.constant dense<0.000000e+00> : vector<8x8xf32>
    %162 = tpu.matmul %151, %161, %cst_60 {dimension_numbers = #tpu.dot_dimension_numbers<[1], [1], [0], [0], [0, 0, 1, 0], [], []>} : vector<8x8xbf16>, vector<8x8xbf16>, vector<8x8xf32> -> vector<8x8xf32>
    %cst_61 = arith.constant 0.353553385 : f32
    %163 = vector.broadcast %cst_61 : f32 to vector<8x8xf32>
    %164 = arith.mulf %162, %163 : vector<8x8xf32>
    %165 = arith.addf %164, %7 : vector<8x8xf32>
    %cst_62 = arith.constant dense<0xFF800000> : vector<8xf32>
    %166 = vector.multi_reduction <maximumf>, %165, %cst_62 [1] : vector<8x8xf32> to vector<8xf32>
    %167 = vector.shape_cast %166 : vector<8xf32> to vector<8x1xf32>
    %168 = vector.broadcast %167 : vector<8x1xf32> to vector<8x8xf32>
    %169 = arith.subf %165, %168 : vector<8x8xf32>
    %170 = math.exp %169 : vector<8x8xf32>
    %cst_63 = arith.constant dense<0.000000e+00> : vector<8xf32>
    %171 = vector.multi_reduction <add>, %170, %cst_63 [1] : vector<8x8xf32> to vector<8xf32>
    %172 = vector.shape_cast %171 : vector<8xf32> to vector<8x1xf32>
    %173 = arith.truncf %170 : vector<8x8xf32> to vector<8x8xbf16>
    %cst_64 = arith.constant dense<0.000000e+00> : vector<8x8xf32>
    %174 = tpu.matmul %173, %141, %cst_64 {dimension_numbers = #tpu.dot_dimension_numbers<[1], [0], [0], [1], [0, 0, 1, 1], [], []>} : vector<8x8xbf16>, vector<8x8xbf16>, vector<8x8xf32> -> vector<8x8xf32>
    %175 = tpu.reciprocal %172 {approx = true} : vector<8x1xf32> -> vector<8x1xf32>
    %176 = vector.broadcast %175 : vector<8x1xf32> to vector<8x8xf32>
    %177 = arith.mulf %174, %176 : vector<8x8xf32>
    %178 = tpu.concatenate %51, %93, %135, %177 in 1 : vector<8x8xf32>, vector<8x8xf32>, vector<8x8xf32>, vector<8x8xf32> -> vector<8x32xf32>
    %179 = arith.truncf %178 : vector<8x32xf32> to vector<8x32xbf16>
    %c0_65 = arith.constant 0 : index
    %c0_66 = arith.constant 0 : index
    %c0_67 = arith.constant 0 : index
    %180 = vector.load %arg7[%c0_65, %c0_66, %c0_67] : memref<1x8x32xbf16, #tpu.memory_space<vmem>>, vector<1x8x32xbf16>
    %181 = vector.shape_cast %180 : vector<1x8x32xbf16> to vector<8x32xbf16>
    %182 = vector.shape_cast %179 : vector<8x32xbf16> to vector<1x8x32xbf16>
    tpu.vector_store %arg7[%c0_65, %c0_66, %c0_67], %182 {strides = array<i32>} : memref<1x8x32xbf16, #tpu.memory_space<vmem>>, vector<1x8x32xbf16>,
    return
  }
  func.func @transform_0(%arg0: i32, %arg1: i32) -> (i32, i32, i32) {
    %c0_i32 = arith.constant 0 : i32
    %c0_i32_0 = arith.constant 0 : i32
    return %arg0, %c0_i32, %arg1 : i32, i32, i32
  }
  func.func @transform_1(%arg0: i32, %arg1: i32) -> (i32, i32, i32) {
    %c0_i32 = arith.constant 0 : i32
    %c0_i32_0 = arith.constant 0 : i32
    return %arg0, %c0_i32, %arg1 : i32, i32, i32
  }
  func.func @transform_2(%arg0: i32, %arg1: i32) -> (i32, i32, i32) {
    %c0_i32 = arith.constant 0 : i32
    %c0_i32_0 = arith.constant 0 : i32
    return %arg0, %c0_i32, %arg1 : i32, i32, i32
  }
  func.func @transform_3(%arg0: i32, %arg1: i32) -> (i32, i32) {
    %c0_i32 = arith.constant 0 : i32
    %c0_i32_0 = arith.constant 0 : i32
    %c0_i32_1 = arith.constant 0 : i32
    return %c0_i32, %c0_i32_0 : i32, i32
  }
  func.func @transform_4(%arg0: i32, %arg1: i32) -> (i32, i32) {
    %c0_i32 = arith.constant 0 : i32
    %c0_i32_0 = arith.constant 0 : i32
    %c0_i32_1 = arith.constant 0 : i32
    return %c0_i32, %c0_i32_0 : i32, i32
  }
  func.func @transform_5(%arg0: i32, %arg1: i32) -> (i32, i32, i32) {
    %c0_i32 = arith.constant 0 : i32
    %c0_i32_0 = arith.constant 0 : i32
    return %arg0, %c0_i32, %arg1 : i32, i32, i32
  }
}

</mosaic_0001>

<bundles_post_ra>
// kernel: block_recurrent_forward.25
= control target key start
LH: loop header
LB: loop body
LE: loop exit
PB: predicated region body
PF: predicated region fallthrough
CT: control target
= control target key end

     0   :  { %vm20_vm0 = vcmask 261120   ;;  %v174_v14 = vmov 0.0   ;;  %vm175_vm1 = vmmov 0   ;;  %s227_s0 = inlined_call_operand.vmem [shape: f32[16,32], index: 0, kind: input, shape index: {}]   ;;  %s228_s3 = inlined_call_operand.vmem [shape: bf16[32,128], index: 3, kind: input, shape index: {}]   ;;  %s229_s1 = inlined_call_operand.vmem [shape: f32[1,32], index: 1, kind: input, shape index: {}]   ;;  %s230_s2 = inlined_call_operand.vmem [shape: f32[1,32], index: 2, kind: input, shape index: {}]   ;;  %s231_s4 = inlined_call_operand.vmem [shape: bf16[16,128], index: 4, kind: output, shape index: {}]  }
   0x1   :  { %v18_v0 = vld [vmem:[%s227_s0] sm:$0xff]  ;;  %v19_v1 = vld [vmem:[%s227_s0 + $0x8] sm:$0xff]  ;;  %158 = vmatprep.subr.bf16.mxu0 %v174_v14  ;;  %162 = vmatprep.mubr.msk.bf16.mxu0 %vm175_vm1, %v174_v14 }
   0x2   :  { %v21_v2 = vsel %vm20_vm0, %v18_v0, 0.0  ;;  %v24_v3 = vsel %vm20_vm0, %v19_v1, 0.0  ;;  %v168_v15 = vld [vmem:[%s228_s3 + $0x8] sm:$0xff]   ;;  %v169_v16 = vld [vmem:[%s228_s3] sm:$0xff]  }
   0x3   :  { %22 = vadd.xlane.f32.xlu0 %v21_v2  ;;  %159 = vmatpush3.bf16.msra.mxu0 %v168_v15  ;;  %v141_v25 = vld [vmem:[%s229_s1] ss:$0 sm:$0xff] }
   0x4   :  { %160 = vmatprep.subr.bf16.mxu0 %v174_v14  ;;  %v142_v29 = vld [vmem:[%s230_s2] ss:$0 sm:$0xff] }
   0x7   :  { %25 = vadd.xlane.f32.xlu0 %v24_v3  ;;  %161 = vmatpush3.bf16.msra.mxu0 %v169_v16 }
  0x8c   :  { %v23_v4 = vpop.xlane.xlu0 %22 }
  0x8d   :  { %v28_v5 = vmul.f32 0.03125, %v23_v4 }
  0x8f   :  { %v30_v6 = vsub.f32 %v18_v0, %v28_v5 }
  0x90   :  { %v26_v7 = vpop.xlane.xlu0 %25 }
  0x91   :  { %v29_v8 = vmul.f32 0.03125, %v26_v7  ;;  %v32_v9 = vmul.f32 %v30_v6, %v30_v6 }
  0x93   :  { %v31_v10 = vsub.f32 %v19_v1, %v29_v8  ;;  %v34_v11 = vsel %vm20_vm0, %v32_v9, 0.0 }
  0x94   :  { %35 = vadd.xlane.f32.xlu1 %v34_v11 }
  0x95   :  { %v33_v12 = vmul.f32 %v31_v10, %v31_v10 }
  0x97   :  { %v37_v13 = vsel %vm20_vm0, %v33_v12, 0.0 }
  0x98   :  { %38 = vadd.xlane.f32.xlu1 %v37_v13 }
 0x11d   :  { %v36_v17 = vpop.xlane.xlu1 %35 }
 0x11e   :  { %v40_v18 = vmul.f32 0.03125, %v36_v17 }
 0x120   :  { %v42_v19 = vadd.f32 1e-05, %v40_v18 }
 0x121   :  { %v39_v20 = vpop.xlane.xlu1 %38 }
 0x122   :  { %170 = vrsqrt.f32 %v42_v19  ;;  %v41_v21 = vmul.f32 0.03125, %v39_v20 }
 0x124   :  { %v43_v22 = vadd.f32 1e-05, %v41_v21 }
 0x126   :  { %172 = vrsqrt.f32 %v43_v22 }
 0x12f   :  { %v171_v23 = vpop.eup %170 }
 0x130   :  { %v46_v24 = vmul.f32 %v171_v23, %v30_v6 }
 0x132   :  { %v55_v28 = vmul.f32 %v141_v25, %v46_v24 }
 0x133   :  { %v173_v26 = vpop.eup %172 }
 0x134   :  { %v47_v27 = vmul.f32 %v173_v26, %v31_v10  ;;  %v64_v31 = vadd.f32 %v142_v29, %v55_v28 }
 0x136   :  { %v56_v30 = vmul.f32 %v141_v25, %v47_v27 }
 0x138   :  { %v65_v32 = vadd.f32 %v142_v29, %v56_v30 }
 0x13a   :  { %v66_v33 = vpack.c.bf16 %v65_v32, %v64_v31 }
 0x13c   :  { %163 = vmatmul.mubr.msk.bf16.vlgmr.msra.gmra.mxu0 %vm20_vm0, %v66_v33 }
 0x1fc   :  { %v120_v34 = vpop.f32.mrf.mxu0 }
 0x1fe   :  { %v164_v35 = vpop.f32.mrf.mxu0 }
 0x200   :  { %v123_v36 = vpop.f32.mrf.mxu0 }
 0x201   :  { %v153_v37 = vpack.c.bf16 %v123_v36, %v120_v34 }
 0x202   :  { %v165_v38 = vpop.f32.mrf.mxu0 }
 0x203   :  { %154 = vst [vmem:[%s231_s4] sm:$0xff] %v153_v37  }

// kernel: block_recurrent_forward.23
= control target key start
LH: loop header
LB: loop body
LE: loop exit
PB: predicated region body
PF: predicated region fallthrough
CT: control target
= control target key end

     0   :  { %vm16_vm0 = vcmask 261120   ;;  %vm47_vm1 = vcmask 130048   ;;  %v145_v1 = vmov 0.0   ;;  %s194_s1 = inlined_call_operand.vmem [shape: bf16[16,32], index: 1, kind: input, shape index: {}]   ;;  %s195_s0 = inlined_call_operand.vmem [shape: bf16[32,16], index: 0, kind: input, shape index: {}]   ;;  %s196_s2 = inlined_call_operand.vmem [shape: f32[32,32], index: 2, kind: output, shape index: {}]  }
   0x1   :  { %v142_v0 = vld [vmem:[%s194_s1] sm:$0xff]   ;;  %19 = vst.msk [vmem:[#allocation2 + $0x10] sm:$0xff] %vm16_vm0, %v145_v1  ;;  %17 = vst.msk [vmem:[#allocation2] sm:$0xff] %vm16_vm0, %v145_v1  ;;  %v144_v3 = vld [vmem:[%s195_s0 + $0x8] sm:$0xff]  }
   0x2   :  { %18 = vst.msk [vmem:[#allocation2 + $0x8] sm:$0xff] %vm16_vm0, %v145_v1  ;;  %20 = vst.msk [vmem:[#allocation2 + $0x18] sm:$0xff] %vm16_vm0, %v145_v1  ;;  %v143_v2 = vld [vmem:[%s195_s0] sm:$0xff]   ;;  %135 = vmatprep.subr.bf16.mxu0 %v142_v0 }
   0x3   :  { %136 = vmatpush3.bf16.msra.mxu0 %v142_v0  ;;  %137 = vmatprep.mubr.msk.bf16.mxu0 %vm47_vm1, %v143_v2 }
   0x6   :  { %138 = vmatmul.mubr.msk.bf16.vlgmr.msra.gmra.mxu0 %vm47_vm1, %v144_v3 }
   0x8   :  { %v23_v4 = vld [vmem:[#allocation2 + $0x10] sm:$0xff]  ;;  %v21_v6 = vld [vmem:[#allocation2] sm:$0xff] }
   0x9   :  { %v24_v9 = vld [vmem:[#allocation2 + $0x18] sm:$0xff]  ;;  %v22_v12 = vld [vmem:[#allocation2 + $0x8] sm:$0xff] }
  0xc6   :  { %v139_v5 = vpop.f32.mrf.mxu0 }
  0xc7   :  { %v105_v7 = vadd.f32 %v139_v5, %v23_v4 }
  0xc8   :  { %v88_v8 = vpop.f32.mrf.mxu0 }
  0xc9   :  { %110 = vst.msk [vmem:[#allocation2 + $0x10] sm:$0xff] %vm16_vm0, %v105_v7  ;;  %v103_v10 = vadd.f32 %v88_v8, %v21_v6 }
  0xca   :  { %v140_v11 = vpop.f32.mrf.mxu0 }
  0xcb   :  { %108 = vst.msk [vmem:[#allocation2] sm:$0xff] %vm16_vm0, %v103_v10  ;;  %v106_v13 = vadd.f32 %v140_v11, %v24_v9 }
  0xcc   :  { %v91_v14 = vpop.f32.mrf.mxu0 }
  0xcd   :  { %111 = vst.msk [vmem:[#allocation2 + $0x18] sm:$0xff] %vm16_vm0, %v106_v13  ;;  %v104_v15 = vadd.f32 %v91_v14, %v22_v12 }
  0xcf   :  { %109 = vst.msk [vmem:[#allocation2 + $0x8] sm:$0xff] %vm16_vm0, %v104_v15 }
  0xd0   :  { %v117_v16 = vld [vmem:[#allocation2 + $0x10] sm:$0xff] }
  0xd1   :  { %121 = vst.msk [vmem:[%s196_s2 + $0x10] sm:$0xff] %vm16_vm0, %v117_v16 }
  0xd2   :  { %v115_v17 = vld [vmem:[#allocation2] sm:$0xff] }
  0xd3   :  { %119 = vst.msk [vmem:[%s196_s2] sm:$0xff] %vm16_vm0, %v115_v17 }
  0xd4   :  { %v118_v18 = vld [vmem:[#allocation2 + $0x18] sm:$0xff] }
  0xd5   :  { %122 = vst.msk [vmem:[%s196_s2 + $0x18] sm:$0xff] %vm16_vm0, %v118_v18 }
  0xd6   :  { %v116_v19 = vld [vmem:[#allocation2 + $0x8] sm:$0xff] }
  0xd7   :  { %120 = vst.msk [vmem:[%s196_s2 + $0x8] sm:$0xff] %vm16_vm0, %v116_v19 }

// kernel: block_recurrent_forward.24
= control target key start
LH: loop header
LB: loop body
LE: loop exit
PB: predicated region body
PF: predicated region fallthrough
CT: control target
= control target key end

     0   :  { %vm19_vm0 = vcmask 261120   ;;  %v139_v7 = vmov 0.0   ;;  %vm140_vm1 = vmmov 0   ;;  %vm111_vm2 = vcmask 519168   ;;  %s187_s0 = inlined_call_operand.vmem [shape: f32[8,32], index: 0, kind: input, shape index: {}]   ;;  %s188_s3 = inlined_call_operand.vmem [shape: bf16[32,64], index: 3, kind: input, shape index: {}]   ;;  %s189_s1 = inlined_call_operand.vmem [shape: f32[1,32], index: 1, kind: input, shape index: {}]   ;;  %s190_s2 = inlined_call_operand.vmem [shape: f32[1,32], index: 2, kind: input, shape index: {}]   ;;  %s191_s4 = inlined_call_operand.vmem [shape: bf16[8,64], index: 4, kind: output, shape index: {}]  }
   0x1   :  { %v18_v0 = vld [vmem:[%s187_s0] sm:$0xff]  ;;  %125 = vmatprep.subr.bf16.mxu0 %v139_v7  ;;  %v135_v8 = vld [vmem:[%s188_s3 + $0x8] sm:$0xff]   ;;  %129 = vmatprep.mubr.msk.bf16.mxu0 %vm140_vm1, %v139_v7 }
   0x2   :  { %v20_v1 = vsel %vm19_vm0, %v18_v0, 0.0  ;;  %126 = vmatpush3.bf16.msra.mxu0 %v135_v8  ;;  %v136_v9 = vld [vmem:[%s188_s3] sm:$0xff]  }
   0x3   :  { %21 = vadd.xlane.f32.xlu0 %v20_v1  ;;  %127 = vmatprep.subr.bf16.mxu0 %v139_v7  ;;  %v117_v14 = vld [vmem:[%s189_s1] ss:$0 sm:$0xff] }
   0x4   :  { %v118_v16 = vld [vmem:[%s190_s2] ss:$0 sm:$0xff] }
   0x6   :  { %128 = vmatpush3.bf16.msra.mxu0 %v136_v9 }
  0x8c   :  { %v22_v2 = vpop.xlane.xlu0 %21 }
  0x8d   :  { %v24_v3 = vmul.f32 0.03125, %v22_v2 }
  0x8f   :  { %v25_v4 = vsub.f32 %v18_v0, %v24_v3 }
  0x91   :  { %v26_v5 = vmul.f32 %v25_v4, %v25_v4 }
  0x93   :  { %v27_v6 = vsel %vm19_vm0, %v26_v5, 0.0 }
  0x94   :  { %28 = vadd.xlane.f32.xlu0 %v27_v6 }
 0x11d   :  { %v29_v10 = vpop.xlane.xlu0 %28 }
 0x11e   :  { %v30_v11 = vmul.f32 0.03125, %v29_v10 }
 0x120   :  { %v31_v12 = vadd.f32 1e-05, %v30_v11 }
 0x122   :  { %137 = vrsqrt.f32 %v31_v12 }
 0x12f   :  { %v138_v13 = vpop.eup %137 }
 0x130   :  { %v33_v15 = vmul.f32 %v138_v13, %v25_v4 }
 0x132   :  { %v41_v17 = vmul.f32 %v117_v14, %v33_v15 }
 0x134   :  { %v49_v18 = vadd.f32 %v118_v16, %v41_v17 }
 0x136   :  { %v50_v19 = vpack.c.bf16 %v49_v18, %v49_v18 }
 0x138   :  { %130 = vmatmul.mubr.msk.bf16.vlgmr.msra.gmra.mxu0 %vm19_vm0, %v50_v19 }
 0x1f8   :  { %v104_v20 = vpop.f32.mrf.mxu0 }
 0x1f9   :  { %v110_v21 = vpack.c.bf16 %v104_v20, %v104_v20 }
 0x1fa   :  { %v131_v22 = vpop.f32.mrf.mxu0 }
 0x1fb   :  { %112 = vst.msk [vmem:[%s191_s4] sm:$0xf] %vm111_vm2, %v110_v21 }
 0x1fc   :  { %v107_v23 = vpop.f32.mrf.mxu0 }
 0x1fe   :  { %v132_v24 = vpop.f32.mrf.mxu0 }

// kernel: block_recurrent_forward.36
= control target key start
LH: loop header
LB: loop body
LE: loop exit
PB: predicated region body
PF: predicated region fallthrough
CT: control target
= control target key end

     0   :  { %s998_s12 = smov 0   ;;  %s1000_s13 = smov 0   ;;  %s1110_s0 = inlined_call_operand.vmem [shape: bf16[2,8,32], index: 0, kind: input, shape index: {}]   ;;  %s1111_s1 = inlined_call_operand.vmem [shape: bf16[1,8,32], index: 1, kind: input, shape index: {}]   ;;  %s1112_s2 = inlined_call_operand.vmem [shape: bf16[1,8,32], index: 2, kind: input, shape index: {}]   ;;  %s1113_s3 = inlined_call_operand.vmem [shape: bf16[2,8,32], index: 3, kind: output, shape index: {}]  }
   0x1   :  { %s1002_s14 = smov 0  }
   0x2 LB: > { %s25_s15 = sadd.s32 1, %s964_s13  ;;  %p815_p0 = scmp.ge.s32.totalorder %s968_s14, 1  ;;  %s968_s14 = sphi %s1002_s14, %s13_s14   ;;  %s964_s13 = sphi %s1000_s13, %s1115_s13   ;;  %s960_s12 = sphi %s998_s12, %s1114_s12  }
   0x3   : > { %p27_p1 = scmp.ge.s32.totalorder %s25_s15, 2  ;;  %p173_p2 = scmp.lt.s32.totalorder %s968_s14, 3 }
   0x5   : > { %s1117_s15 = smov (%p27_p1, %s25_s15), 0  ;;  %p174_p3 = pnand %p815_p0, %p173_p2 }
   0x6   : > { %p209_p4 = scmp.lt.s32.totalorder (!%p174_p3), %s960_s12, 1  ;;  %s972_s22 = smov (!%p174_p3), 120  }
   0x7   : > { %177 = sbr.rel (%p174_p3) target bundleno = 1104 (0x450), region = 32  ;;  %s973_s23 = smov (!%p174_p3), 112  }
   0x8   : > { %s974_s24 = smov (!%p174_p3), 104   ;;  %s975_s27 = smov (!%p174_p3), 8  }
   0x9   : > { %s976_s28 = smov (!%p174_p3), 16   ;;  %s977_s29 = smov (!%p174_p3), 24  }
   0xc   : > { %v233_v0 = vld [vmem:[%s1111_s1] sm:$0xf]  ;;  %vm235_vm0 = vcmask 64512   ;;  %v970_v1 = vmov 0.0   ;;  %vm971_vm1 = vmmov 0   ;;  %s1119_s12 = smov (!%p209_p4, %s960_s12), 1 }
   0xd   : > { %847 = vmatprep.subr.bf16.mxu0 %v970_v1  ;;  %v240_v2 = vsel %vm235_vm0, %v233_v0, 0  ;;  %849 = vmatprep.mubr.msk.bf16.mxu0 %vm971_vm1, %v970_v1  ;;  %s816_s18 = sshll.u32 %s1119_s12, 2  ;;  %v821_v5 = vcombine.low %v233_v0, %v233_v0  ;;  %v234_v12 = vld [vmem:[%s1112_s2] sm:$0xf]  ;;  %vm296_vm2 = vcmask 1043456   ;;  %vm697_vm3 = vcmask 130048  }
   0xe   : > { %848 = vmatpush3.bf16.xpose.msra.mxu0 %v240_v2  ;;  %853 = vmatprep.subr.bf16.mxu1 %v970_v1  ;;  %s215_s21 = scalar_lea.vmem %s1110_s0, %s816_s18  ;;  %v298_v13 = vsel %vm296_vm2, %v234_v12, 0  ;;  %v823_v45 = vcombine.low %v234_v12, %v234_v12  ;;  %vm699_vm4 = vcmask 195584   ;;  %s230_s5 = scalar_lea.vmem %s1113_s3, %s816_s18  ;;  %vm702_vm5 = vcmask 257024  }
   0xf   : > { %855 = vmatprep.mubr.msk.bf16.mxu1 %vm971_vm1, %v970_v1  ;;  %865 = vmatprep.subr.bf16.mxu0 %v970_v1  ;;  %v232_v3 = vld [vmem:[%s215_s21] sm:$0xf] }
  0x10   : > { %v820_v4 = vcombine.low %v232_v3, %v232_v3  ;;  %854 = vmatpush3.bf16.msra.mxu1 %v298_v13 }
  0x11   : > { %859 = vmatprep.subr.bf16.mxu1 %v970_v1 }
  0x12   : > { %345 = vrot.lane.b32.xlu1 %v820_v4, %s972_s22 }
  0x15   : > { %850 = vmatmul.mubr.msk.bf16.vlgmr.msra.gmra.mxu0 %vm235_vm0, %v232_v3 }
  0x16   : > { %867 = vmatprep.mubr.msk.bf16.mxu0 %vm971_vm1, %v970_v1  ;;  %464 = vrot.lane.b32.xlu1 %v821_v5, %s973_s23 }
  0x1a   : > { %462 = vrot.lane.b32.xlu1 %v820_v4, %s973_s23 }
  0x1e   : > { %575 = vrot.lane.b32.xlu1 %v821_v5, %s974_s24 }
  0x22   : > { %573 = vrot.lane.b32.xlu1 %v820_v4, %s974_s24 }
  0x84   : > { %v346_v19 = vpop.permute.xlu1 %345 }
  0x88   : > { %v465_v22 = vpop.permute.xlu1 %464 }
  0x89   : > { %v470_v23 = vsel %vm235_vm0, %v465_v22, 0 }
  0x8c   : > { %v463_v24 = vpop.permute.xlu1 %462 }
  0x90   : > { %v576_v25 = vpop.permute.xlu1 %575 }
  0x91   : > { %v581_v26 = vsel %vm235_vm0, %v576_v25, 0 }
  0x94   : > { %v574_v27 = vpop.permute.xlu1 %573 }
  0xd5   : > { %v276_v6 = vpop.f32.mrf.mxu0 }
  0xd6   : > { %v282_v7 = vmul.f32 0.35355338, %v276_v6 }
  0xd7   : > { %v851_v8 = vpop.f32.mrf.mxu0 }
  0xd8   : > { %v283_v9 = vsel %vm235_vm0, %v282_v7, -inf }
  0xd9   : > { %284 = vmax.xlane.f32.xlu0 %v283_v9  ;;  %v279_v10 = vpop.f32.mrf.mxu0 }
  0xdb   : > { %v852_v11 = vpop.f32.mrf.mxu0 }
  0xef   : > { %350 = vrot.lane.b32.xlu0 %v821_v5, %s972_s22 }
 0x162   : > { %v285_v14 = vpop.xlane.xlu0 %284 }
 0x163   : > { %v286_v15 = vsub.f32 %v282_v7, %v285_v14 }
 0x165   : > { %v287_v16 = vmul.f32 1.442695, %v286_v15 }
 0x166   : > { %v351_v17 = vpop.permute.xlu0 %350 }
 0x167   : > { %930 = vpow2.f32 %v287_v16  ;;  %v356_v20 = vsel %vm235_vm0, %v351_v17, 0 }
 0x174   : > { %v1050_v18 = vpop.eup %930 }
 0x175   : > { %v292_v21 = vpack.c.bf16 %v1050_v18, %v1050_v18  ;;  %v289_v12 = vsel %vm235_vm0, %v1050_v18, 0.0 }
 0x177   : > { %856 = vmatmul.mubr.msk.bf16.vlgmr.msra.gmra.mxu1 %vm235_vm0, %v292_v21 }
 0x178   : > { %860 = vmatpush3.bf16.xpose.msra.mxu1 %v356_v20  ;;  %861 = vmatprep.mubr.msk.bf16.mxu1 %vm971_vm1, %v970_v1 }
 0x179   : > { %871 = vmatprep.subr.bf16.mxu1 %v970_v1 }
 0x17f   : > { %862 = vmatmul.mubr.msk.bf16.vlgmr.msra.gmra.mxu1 %vm235_vm0, %v346_v19 }
 0x180   : > { %872 = vmatpush3.bf16.xpose.msra.mxu1 %v470_v23  ;;  %873 = vmatprep.mubr.msk.bf16.mxu1 %vm971_vm1, %v970_v1 }
 0x181   : > { %883 = vmatprep.subr.bf16.mxu1 %v970_v1 }
 0x187   : > { %874 = vmatmul.mubr.msk.bf16.vlgmr.msra.gmra.mxu1 %vm235_vm0, %v463_v24 }
 0x188   : > { %884 = vmatpush3.bf16.xpose.msra.mxu1 %v581_v26  ;;  %885 = vmatprep.mubr.msk.bf16.mxu1 %vm971_vm1, %v970_v1 }
 0x18f   : > { %886 = vmatmul.mubr.msk.bf16.vlgmr.msra.gmra.mxu1 %vm235_vm0, %v574_v27 }
 0x237   : > { %v1069_v28 = vpop.f32.mrf.mxu1 }
 0x239   : > { %v857_v29 = vpop.f32.mrf.mxu1 }
 0x23b   : > { %v337_v30 = vpop.f32.mrf.mxu1 }
 0x23d   : > { %v858_v31 = vpop.f32.mrf.mxu1 }
 0x23f   : > { %v392_v32 = vpop.f32.mrf.mxu1 }
 0x240   : > { %v398_v33 = vmul.f32 0.35355338, %v392_v32 }
 0x241   : > { %v863_v34 = vpop.f32.mrf.mxu1 }
 0x242   : > { %v399_v35 = vsel %vm235_vm0, %v398_v33, -inf }
 0x243   : > { %400 = vmax.xlane.f32.xlu1 %v399_v35  ;;  %v395_v36 = vpop.f32.mrf.mxu1 }
 0x245   : > { %v864_v37 = vpop.f32.mrf.mxu1 }
 0x247   : > { %v506_v38 = vpop.f32.mrf.mxu1 }
 0x248   : > { %v512_v39 = vmul.f32 0.35355338, %v506_v38 }
 0x249   : > { %v875_v40 = vpop.f32.mrf.mxu1 }
 0x24a   : > { %v513_v41 = vsel %vm235_vm0, %v512_v39, -inf }
 0x24b   : > { %514 = vmax.xlane.f32.xlu0 %v513_v41  ;;  %v509_v42 = vpop.f32.mrf.mxu1 }
 0x24d   : > { %v876_v43 = vpop.f32.mrf.mxu1 }
 0x24f   : > { %v617_v44 = vpop.f32.mrf.mxu1 }
 0x250   : > { %v623_v49 = vmul.f32 0.35355338, %v617_v44 }
 0x251   : > { %v887_v46 = vpop.f32.mrf.mxu1 }
 0x252   : > { %v624_v50 = vsel %vm235_vm0, %v623_v49, -inf }
 0x253   : > { %v620_v47 = vpop.f32.mrf.mxu1 }
 0x254   : > { %523 = vrot.lane.b32.xlu1 %v823_v45, %s973_s23 }
 0x255   : > { %v888_v48 = vpop.f32.mrf.mxu1 }
 0x261   : > { %412 = vrot.lane.b32.xlu0 %v823_v45, %s972_s22 }
 0x278   : > { %625 = vmax.xlane.f32.xlu1 %v624_v50 }
 0x289   : > { %634 = vrot.lane.b32.xlu1 %v823_v45, %s974_s24 }
 0x2cc   : > { %v401_v51 = vpop.xlane.xlu1 %400 }
 0x2cd   : > { %v402_v52 = vsub.f32 %v398_v33, %v401_v51 }
 0x2cf   : > { %v403_v53 = vmul.f32 1.442695, %v402_v52 }
 0x2d0   : > { %v524_v60 = vpop.permute.xlu1 %523 }
 0x2d1   : > { %932 = vpow2.f32 %v403_v53  ;;  %v529_v63 = vsel %vm296_vm2, %v524_v60, 0 }
 0x2d4   : > { %v515_v54 = vpop.xlane.xlu0 %514 }
 0x2d5   : > { %v516_v55 = vsub.f32 %v512_v39, %v515_v54 }
 0x2d7   : > { %v517_v56 = vmul.f32 1.442695, %v516_v55 }
 0x2d8   : > { %v413_v57 = vpop.permute.xlu0 %412 }
 0x2d9   : > { %934 = vpow2.f32 %v517_v56  ;;  %v418_v58 = vsel %vm296_vm2, %v413_v57, 0 }
 0x2da   : > { %866 = vmatpush3.bf16.msra.mxu0 %v418_v58 }
 0x2db   : > { %877 = vmatprep.subr.bf16.mxu0 %v970_v1 }
 0x2de   : > { %v933_v59 = vpop.eup %932 }
 0x2df   : > { %v405_v61 = vsel %vm235_vm0, %v933_v59, 0.0  ;;  %v408_v62 = vpack.c.bf16 %v933_v59, %v933_v59 }
 0x2e0   : > { %406 = vadd.xlane.f32.xlu0 %v405_v61 }
 0x2e1   : > { %868 = vmatmul.mubr.msk.bf16.vlgmr.msra.gmra.mxu0 %vm235_vm0, %v408_v62 }
 0x2e2   : > { %878 = vmatpush3.bf16.msra.mxu0 %v529_v63  ;;  %879 = vmatprep.mubr.msk.bf16.mxu0 %vm971_vm1, %v970_v1 }
 0x2e3   : > { %889 = vmatprep.subr.bf16.mxu0 %v970_v1 }
 0x2e6   : > { %v935_v0 = vpop.eup %934 }
 0x2e7   : > { %v519_v2 = vsel %vm235_vm0, %v935_v0, 0.0  ;;  %v522_v3 = vpack.c.bf16 %v935_v0, %v935_v0 }
 0x2e8   : > { %520 = vadd.xlane.f32.xlu1 %v519_v2 }
 0x2e9   : > { %880 = vmatmul.mubr.msk.bf16.vlgmr.msra.gmra.mxu0 %vm235_vm0, %v522_v3 }
 0x2ea   : > { %891 = vmatprep.mubr.msk.bf16.mxu0 %vm971_vm1, %v970_v1 }
 0x301   : > { %v626_v4 = vpop.xlane.xlu1 %625 }
 0x302   : > { %v627_v5 = vsub.f32 %v623_v49, %v626_v4 }
 0x304   : > { %v628_v6 = vmul.f32 1.442695, %v627_v5 }
 0x305   : > { %v635_v7 = vpop.permute.xlu1 %634 }
 0x306   : > { %936 = vpow2.f32 %v628_v6  ;;  %v640_v8 = vsel %vm296_vm2, %v635_v7, 0 }
 0x307   : > { %890 = vmatpush3.bf16.msra.mxu0 %v640_v8 }
 0x313   : > { %v937_v9 = vpop.eup %936 }
 0x314   : > { %v630_v10 = vsel %vm235_vm0, %v937_v9, 0.0  ;;  %v633_v11 = vpack.c.bf16 %v937_v9, %v937_v9 }
 0x315   : > { %631 = vadd.xlane.f32.xlu0 %v630_v10 }
 0x316   : > { %892 = vmatmul.mubr.msk.bf16.vlgmr.msra.gmra.mxu0 %vm235_vm0, %v633_v11 }
 0x319   : > { %290 = vadd.xlane.f32.xlu0 %v289_v12 }
 0x369   : > { %v407_v1 = vpop.xlane.xlu0 %406 }
 0x36a   : > { %938 = vrcp.f32 %v407_v1 }
 0x371   : > { %v521_v13 = vpop.xlane.xlu1 %520 }
 0x372   : > { %940 = vrcp.f32 %v521_v13 }
 0x377   : > { %v939_v14 = vpop.eup %938 }
 0x37f   : > { %v941_v21 = vpop.eup %940 }
 0x39e   : > { %v632_v26 = vpop.xlane.xlu0 %631 }
 0x39f   : > { %942 = vrcp.f32 %v632_v26 }
 0x3a1   : > { %v454_v15 = vpop.f32.mrf.mxu0 }
 0x3a2   : > { %v461_v16 = vmul.f32 %v939_v14, %v454_v15  ;;  %v291_v34 = vpop.xlane.xlu0 %290 }
 0x3a3   : > { %v869_v17 = vpop.f32.mrf.mxu0  ;;  %944 = vrcp.f32 %v291_v34 }
 0x3a4   : > { %685 = vrot.lane.b32.xlu1 %v461_v16, %s975_s27 }
 0x3a5   : > { %v457_v19 = vpop.f32.mrf.mxu0 }
 0x3a7   : > { %v870_v20 = vpop.f32.mrf.mxu0 }
 0x3a9   : > { %v565_v22 = vpop.f32.mrf.mxu0 }
 0x3aa   : > { %v572_v23 = vmul.f32 %v941_v21, %v565_v22 }
 0x3ab   : > { %v881_v24 = vpop.f32.mrf.mxu0 }
 0x3ac   : > { %689 = vrot.lane.b32.xlu0 %v572_v23, %s976_s28  ;;  %v943_v27 = vpop.eup %942 }
 0x3ad   : > { %v568_v18 = vpop.f32.mrf.mxu0 }
 0x3af   : > { %v882_v25 = vpop.f32.mrf.mxu0 }
 0x3b0   : > { %v945_v35 = vpop.eup %944 }
 0x3b1   : > { %v341_v37 = vmul.f32 %v945_v35, %v1069_v28 }
 0x3d6   : > { %v676_v29 = vpop.f32.mrf.mxu0 }
 0x3d7   : > { %v683_v30 = vmul.f32 %v943_v27, %v676_v29 }
 0x3d8   : > { %v893_v31 = vpop.f32.mrf.mxu0 }
 0x3d9   : > { %693 = vrot.lane.b32.xlu1 %v683_v30, %s977_s29 }
 0x3da   : > { %v679_v32 = vpop.f32.mrf.mxu0 }
 0x3dc   : > { %v894_v33 = vpop.f32.mrf.mxu0 }
 0x416   : > { %v686_v36 = vpop.permute.xlu1 %685 }
 0x417   : > { %v696_v39 = vsel %vm235_vm0, %v341_v37, %v686_v36 }
 0x41e   : > { %v690_v38 = vpop.permute.xlu0 %689 }
 0x41f   : > { %v698_v40 = vsel %vm697_vm3, %v696_v39, %v690_v38 }
 0x44b   : > { %v694_v41 = vpop.permute.xlu1 %693 }
 0x44c   : > { %v700_v42 = vsel %vm699_vm4, %v698_v40, %v694_v41 }
 0x44d   : > { %v701_v43 = vpack.c.bf16 %v700_v42, %v700_v42 }
 0x44f   : > { %703 = vst.msk [vmem:[%s230_s5] sm:$0xf] %vm702_vm5, %v701_v43 }
 0x450 PF: > { %s13_s14 = sadd.s32 1, %s968_s14   ;;  %s1114_s12 = smov %s964_s13 }
 0x451   : > { %p10_p5 = scmp.ge.s32.totalorder %s13_s14, 4   ;;  %s1115_s13 = smov %s1117_s15 }
 0x453   :  { %12 = sbr.rel (!%p10_p5) target bundleno = 2 (0x2), region = 68 }

// kernel: block_recurrent_forward.35
= control target key start
LH: loop header
LB: loop body
LE: loop exit
PB: predicated region body
PF: predicated region fallthrough
CT: control target
= control target key end

     0   :  { %vm19_vm0 = vcmask 261120   ;;  %v131_v0 = vmov 0.0   ;;  %vm132_vm1 = vmmov 0   ;;  %s181_s1 = inlined_call_operand.vmem [shape: bf16[32,32], index: 1, kind: input, shape index: {}]   ;;  %s182_s0 = inlined_call_operand.vmem [shape: bf16[16,32], index: 0, kind: input, shape index: {}]   ;;  %s183_s2 = inlined_call_operand.vmem [shape: f32[16,32], index: 2, kind: input, shape index: {}]   ;;  %s184_s3 = inlined_call_operand.vmem [shape: f32[16,32], index: 3, kind: output, shape index: {}]  }
   0x1   :  { %118 = vmatprep.subr.bf16.mxu0 %v131_v0  ;;  %v128_v1 = vld [vmem:[%s181_s1 + $0x8] sm:$0xff]   ;;  %122 = vmatprep.mubr.msk.bf16.mxu0 %vm132_vm1, %v131_v0  ;;  %20 = vst.msk [vmem:[#allocation2] sm:$0xff] %vm19_vm0, %v131_v0  ;;  %21 = vst.msk [vmem:[#allocation2 + $0x8] sm:$0xff] %vm19_vm0, %v131_v0  ;;  %v129_v2 = vld [vmem:[%s181_s1] sm:$0xff]  }
   0x2   :  { %119 = vmatpush3.bf16.msra.mxu0 %v128_v1  ;;  %v130_v3 = vld [vmem:[%s182_s0] sm:$0xff]   ;;  %v102_v15 = vld [vmem:[%s183_s2 + $0x8] sm:$0xff] }
   0x3   :  { %120 = vmatprep.subr.bf16.mxu0 %v131_v0  ;;  %v101_v12 = vld [vmem:[%s183_s2] sm:$0xff] }
   0x6   :  { %121 = vmatpush3.bf16.msra.mxu0 %v129_v2 }
   0x8   :  { %v22_v4 = vld [vmem:[#allocation2] sm:$0xff]  ;;  %v23_v8 = vld [vmem:[#allocation2 + $0x8] sm:$0xff] }
   0x9   :  { %123 = vmatmul.mubr.msk.bf16.vlgmr.msra.gmra.mxu0 %vm19_vm0, %v130_v3 }
  0xc9   :  { %v85_v5 = vpop.f32.mrf.mxu0 }
  0xca   :  { %v92_v6 = vadd.f32 %v85_v5, %v22_v4 }
  0xcb   :  { %v124_v7 = vpop.f32.mrf.mxu0 }
  0xcc   :  { %94 = vst.msk [vmem:[#allocation2] sm:$0xff] %vm19_vm0, %v92_v6 }
  0xcd   :  { %v88_v9 = vpop.f32.mrf.mxu0 }
  0xce   :  { %v93_v10 = vadd.f32 %v88_v9, %v23_v8 }
  0xcf   :  { %v125_v11 = vpop.f32.mrf.mxu0 }
  0xd0   :  { %95 = vst.msk [vmem:[#allocation2 + $0x8] sm:$0xff] %vm19_vm0, %v93_v10 }
  0xd3   :  { %v99_v13 = vld [vmem:[#allocation2] sm:$0xff] }
  0xd4   :  { %v103_v14 = vadd.f32 %v101_v12, %v99_v13 }
  0xd6   :  { %105 = vst.msk [vmem:[%s184_s3] sm:$0xff] %vm19_vm0, %v103_v14 }
  0xd7   :  { %v100_v16 = vld [vmem:[#allocation2 + $0x8] sm:$0xff] }
  0xd8   :  { %v104_v17 = vadd.f32 %v102_v15, %v100_v16 }
  0xda   :  { %106 = vst.msk [vmem:[%s184_s3 + $0x8] sm:$0xff] %vm19_vm0, %v104_v17 }

// kernel: block_recurrent_forward.38
= control target key start
LH: loop header
LB: loop body
LE: loop exit
PB: predicated region body
PF: predicated region fallthrough
CT: control target
= control target key end

     0   :  { %vm23_vm0 = vcmask 261120   ;;  %v270_v14 = vmov 0.0   ;;  %vm271_vm1 = vmmov 0   ;;  %vm215_vm2 = vcmask 691200   ;;  %s338_s0 = inlined_call_operand.vmem [shape: f32[16,32], index: 0, kind: input, shape index: {}]   ;;  %s339_s3 = inlined_call_operand.vmem [shape: bf16[32,85], index: 3, kind: input, shape index: {}]   ;;  %s340_s4 = inlined_call_operand.vmem [shape: bf16[32,85], index: 4, kind: input, shape index: {}]   ;;  %s341_s1 = inlined_call_operand.vmem [shape: f32[1,32], index: 1, kind: input, shape index: {}]   ;;  %s342_s2 = inlined_call_operand.vmem [shape: f32[1,32], index: 2, kind: input, shape index: {}]   ;;  %s343_s5 = inlined_call_operand.vmem [shape: bf16[16,85], index: 5, kind: output, shape index: {}]  }
   0x1   :  { %v21_v0 = vld [vmem:[%s338_s0] sm:$0xff]  ;;  %v22_v1 = vld [vmem:[%s338_s0 + $0x8] sm:$0xff]  ;;  %240 = vmatprep.subr.bf16.mxu0 %v270_v14  ;;  %248 = vmatprep.subr.bf16.mxu1 %v270_v14 }
   0x2   :  { %v24_v2 = vsel %vm23_vm0, %v21_v0, 0.0  ;;  %v27_v3 = vsel %vm23_vm0, %v22_v1, 0.0  ;;  %v258_v15 = vld [vmem:[%s339_s3 + $0x8] sm:$0xff]   ;;  %244 = vmatprep.mubr.msk.bf16.mxu0 %vm271_vm1, %v270_v14  ;;  %252 = vmatprep.mubr.msk.bf16.mxu1 %vm271_vm1, %v270_v14  ;;  %v260_v17 = vld [vmem:[%s339_s3] sm:$0xff]  }
   0x3   :  { %25 = vadd.xlane.f32.xlu0 %v24_v2  ;;  %v259_v16 = vld [vmem:[%s340_s4 + $0x8] sm:$0xff]   ;;  %241 = vmatpush3.bf16.msra.mxu0 %v258_v15  ;;  %v261_v18 = vld [vmem:[%s340_s4] sm:$0xff]  }
   0x4   :  { %249 = vmatpush3.bf16.msra.mxu1 %v259_v16  ;;  %242 = vmatprep.subr.bf16.mxu0 %v270_v14  ;;  %v222_v27 = vld [vmem:[%s341_s1] ss:$0 sm:$0xff] }
   0x5   :  { %250 = vmatprep.subr.bf16.mxu1 %v270_v14  ;;  %v223_v31 = vld [vmem:[%s342_s2] ss:$0 sm:$0xff] }
   0x7   :  { %28 = vadd.xlane.f32.xlu0 %v27_v3  ;;  %243 = vmatpush3.bf16.msra.mxu0 %v260_v17 }
   0x8   :  { %251 = vmatpush3.bf16.msra.mxu1 %v261_v18 }
  0x8c   :  { %v26_v4 = vpop.xlane.xlu0 %25 }
  0x8d   :  { %v31_v5 = vmul.f32 0.03125, %v26_v4 }
  0x8f   :  { %v33_v6 = vsub.f32 %v21_v0, %v31_v5 }
  0x90   :  { %v29_v7 = vpop.xlane.xlu0 %28 }
  0x91   :  { %v32_v8 = vmul.f32 0.03125, %v29_v7  ;;  %v35_v9 = vmul.f32 %v33_v6, %v33_v6 }
  0x93   :  { %v34_v10 = vsub.f32 %v22_v1, %v32_v8  ;;  %v37_v11 = vsel %vm23_vm0, %v35_v9, 0.0 }
  0x94   :  { %38 = vadd.xlane.f32.xlu1 %v37_v11 }
  0x95   :  { %v36_v12 = vmul.f32 %v34_v10, %v34_v10 }
  0x97   :  { %v40_v13 = vsel %vm23_vm0, %v36_v12, 0.0 }
  0x98   :  { %41 = vadd.xlane.f32.xlu1 %v40_v13 }
 0x11d   :  { %v39_v19 = vpop.xlane.xlu1 %38 }
 0x11e   :  { %v43_v20 = vmul.f32 0.03125, %v39_v19 }
 0x120   :  { %v45_v21 = vadd.f32 1e-05, %v43_v20 }
 0x121   :  { %v42_v22 = vpop.xlane.xlu1 %41 }
 0x122   :  { %262 = vrsqrt.f32 %v45_v21  ;;  %v44_v23 = vmul.f32 0.03125, %v42_v22 }
 0x124   :  { %v46_v24 = vadd.f32 1e-05, %v44_v23 }
 0x126   :  { %264 = vrsqrt.f32 %v46_v24 }
 0x12f   :  { %v263_v25 = vpop.eup %262 }
 0x130   :  { %v49_v26 = vmul.f32 %v263_v25, %v33_v6 }
 0x132   :  { %v58_v30 = vmul.f32 %v222_v27, %v49_v26 }
 0x133   :  { %v265_v28 = vpop.eup %264 }
 0x134   :  { %v50_v29 = vmul.f32 %v265_v28, %v34_v10  ;;  %v67_v33 = vadd.f32 %v223_v31, %v58_v30 }
 0x136   :  { %v59_v32 = vmul.f32 %v222_v27, %v50_v29 }
 0x138   :  { %v68_v34 = vadd.f32 %v223_v31, %v59_v32 }
 0x13a   :  { %v69_v35 = vpack.c.bf16 %v68_v34, %v67_v33 }
 0x13c   :  { %245 = vmatmul.mubr.msk.bf16.vlgmr.msra.gmra.mxu0 %vm23_vm0, %v69_v35  ;;  %253 = vmatmul.mubr.msk.bf16.vlgmr.msra.gmra.mxu1 %vm23_vm0, %v69_v35 }
 0x1fc   :  { %v123_v36 = vpop.f32.mrf.mxu0  ;;  %v180_v37 = vpop.f32.mrf.mxu1 }
 0x1fd   :  { %v187_v38 = vmul.f32 %v180_v37, %v180_v37 }
 0x1fe   :  { %v246_v39 = vpop.f32.mrf.mxu0  ;;  %v254_v40 = vpop.f32.mrf.mxu1 }
 0x1ff   :  { %v189_v41 = vmul.f32 %v187_v38, %v180_v37 }
 0x200   :  { %v126_v42 = vpop.f32.mrf.mxu0  ;;  %v183_v43 = vpop.f32.mrf.mxu1 }
 0x201   :  { %v191_v44 = vmul.f32 0.044715, %v189_v41  ;;  %v188_v45 = vmul.f32 %v183_v43, %v183_v43 }
 0x202   :  { %v247_v46 = vpop.f32.mrf.mxu0  ;;  %v255_v47 = vpop.f32.mrf.mxu1 }
 0x203   :  { %v193_v48 = vadd.f32 %v191_v44, %v180_v37  ;;  %v190_v49 = vmul.f32 %v188_v45, %v183_v43 }
 0x205   :  { %v195_v50 = vmul.f32 0.7978846, %v193_v48  ;;  %v192_v51 = vmul.f32 0.044715, %v190_v49 }
 0x207   :  { %266 = vtanh.f32 %v195_v50  ;;  %v194_v52 = vadd.f32 %v192_v51, %v183_v43 }
 0x209   :  { %v196_v53 = vmul.f32 0.7978846, %v194_v52 }
 0x20b   :  { %268 = vtanh.f32 %v196_v53 }
 0x214   :  { %v267_v54 = vpop.eup %266 }
 0x215   :  { %v199_v55 = vadd.f32 1.0, %v267_v54 }
 0x217   :  { %v201_v56 = vmul.f32 0.5, %v199_v55 }
 0x218   :  { %v269_v57 = vpop.eup %268 }
 0x219   :  { %v203_v58 = vmul.f32 %v201_v56, %v180_v37  ;;  %v200_v59 = vadd.f32 1.0, %v269_v57 }
 0x21b   :  { %v205_v60 = vmul.f32 %v203_v58, %v123_v36  ;;  %v202_v61 = vmul.f32 0.5, %v200_v59 }
 0x21d   :  { %v232_v62 = vpack.c.bf16 %v205_v60, %v205_v60  ;;  %v204_v63 = vmul.f32 %v202_v61, %v183_v43 }
 0x21f   :  { %216 = vst.msk [vmem:[%s343_s5] sm:$0xf] %vm215_vm2, %v232_v62  ;;  %v206_v0 = vmul.f32 %v204_v63, %v126_v42 }
 0x221   :  { %v233_v1 = vpack.c.bf16 %v206_v0, %v206_v0 }
 0x223   :  { %217 = vst.msk [vmem:[%s343_s5 + $0x4] sm:$0xf] %vm215_vm2, %v233_v1 }

// kernel: block_recurrent_forward.34
= control target key start
LH: loop header
LB: loop body
LE: loop exit
PB: predicated region body
PF: predicated region fallthrough
CT: control target
= control target key end

     0   :  { %s2032_s30 = smov 0   ;;  %s2034_s10 = smov 0   ;;  %s2381_s0 = inlined_call_operand.vmem [shape: bf16[2,8,32], index: 0, kind: input, shape index: {}]   ;;  %s2382_s1 = inlined_call_operand.vmem [shape: bf16[2,8,32], index: 1, kind: input, shape index: {}]   ;;  %s2383_s2 = inlined_call_operand.vmem [shape: bf16[2,8,32], index: 2, kind: input, shape index: {}]   ;;  %s2384_s3 = inlined_call_operand.vmem [shape: f32[8,8], index: 3, kind: input, shape index: {}]   ;;  %s2385_s4 = inlined_call_operand.vmem [shape: f32[8,8], index: 4, kind: input, shape index: {}]   ;;  %s2386_s5 = inlined_call_operand.vmem [shape: bf16[2,8,32], index: 5, kind: input, shape index: {}]   ;;  %s2387_s6 = inlined_call_operand.vmem [shape: bf16[2,8,32], index: 6, kind: input, shape index: {}]   ;;  %s2388_s7 = inlined_call_operand.vmem [shape: f32[8,8], index: 7, kind: input, shape index: {}]   ;;  %s2389_s8 = inlined_call_operand.vmem [shape: f32[8,8], index: 8, kind: input, shape index: {}]   ;;  %s2390_s9 = inlined_call_operand.vmem [shape: bf16[2,8,32], index: 9, kind: output, shape index: {}]  }
   0x1   :  { %s2036_s11 = smov 0  }
   0x2 LB: > { %s31_s12 = sadd.s32 1, %s1962_s10  ;;  %p1725_p0 = scmp.ge.s32.totalorder %s1966_s11, 1  ;;  %s1966_s11 = sphi %s2036_s11, %s19_s11   ;;  %s1962_s10 = sphi %s2034_s10, %s2392_s10   ;;  %s1958_s30 = sphi %s2032_s30, %s2391_s30  }
   0x3   : > { %p33_p1 = scmp.ge.s32.totalorder %s31_s12, 2  ;;  %p361_p2 = scmp.lt.s32.totalorder %s1966_s11, 3 }
   0x5   : > { %s2394_s12 = smov (%p33_p1, %s31_s12), 0  ;;  %p362_p3 = pnand %p1725_p0, %p361_p2 }
   0x6   : > { %p429_p4 = scmp.lt.s32.totalorder (!%p362_p3), %s1958_s30, 1  ;;  %s1969_s23 = smov (!%p362_p3), 124  }
   0x7   : > { %365 = sbr.rel (%p362_p3) target bundleno = 1931 (0x78b), region = 56  ;;  %s1971_s24 = smov (!%p362_p3), 4  }
   0x8   : > { %s1972_s25 = smov (!%p362_p3), 116   ;;  %s1973_s28 = smov (!%p362_p3), 8  }
   0x9   : > { %s1975_s18 = smov (!%p362_p3), 120   ;;  %s1976_s26 = smov (!%p362_p3), 108  }
   0xa   : > { %s1977_s27 = smov (!%p362_p3), 16   ;;  %s1979_s29 = smov (!%p362_p3), 100  }
   0xb   : > { %s1981_s14 = smov (!%p362_p3), 104  }
   0xc   : > { %s2396_s30 = smov (!%p429_p4, %s1958_s30), 1  ;;  %v1968_v0 = vmov 0.0   ;;  %vm1970_vm0 = vmmov 0   ;;  %v2103_v10 = vld [vmem:[%s2384_s3] sm:$0xff]  ;;  %vm495_vm1 = vcmask 31744   ;;  %vm516_vm2 = vcmask 64512  }
   0xd   : > { %s2050_s13 = sshll.u32 %s2396_s30, 2  ;;  %1784 = vmatprep.subr.bf16.mxu0 %v1968_v0  ;;  %1790 = vmatprep.subr.bf16.mxu1 %v1968_v0  ;;  %v2110_v11 = vld [vmem:[%s2388_s7] sm:$0xff]  ;;  %v472_v49 = vlaneseq  ;;  %v1974_v54 = vmov -1e+30   ;;  %vm651_vm4 = vcmask 1043456   ;;  %s1980_s30 = smov 24  }
   0xe   : > { %s456_s16 = scalar_lea.vmem %s2386_s5, %s2050_s13  ;;  %s442_s19 = scalar_lea.vmem %s2382_s1, %s2050_s13  ;;  %1786 = vmatprep.mubr.msk.bf16.mxu0 %vm1970_vm0, %v1968_v0  ;;  %1792 = vmatprep.mubr.msk.bf16.mxu1 %vm1970_vm0, %v1968_v0  ;;  %v2117_v14 = vld [vmem:[%s2389_s8] sm:$0xff]  ;;  %vm1580_vm5 = vcmask 130048   ;;  %vm1582_vm6 = vcmask 195584   ;;  %vm1585_vm7 = vcmask 257024  }
   0xf   : > { %v565_v1 = vld [vmem:[%s456_s16] sm:$0xf]  ;;  %s435_s22 = scalar_lea.vmem %s2381_s0, %s2050_s13  ;;  %v473_v50 = vshrl.u32 %v472_v49, 7  ;;  %v475_v51 = vand.u32 127, %v472_v49  ;;  %s463_s21 = scalar_lea.vmem %s2387_s6, %s2050_s13 }
  0x10   : > { %v483_v2 = vld [vmem:[%s442_s19] sm:$0xf]  ;;  %v2066_v3 = vunpack.c.l.bf16 %v565_v1  ;;  %s470_s16 = scalar_lea.vmem %s2390_s9, %s2050_s13 }
  0x11   : > { %v2068_v4 = vunpack.c.l.bf16 %v483_v2  ;;  %v482_v5 = vld [vmem:[%s435_s22] sm:$0xf]  ;;  %vm476_vm3 = vcmp.le.s32.totalorder %v475_v51, %v473_v50 }
  0x12   : > { %v2071_v6 = vsub.f32 0.0, %v2066_v3  ;;  %v2078_v8 = vunpack.c.l.bf16 %v482_v5  ;;  %v2122_v15 = vld [vmem:[%s2385_s4] sm:$0xff]  ;;  %v578_v19 = vmul.f32 %v2066_v3, %v2110_v11  ;;  %v2155_v55 = vsel %vm476_vm3, 0.0, %v1974_v54 }
  0x13   : > { %v2074_v7 = vsub.f32 0.0, %v2068_v4  ;;  %v512_v18 = vmul.f32 %v2068_v4, %v2103_v10 }
  0x14   : > { %570 = vrot.lane.b32.xlu1 %v2071_v6, %s1969_s23  ;;  %v2087_v9 = vsub.f32 0.0, %v2078_v8  ;;  %v497_v25 = vmul.f32 %v2078_v8, %v2103_v10 }
  0x15   : > { %504 = vrot.lane.b32.xlu0 %v2074_v7, %s1969_s23 }
  0x18   : > { %574 = vrot.lane.b32.xlu1 %v2066_v3, %s1971_s24 }
  0x19   : > { %508 = vrot.lane.b32.xlu0 %v2068_v4, %s1971_s24 }
  0x1c   : > { %492 = vrot.lane.b32.xlu1 %v2078_v8, %s1971_s24  ;;  %s449_s24 = scalar_lea.vmem %s2383_s2, %s2050_s13 }
  0x1d   : > { %488 = vrot.lane.b32.xlu0 %v2087_v9, %s1969_s23 }
  0x20   : > { %765 = vrot.lane.b32.xlu1 %v2068_v4, %s1969_s23 }
  0x21   : > { %762 = vrot.lane.b32.xlu0 %v2074_v7, %s1972_s25 }
  0x24   : > { %834 = vrot.lane.b32.xlu1 %v2066_v3, %s1969_s23 }
  0x25   : > { %831 = vrot.lane.b32.xlu0 %v2071_v6, %s1972_s25 }
  0x28   : > { %746 = vrot.lane.b32.xlu1 %v2078_v8, %s1969_s23 }
  0x29   : > { %743 = vrot.lane.b32.xlu0 %v2087_v9, %s1972_s25 }
  0x2d   : > { %751 = vrot.lane.b32.xlu0 %v2103_v10, %s1973_s28 }
  0x31   : > { %839 = vrot.lane.b32.xlu0 %v2110_v11, %s1973_s28 }
  0x86   : > { %v571_v12 = vpop.permute.xlu1 %570 }
  0x87   : > { %v505_v13 = vpop.permute.xlu0 %504 }
  0x8a   : > { %v575_v16 = vpop.permute.xlu1 %574 }
  0x8b   : > { %v509_v17 = vpop.permute.xlu0 %508  ;;  %v577_v20 = vsel %vm495_vm1, %v571_v12, %v575_v16 }
  0x8c   : > { %v511_v21 = vsel %vm495_vm1, %v505_v13, %v509_v17  ;;  %v579_v22 = vmul.f32 %v577_v20, %v2117_v14 }
  0x8d   : > { %v513_v23 = vmul.f32 %v511_v21, %v2122_v15 }
  0x8e   : > { %v493_v24 = vpop.permute.xlu1 %492  ;;  %v580_v28 = vadd.f32 %v579_v22, %v578_v19 }
  0x8f   : > { %v489_v26 = vpop.permute.xlu0 %488  ;;  %v514_v27 = vadd.f32 %v513_v23, %v512_v18 }
  0x90   : > { %v496_v29 = vsel %vm495_vm1, %v489_v26, %v493_v24  ;;  %v581_v32 = vpack.c.bf16 %v580_v28, %v580_v28  ;;  %v2172_v28 = vld [vmem:[%s463_s21] sm:$0xf] }
  0x91   : > { %v498_v30 = vmul.f32 %v496_v29, %v2122_v15  ;;  %v515_v31 = vpack.c.bf16 %v514_v27, %v514_v27  ;;  %v484_v29 = vld [vmem:[%s449_s24] sm:$0xf] }
  0x92   : > { %v583_v35 = vsel %vm516_vm2, %v581_v32, 0  ;;  %v766_v36 = vpop.permute.xlu1 %765 }
  0x93   : > { %v499_v33 = vadd.f32 %v498_v30, %v497_v25  ;;  %v521_v34 = vsel %vm516_vm2, %v515_v31, 0  ;;  %v763_v37 = vpop.permute.xlu0 %762  ;;  %1791 = vmatpush3.bf16.xpose.msra.mxu1 %v583_v35  ;;  %v653_v30 = vsel %vm651_vm4, %v2172_v28, 0  ;;  %v699_v31 = vsel %vm651_vm4, %v484_v29, 0 }
  0x94   : > { %1785 = vmatpush3.bf16.xpose.msra.mxu0 %v521_v34  ;;  %v768_v38 = vsel %vm495_vm1, %v763_v37, %v766_v36  ;;  %1802 = vmatprep.subr.bf16.mxu1 %v1968_v0 }
  0x95   : > { %v770_v39 = vmul.f32 %v768_v38, %v2122_v15  ;;  %1796 = vmatprep.subr.bf16.mxu0 %v1968_v0  ;;  %v500_v40 = vpack.c.bf16 %v499_v33, %v499_v33 }
  0x96   : > { %v835_v41 = vpop.permute.xlu1 %834 }
  0x97   : > { %772 = vrot.lane.b32.xlu1 %v770_v39, %s1973_s28  ;;  %v832_v42 = vpop.permute.xlu0 %831 }
  0x98   : > { %v837_v43 = vsel %vm495_vm1, %v832_v42, %v835_v41 }
  0x99   : > { %v843_v44 = vmul.f32 %v837_v43, %v2117_v14 }
  0x9a   : > { %1793 = vmatmul.mubr.msk.bf16.vlgmr.msra.gmra.mxu1 %vm516_vm2, %v500_v40  ;;  %v747_v45 = vpop.permute.xlu1 %746 }
  0x9b   : > { %1787 = vmatmul.mubr.msk.bf16.vlgmr.msra.gmra.mxu0 %vm516_vm2, %v500_v40  ;;  %v744_v46 = vpop.permute.xlu0 %743  ;;  %845 = vrot.lane.b32.xlu1 %v843_v44, %s1973_s28 }
  0x9c   : > { %v749_v47 = vsel %vm495_vm1, %v744_v46, %v747_v45  ;;  %1798 = vmatprep.mubr.msk.bf16.mxu0 %vm1970_vm0, %v1968_v0  ;;  %1804 = vmatprep.mubr.msk.bf16.mxu1 %vm1970_vm0, %v1968_v0 }
  0x9d   : > { %v755_v48 = vmul.f32 %v749_v47, %v2122_v15  ;;  %1797 = vmatpush3.bf16.msra.mxu0 %v653_v30  ;;  %1803 = vmatpush3.bf16.msra.mxu1 %v699_v31 }
  0x9e   : > { %1808 = vmatprep.subr.bf16.mxu0 %v1968_v0  ;;  %1814 = vmatprep.subr.bf16.mxu1 %v1968_v0 }
  0x9f   : > { %757 = vrot.lane.b32.xlu0 %v755_v48, %s1973_s28  ;;  %v752_v58 = vpop.permute.xlu0 %751 }
  0xa0   : > { %v769_v19 = vmul.f32 %v752_v58, %v2068_v4  ;;  %v754_v20 = vmul.f32 %v752_v58, %v2078_v8 }
  0xa3   : > { %v840_v16 = vpop.permute.xlu0 %839 }
  0xa4   : > { %v842_v17 = vmul.f32 %v840_v16, %v2066_v3 }
 0x109   : > { %v773_v5 = vpop.permute.xlu1 %772 }
 0x10a   : > { %v775_v23 = vadd.f32 %v773_v5, %v769_v19 }
 0x10c   : > { %v776_v26 = vpack.c.bf16 %v775_v23, %v775_v23 }
 0x10d   : > { %v846_v18 = vpop.permute.xlu1 %845 }
 0x10e   : > { %v848_v21 = vadd.f32 %v846_v18, %v842_v17 }
 0x110   : > { %v849_v24 = vpack.c.bf16 %v848_v21, %v848_v21 }
 0x111   : > { %v758_v22 = vpop.permute.xlu0 %757 }
 0x112   : > { %v760_v25 = vadd.f32 %v758_v22, %v754_v20 }
 0x114   : > { %v761_v27 = vpack.c.bf16 %v760_v25, %v760_v25 }
 0x15a   : > { %v619_v53 = vpop.f32.mrf.mxu1 }
 0x15b   : > { %v557_v52 = vpop.f32.mrf.mxu0  ;;  %v625_v57 = vmul.f32 0.35355338, %v619_v53 }
 0x15c   : > { %v563_v56 = vmul.f32 0.35355338, %v557_v52  ;;  %v1794_v60 = vpop.f32.mrf.mxu1 }
 0x15d   : > { %v1788_v59 = vpop.f32.mrf.mxu0  ;;  %v629_v61 = vsel %vm516_vm2, %v625_v57, -inf }
 0x15e   : > { %v564_v62 = vadd.f32 %v563_v56, %v2155_v55  ;;  %v622_v1 = vpop.f32.mrf.mxu1  ;;  %630 = vmax.xlane.f32.xlu0 %v629_v61  ;;  %v2216_v61 = vcombine.low %v484_v29, %v484_v29 }
 0x15f   : > { %v560_v63 = vpop.f32.mrf.mxu0 }
 0x160   : > { %v626_v2 = vsel %vm516_vm2, %v564_v62, -inf  ;;  %v1795_v13 = vpop.f32.mrf.mxu1 }
 0x161   : > { %v1789_v12 = vpop.f32.mrf.mxu0  ;;  %627 = vmax.xlane.f32.xlu1 %v626_v2 }
 0x172   : > { %851 = vrot.lane.b32.xlu1 %v849_v24, %s1975_s18 }
 0x174   : > { %781 = vrot.lane.b32.xlu0 %v776_v26, %s1975_s18 }
 0x176   : > { %778 = vrot.lane.b32.xlu1 %v761_v27, %s1975_s18 }
 0x178   : > { %1041 = vrot.lane.b32.xlu0 %v2074_v7, %s1976_s26 }
 0x17a   : > { %1044 = vrot.lane.b32.xlu1 %v2068_v4, %s1972_s25 }
 0x17c   : > { %1110 = vrot.lane.b32.xlu0 %v2071_v6, %s1976_s26 }
 0x17e   : > { %1113 = vrot.lane.b32.xlu1 %v2066_v3, %s1972_s25 }
 0x180   : > { %1023 = vrot.lane.b32.xlu0 %v2087_v9, %s1976_s26 }
 0x182   : > { %1026 = vrot.lane.b32.xlu1 %v2078_v8, %s1972_s25  ;;  %s1978_s25 = smov 112  }
 0x184   : > { %1030 = vrot.lane.b32.xlu0 %v2103_v10, %s1977_s27 }
 0x188   : > { %1117 = vrot.lane.b32.xlu0 %v2110_v11, %s1977_s27 }
 0x1e7   : > { %v631_v32 = vpop.xlane.xlu0 %630 }
 0x1ea   : > { %v628_v33 = vpop.xlane.xlu1 %627 }
 0x1eb   : > { %v632_v34 = vmax.f32 %v628_v33, %v631_v32  ;;  %v782_v41 = vpop.permute.xlu0 %781 }
 0x1ec   : > { %v787_v58 = vsel %vm516_vm2, %v782_v41, 0 }
 0x1ed   : > { %v633_v35 = vsub.f32 %v564_v62, %v632_v34  ;;  %v636_v36 = vsub.f32 %v625_v57, %v632_v34 }
 0x1ee   : > { %v852_v37 = vpop.permute.xlu1 %851 }
 0x1ef   : > { %v634_v38 = vmul.f32 1.442695, %v633_v35  ;;  %v637_v39 = vmul.f32 1.442695, %v636_v36  ;;  %v1042_v43 = vpop.permute.xlu0 %1041  ;;  %v854_v54 = vsel %vm516_vm2, %v852_v37, 0 }
 0x1f1   : > { %1920 = vpow2.f32 %v634_v38 }
 0x1f2   : > { %1922 = vpow2.f32 %v637_v39  ;;  %v779_v40 = vpop.permute.xlu1 %778 }
 0x1f3   : > { %v1111_v47 = vpop.permute.xlu0 %1110 }
 0x1f6   : > { %v1045_v42 = vpop.permute.xlu1 %1044 }
 0x1f7   : > { %v1047_v44 = vsel %vm495_vm1, %v1042_v43, %v1045_v42  ;;  %v1024_v52 = vpop.permute.xlu0 %1023 }
 0x1f8   : > { %v1049_v45 = vmul.f32 %v1047_v44, %v2122_v15 }
 0x1fa   : > { %v1114_v46 = vpop.permute.xlu1 %1113  ;;  %1051 = vrot.lane.b32.xlu1 %v1049_v45, %s1977_s27  ;;  %v2246_v45 = vcombine.low %v2172_v28, %v2172_v28 }
 0x1fb   : > { %v1116_v48 = vsel %vm495_vm1, %v1111_v47, %v1114_v46  ;;  %v1031_v33 = vpop.permute.xlu0 %1030 }
 0x1fc   : > { %v1121_v49 = vmul.f32 %v1116_v48, %v2117_v14  ;;  %v1048_v38 = vmul.f32 %v1031_v33, %v2068_v4  ;;  %v1033_v39 = vmul.f32 %v1031_v33, %v2078_v8 }
 0x1fe   : > { %v2202_v50 = vpop.eup %1920  ;;  %v1027_v51 = vpop.permute.xlu1 %1026  ;;  %1123 = vrot.lane.b32.xlu1 %v1121_v49, %s1977_s27 }
 0x1ff   : > { %v2205_v53 = vpop.eup %1922  ;;  %v646_v56 = vpack.c.bf16 %v2202_v50, %v2202_v50  ;;  %v1029_v57 = vsel %vm495_vm1, %v1024_v52, %v1027_v51  ;;  %v1118_v37 = vpop.permute.xlu0 %1117 }
 0x200   : > { %v647_v59 = vpack.c.bf16 %v2205_v53, %v2205_v53  ;;  %v1034_v60 = vmul.f32 %v1029_v57, %v2122_v15  ;;  %v1120_v42 = vmul.f32 %v1118_v37, %v2066_v3 }
 0x201   : > { %1805 = vmatmul.mubr.msk.bf16.vlgmr.msra.gmra.mxu1 %vm516_vm2, %v646_v56 }
 0x202   : > { %1799 = vmatmul.mubr.msk.bf16.vlgmr.msra.gmra.mxu0 %vm516_vm2, %v647_v59  ;;  %1815 = vmatpush3.bf16.xpose.msra.mxu1 %v854_v54 }
 0x203   : > { %1809 = vmatpush3.bf16.xpose.msra.mxu0 %v787_v58  ;;  %1810 = vmatprep.mubr.msk.bf16.mxu0 %vm1970_vm0, %v1968_v0 }
 0x204   : > { %1816 = vmatprep.mubr.msk.bf16.mxu1 %vm1970_vm0, %v1968_v0  ;;  %1036 = vrot.lane.b32.xlu0 %v1034_v60, %s1977_s27 }
 0x205   : > { %973 = vrot.lane.b32.xlu1 %v2216_v61, %s1975_s18  ;;  %1826 = vmatprep.subr.bf16.mxu1 %v1968_v0 }
 0x206   : > { %1820 = vmatprep.subr.bf16.mxu0 %v1968_v0 }
 0x209   : > { %1817 = vmatmul.mubr.msk.bf16.vlgmr.msra.gmra.mxu1 %vm516_vm2, %v779_v40 }
 0x20a   : > { %1811 = vmatmul.mubr.msk.bf16.vlgmr.msra.gmra.mxu0 %vm516_vm2, %v779_v40  ;;  %1828 = vmatprep.mubr.msk.bf16.mxu1 %vm1970_vm0, %v1968_v0 }
 0x20b   : > { %1822 = vmatprep.mubr.msk.bf16.mxu0 %vm1970_vm0, %v1968_v0 }
 0x26c   : > { %v1052_v62 = vpop.permute.xlu1 %1051 }
 0x26d   : > { %v1054_v40 = vadd.f32 %v1052_v62, %v1048_v38 }
 0x26f   : > { %v1055_v43 = vpack.c.bf16 %v1054_v40, %v1054_v40 }
 0x270   : > { %v1124_v63 = vpop.permute.xlu1 %1123 }
 0x271   : > { %v1126_v46 = vadd.f32 %v1124_v63, %v1120_v42 }
 0x273   : > { %v1127_v48 = vpack.c.bf16 %v1126_v46, %v1126_v46 }
 0x276   : > { %v1037_v41 = vpop.permute.xlu0 %1036 }
 0x277   : > { %v974_v1 = vpop.permute.xlu1 %973  ;;  %v1039_v44 = vadd.f32 %v1037_v41, %v1033_v39 }
 0x278   : > { %v979_v2 = vsel %vm651_vm4, %v974_v1, 0 }
 0x279   : > { %1827 = vmatpush3.bf16.msra.mxu1 %v979_v2  ;;  %v1040_v47 = vpack.c.bf16 %v1039_v44, %v1039_v44 }
 0x27a   : > { %1838 = vmatprep.subr.bf16.mxu1 %v1968_v0 }
 0x2c1   : > { %v735_v5 = vpop.f32.mrf.mxu1 }
 0x2c2   : > { %v689_v12 = vpop.f32.mrf.mxu0 }
 0x2c3   : > { %v2236_v13 = vadd.f32 %v735_v5, %v689_v12  ;;  %v1806_v16 = vpop.f32.mrf.mxu1 }
 0x2c4   : > { %v1800_v17 = vpop.f32.mrf.mxu0 }
 0x2c5   : > { %v738_v18 = vpop.f32.mrf.mxu1 }
 0x2c6   : > { %v692_v19 = vpop.f32.mrf.mxu0 }
 0x2c7   : > { %v1807_v20 = vpop.f32.mrf.mxu1 }
 0x2c8   : > { %v1801_v21 = vpop.f32.mrf.mxu0 }
 0x2c9   : > { %v890_v22 = vpop.f32.mrf.mxu1 }
 0x2ca   : > { %v823_v23 = vpop.f32.mrf.mxu0  ;;  %v896_v24 = vmul.f32 0.35355338, %v890_v22 }
 0x2cb   : > { %v829_v25 = vmul.f32 0.35355338, %v823_v23  ;;  %v1818_v26 = vpop.f32.mrf.mxu1 }
 0x2cc   : > { %v1812_v27 = vpop.f32.mrf.mxu0  ;;  %v900_v29 = vsel %vm516_vm2, %v896_v24, -inf }
 0x2cd   : > { %v893_v30 = vpop.f32.mrf.mxu1  ;;  %901 = vmax.xlane.f32.xlu0 %v900_v29  ;;  %v830_v31 = vadd.f32 %v829_v25, %v2155_v55 }
 0x2ce   : > { %v826_v32 = vpop.f32.mrf.mxu0 }
 0x2cf   : > { %v1819_v34 = vpop.f32.mrf.mxu1  ;;  %v897_v35 = vsel %vm516_vm2, %v830_v31, -inf }
 0x2d0   : > { %v1813_v36 = vpop.f32.mrf.mxu0  ;;  %898 = vmax.xlane.f32.xlu1 %v897_v35 }
 0x2e1   : > { %1060 = vrot.lane.b32.xlu1 %v1055_v43, %s1978_s25 }
 0x2e3   : > { %922 = vrot.lane.b32.xlu0 %v2246_v45, %s1975_s18 }
 0x2e5   : > { %1057 = vrot.lane.b32.xlu1 %v1040_v47, %s1978_s25 }
 0x2e7   : > { %1129 = vrot.lane.b32.xlu0 %v1127_v48, %s1978_s25 }
 0x2e9   : > { %1316 = vrot.lane.b32.xlu1 %v2068_v4, %s1976_s26 }
 0x2eb   : > { %1313 = vrot.lane.b32.xlu0 %v2074_v7, %s1979_s29 }
 0x2ed   : > { %1385 = vrot.lane.b32.xlu1 %v2066_v3, %s1976_s26 }
 0x2ef   : > { %1382 = vrot.lane.b32.xlu0 %v2071_v6, %s1979_s29 }
 0x2f1   : > { %1298 = vrot.lane.b32.xlu1 %v2078_v8, %s1976_s26 }
 0x2f3   : > { %1295 = vrot.lane.b32.xlu0 %v2087_v9, %s1979_s29 }
 0x2f7   : > { %1302 = vrot.lane.b32.xlu0 %v2103_v10, %s1980_s30 }
 0x2fb   : > { %1389 = vrot.lane.b32.xlu0 %v2110_v11, %s1980_s30 }
 0x356   : > { %v902_v28 = vpop.xlane.xlu0 %901 }
 0x359   : > { %v899_v49 = vpop.xlane.xlu1 %898 }
 0x35a   : > { %v903_v51 = vmax.f32 %v899_v49, %v902_v28  ;;  %v923_v52 = vpop.permute.xlu0 %922 }
 0x35b   : > { %v928_v54 = vsel %vm651_vm4, %v923_v52, 0 }
 0x35c   : > { %v904_v56 = vsub.f32 %v830_v31, %v903_v51  ;;  %v907_v57 = vsub.f32 %v896_v24, %v903_v51  ;;  %1821 = vmatpush3.bf16.msra.mxu0 %v928_v54 }
 0x35d   : > { %v1061_v7 = vpop.permute.xlu1 %1060  ;;  %1832 = vmatprep.subr.bf16.mxu0 %v1968_v0 }
 0x35e   : > { %v905_v6 = vmul.f32 1.442695, %v904_v56  ;;  %v908_v9 = vmul.f32 1.442695, %v907_v57  ;;  %v1130_v58 = vpop.permute.xlu0 %1129  ;;  %v1066_v22 = vsel %vm516_vm2, %v1061_v7, 0 }
 0x35f   : > { %v1132_v19 = vsel %vm516_vm2, %v1130_v58, 0 }
 0x360   : > { %1924 = vpow2.f32 %v905_v6 }
 0x361   : > { %1926 = vpow2.f32 %v908_v9  ;;  %v1058_v10 = vpop.permute.xlu1 %1057 }
 0x362   : > { %v1314_v11 = vpop.permute.xlu0 %1313 }
 0x365   : > { %v1317_v59 = vpop.permute.xlu1 %1316 }
 0x366   : > { %v1319_v60 = vsel %vm495_vm1, %v1314_v11, %v1317_v59  ;;  %v1383_v1 = vpop.permute.xlu0 %1382 }
 0x367   : > { %v1321_v62 = vmul.f32 %v1319_v60, %v2122_v15 }
 0x369   : > { %v1386_v63 = vpop.permute.xlu1 %1385  ;;  %1323 = vrot.lane.b32.xlu1 %v1321_v62, %s1980_s30 }
 0x36a   : > { %v1388_v2 = vsel %vm495_vm1, %v1383_v1, %v1386_v63  ;;  %v1296_v17 = vpop.permute.xlu0 %1295 }
 0x36b   : > { %v1393_v5 = vmul.f32 %v1388_v2, %v2117_v14 }
 0x36d   : > { %v2273_v12 = vpop.eup %1924  ;;  %v1299_v16 = vpop.permute.xlu1 %1298  ;;  %1395 = vrot.lane.b32.xlu1 %v1393_v5, %s1980_s30 }
 0x36e   : > { %v2276_v18 = vpop.eup %1926  ;;  %v917_v20 = vpack.c.bf16 %v2273_v12, %v2273_v12  ;;  %v1301_v21 = vsel %vm495_vm1, %v1296_v17, %v1299_v16  ;;  %v1303_v48 = vpop.permute.xlu0 %1302 }
 0x36f   : > { %v918_v14 = vpack.c.bf16 %v2276_v18, %v2276_v18  ;;  %v1306_v23 = vmul.f32 %v1301_v21, %v2122_v15  ;;  %v1320_v54 = vmul.f32 %v1303_v48, %v2068_v4  ;;  %v1305_v56 = vmul.f32 %v1303_v48, %v2078_v8 }
 0x370   : > { %1829 = vmatmul.mubr.msk.bf16.vlgmr.msra.gmra.mxu1 %vm516_vm2, %v917_v20  ;;  %v913_v48 = vsel %vm516_vm2, %v2276_v18, 0.0 }
 0x371   : > { %1823 = vmatmul.mubr.msk.bf16.vlgmr.msra.gmra.mxu0 %vm516_vm2, %v918_v14  ;;  %1839 = vmatpush3.bf16.xpose.msra.mxu1 %v1132_v19 }
 0x372   : > { %1833 = vmatpush3.bf16.xpose.msra.mxu0 %v1066_v22  ;;  %1834 = vmatprep.mubr.msk.bf16.mxu0 %vm1970_vm0, %v1968_v0  ;;  %v1390_v52 = vpop.permute.xlu0 %1389 }
 0x373   : > { %1840 = vmatprep.mubr.msk.bf16.mxu1 %vm1970_vm0, %v1968_v0  ;;  %1308 = vrot.lane.b32.xlu0 %v1306_v23, %s1980_s30  ;;  %v1392_v6 = vmul.f32 %v1390_v52, %v2066_v3 }
 0x374   : > { %1245 = vrot.lane.b32.xlu1 %v2216_v61, %s1978_s25  ;;  %1850 = vmatprep.subr.bf16.mxu1 %v1968_v0 }
 0x375   : > { %1844 = vmatprep.subr.bf16.mxu0 %v1968_v0 }
 0x378   : > { %1841 = vmatmul.mubr.msk.bf16.vlgmr.msra.gmra.mxu1 %vm516_vm2, %v1058_v10 }
 0x379   : > { %1835 = vmatmul.mubr.msk.bf16.vlgmr.msra.gmra.mxu0 %vm516_vm2, %v1058_v10  ;;  %1852 = vmatprep.mubr.msk.bf16.mxu1 %vm1970_vm0, %v1968_v0 }
 0x37a   : > { %1846 = vmatprep.mubr.msk.bf16.mxu0 %vm1970_vm0, %v1968_v0 }
 0x3db   : > { %v1324_v15 = vpop.permute.xlu1 %1323 }
 0x3dc   : > { %v1326_v57 = vadd.f32 %v1324_v15, %v1320_v54 }
 0x3de   : > { %v1327_v9 = vpack.c.bf16 %v1326_v57, %v1326_v57 }
 0x3df   : > { %v1396_v24 = vpop.permute.xlu1 %1395 }
 0x3e0   : > { %v1398_v58 = vadd.f32 %v1396_v24, %v1392_v6 }
 0x3e2   : > { %v1399_v11 = vpack.c.bf16 %v1398_v58, %v1398_v58 }
 0x3e5   : > { %v1309_v7 = vpop.permute.xlu0 %1308 }
 0x3e6   : > { %v1246_v25 = vpop.permute.xlu1 %1245  ;;  %v1311_v10 = vadd.f32 %v1309_v7, %v1305_v56 }
 0x3e7   : > { %v1251_v26 = vsel %vm651_vm4, %v1246_v25, 0 }
 0x3e8   : > { %1851 = vmatpush3.bf16.msra.mxu1 %v1251_v26  ;;  %v1312_v59 = vpack.c.bf16 %v1311_v10, %v1311_v10 }
 0x3e9   : > { %1862 = vmatprep.subr.bf16.mxu1 %v1968_v0 }
 0x430   : > { %v1015_v27 = vpop.f32.mrf.mxu1 }
 0x431   : > { %v964_v29 = vpop.f32.mrf.mxu0 }
 0x432   : > { %v2305_v30 = vadd.f32 %v1015_v27, %v964_v29  ;;  %v1830_v31 = vpop.f32.mrf.mxu1 }
 0x433   : > { %v1824_v32 = vpop.f32.mrf.mxu0 }
 0x434   : > { %v1018_v33 = vpop.f32.mrf.mxu1 }
 0x435   : > { %v967_v34 = vpop.f32.mrf.mxu0 }
 0x436   : > { %v1831_v35 = vpop.f32.mrf.mxu1 }
 0x437   : > { %v1825_v36 = vpop.f32.mrf.mxu0 }
 0x438   : > { %v1168_v37 = vpop.f32.mrf.mxu1 }
 0x439   : > { %v1102_v38 = vpop.f32.mrf.mxu0  ;;  %v1174_v39 = vmul.f32 0.35355338, %v1168_v37 }
 0x43a   : > { %v1108_v40 = vmul.f32 0.35355338, %v1102_v38  ;;  %v1842_v41 = vpop.f32.mrf.mxu1 }
 0x43b   : > { %v1836_v42 = vpop.f32.mrf.mxu0  ;;  %v1178_v43 = vsel %vm516_vm2, %v1174_v39, -inf }
 0x43c   : > { %v1171_v44 = vpop.f32.mrf.mxu1  ;;  %1179 = vmax.xlane.f32.xlu0 %v1178_v43  ;;  %v1109_v46 = vadd.f32 %v1108_v40, %v2155_v55 }
 0x43d   : > { %v1105_v47 = vpop.f32.mrf.mxu0 }
 0x43e   : > { %v1843_v28 = vpop.f32.mrf.mxu1  ;;  %v1175_v49 = vsel %vm516_vm2, %v1109_v46, -inf }
 0x43f   : > { %v1837_v51 = vpop.f32.mrf.mxu0  ;;  %1176 = vmax.xlane.f32.xlu1 %v1175_v49  ;;  %v910_v28 = vsel %vm516_vm2, %v2273_v12, 0.0 }
 0x450   : > { %1332 = vrot.lane.b32.xlu1 %v1327_v9, %s1981_s14 }
 0x452   : > { %1197 = vrot.lane.b32.xlu0 %v2246_v45, %s1978_s25 }
 0x454   : > { %1329 = vrot.lane.b32.xlu1 %v1312_v59, %s1981_s14 }
 0x456   : > { %1401 = vrot.lane.b32.xlu0 %v1399_v11, %s1981_s14 }
 0x4c5   : > { %v1180_v4 = vpop.xlane.xlu0 %1179 }
 0x4c8   : > { %v1177_v8 = vpop.xlane.xlu1 %1176 }
 0x4c9   : > { %v1181_v60 = vmax.f32 %v1177_v8, %v1180_v4  ;;  %v1198_v62 = vpop.permute.xlu0 %1197  ;;  %v639_v8 = vsel %vm516_vm2, %v2202_v50, 0.0 }
 0x4ca   : > { %v1203_v3 = vsel %vm651_vm4, %v1198_v62, 0 }
 0x4cb   : > { %v1182_v63 = vsub.f32 %v1109_v46, %v1181_v60  ;;  %v1185_v1 = vsub.f32 %v1174_v39, %v1181_v60  ;;  %1845 = vmatpush3.bf16.msra.mxu0 %v1203_v3  ;;  %v642_v60 = vsel %vm516_vm2, %v2205_v53, 0.0 }
 0x4cc   : > { %1856 = vmatprep.subr.bf16.mxu0 %v1968_v0  ;;  %v1333_v20 = vpop.permute.xlu1 %1332 }
 0x4cd   : > { %v1183_v2 = vmul.f32 1.442695, %v1182_v63  ;;  %v1186_v5 = vmul.f32 1.442695, %v1185_v1  ;;  %v1402_v16 = vpop.permute.xlu0 %1401  ;;  %v1338_v14 = vsel %vm516_vm2, %v1333_v20, 0 }
 0x4ce   : > { %v1404_v21 = vsel %vm516_vm2, %v1402_v16, 0 }
 0x4cf   : > { %1928 = vpow2.f32 %v1183_v2 }
 0x4d0   : > { %1930 = vpow2.f32 %v1186_v5  ;;  %v1330_v15 = vpop.permute.xlu1 %1329 }
 0x4dc   : > { %v1929_v17 = vpop.eup %1928 }
 0x4dd   : > { %v1931_v19 = vpop.eup %1930  ;;  %v1195_v22 = vpack.c.bf16 %v1929_v17, %v1929_v17 }
 0x4de   : > { %v1196_v23 = vpack.c.bf16 %v1931_v19, %v1931_v19  ;;  %v1191_v49 = vsel %vm516_vm2, %v1931_v19, 0.0 }
 0x4df   : > { %1853 = vmatmul.mubr.msk.bf16.vlgmr.msra.gmra.mxu1 %vm516_vm2, %v1195_v22 }
 0x4e0   : > { %1847 = vmatmul.mubr.msk.bf16.vlgmr.msra.gmra.mxu0 %vm516_vm2, %v1196_v23  ;;  %1863 = vmatpush3.bf16.xpose.msra.mxu1 %v1404_v21 }
 0x4e1   : > { %1857 = vmatpush3.bf16.xpose.msra.mxu0 %v1338_v14  ;;  %1858 = vmatprep.mubr.msk.bf16.mxu0 %vm1970_vm0, %v1968_v0 }
 0x4e2   : > { %1864 = vmatprep.mubr.msk.bf16.mxu1 %vm1970_vm0, %v1968_v0  ;;  %1868 = vmatprep.subr.bf16.mxu0 %v1968_v0 }
 0x4e3   : > { %1874 = vmatprep.subr.bf16.mxu1 %v1968_v0 }
 0x4e7   : > { %1865 = vmatmul.mubr.msk.bf16.vlgmr.msra.gmra.mxu1 %vm516_vm2, %v1330_v15 }
 0x4e8   : > { %1859 = vmatmul.mubr.msk.bf16.vlgmr.msra.gmra.mxu0 %vm516_vm2, %v1330_v15  ;;  %1876 = vmatprep.mubr.msk.bf16.mxu1 %vm1970_vm0, %v1968_v0 }
 0x4e9   : > { %1870 = vmatprep.mubr.msk.bf16.mxu0 %vm1970_vm0, %v1968_v0 }
 0x59f   : > { %v1287_v24 = vpop.f32.mrf.mxu1 }
 0x5a0   : > { %v1239_v25 = vpop.f32.mrf.mxu0 }
 0x5a1   : > { %v2336_v26 = vadd.f32 %v1287_v24, %v1239_v25  ;;  %v1854_v27 = vpop.f32.mrf.mxu1 }
 0x5a2   : > { %v1848_v29 = vpop.f32.mrf.mxu0 }
 0x5a3   : > { %v1290_v31 = vpop.f32.mrf.mxu1 }
 0x5a4   : > { %v1242_v32 = vpop.f32.mrf.mxu0 }
 0x5a5   : > { %v1855_v33 = vpop.f32.mrf.mxu1 }
 0x5a6   : > { %v1849_v34 = vpop.f32.mrf.mxu0 }
 0x5a7   : > { %v1440_v35 = vpop.f32.mrf.mxu1 }
 0x5a8   : > { %v1374_v36 = vpop.f32.mrf.mxu0  ;;  %v1446_v37 = vmul.f32 0.35355338, %v1440_v35 }
 0x5a9   : > { %v1380_v38 = vmul.f32 0.35355338, %v1374_v36  ;;  %v1866_v39 = vpop.f32.mrf.mxu1 }
 0x5aa   : > { %v1860_v40 = vpop.f32.mrf.mxu0  ;;  %v1450_v41 = vsel %vm516_vm2, %v1446_v37, -inf }
 0x5ab   : > { %1451 = vmax.xlane.f32.xlu1 %v1450_v41  ;;  %v1443_v0 = vpop.f32.mrf.mxu1  ;;  %v1381_v42 = vadd.f32 %v1380_v38, %v2155_v55  ;;  %v1188_v55 = vsel %vm516_vm2, %v1929_v17, 0.0 }
 0x5ac   : > { %v1377_v43 = vpop.f32.mrf.mxu0 }
 0x5ad   : > { %v1447_v44 = vsel %vm516_vm2, %v1381_v42, -inf  ;;  %v1867_v46 = vpop.f32.mrf.mxu1 }
 0x5ae   : > { %1448 = vmax.xlane.f32.xlu0 %v1447_v44  ;;  %v1861_v47 = vpop.f32.mrf.mxu0 }
 0x5bc   : > { %1517 = vrot.lane.b32.xlu1 %v2216_v61, %s1981_s14 }
 0x5c4   : > { %1469 = vrot.lane.b32.xlu0 %v2246_v45, %s1981_s14 }
 0x5e0   : > { %914 = vadd.xlane.f32.xlu1 %v913_v48 }
 0x5e3   : > { %911 = vadd.xlane.f32.xlu0 %v910_v28 }
 0x5e7   : > { %1189 = vadd.xlane.f32.xlu0 %v1188_v55 }
 0x5eb   : > { %1192 = vadd.xlane.f32.xlu0 %v1191_v49 }
 0x634   : > { %v1452_v51 = vpop.xlane.xlu1 %1451 }
 0x637   : > { %v1449_v52 = vpop.xlane.xlu0 %1448 }
 0x638   : > { %v1453_v61 = vmax.f32 %v1449_v52, %v1452_v51  ;;  %v1518_v54 = vpop.permute.xlu1 %1517 }
 0x639   : > { %v1523_v45 = vsel %vm651_vm4, %v1518_v54, 0 }
 0x63a   : > { %v1454_v56 = vsub.f32 %v1381_v42, %v1453_v61  ;;  %v1457_v57 = vsub.f32 %v1446_v37, %v1453_v61  ;;  %1875 = vmatpush3.bf16.msra.mxu1 %v1523_v45 }
 0x63b   : > { %v1470_v18 = vpop.permute.xlu0 %1469 }
 0x63c   : > { %v1455_v7 = vmul.f32 1.442695, %v1454_v56  ;;  %v1458_v6 = vmul.f32 1.442695, %v1457_v57  ;;  %v1475_v12 = vsel %vm651_vm4, %v1470_v18, 0 }
 0x63d   : > { %1869 = vmatpush3.bf16.msra.mxu0 %v1475_v12 }
 0x63e   : > { %1932 = vpow2.f32 %v1455_v7 }
 0x63f   : > { %1934 = vpow2.f32 %v1458_v6 }
 0x64b   : > { %v1933_v9 = vpop.eup %1932 }
 0x64c   : > { %v1935_v10 = vpop.eup %1934  ;;  %v1460_v58 = vsel %vm516_vm2, %v1933_v9, 0.0  ;;  %v1467_v59 = vpack.c.bf16 %v1933_v9, %v1933_v9 }
 0x64d   : > { %v1463_v11 = vsel %vm516_vm2, %v1935_v10, 0.0  ;;  %1461 = vadd.xlane.f32.xlu1 %v1460_v58  ;;  %v1468_v4 = vpack.c.bf16 %v1935_v10, %v1935_v10 }
 0x64e   : > { %1464 = vadd.xlane.f32.xlu0 %v1463_v11  ;;  %1877 = vmatmul.mubr.msk.bf16.vlgmr.msra.gmra.mxu1 %vm516_vm2, %v1467_v59 }
 0x64f   : > { %1871 = vmatmul.mubr.msk.bf16.vlgmr.msra.gmra.mxu0 %vm516_vm2, %v1468_v4 }
 0x651   : > { %640 = vadd.xlane.f32.xlu1 %v639_v8 }
 0x652   : > { %643 = vadd.xlane.f32.xlu0 %v642_v60 }
 0x669   : > { %v915_v62 = vpop.xlane.xlu1 %914 }
 0x66c   : > { %v912_v3 = vpop.xlane.xlu0 %911 }
 0x66d   : > { %v916_v63 = vadd.f32 %v915_v62, %v912_v3 }
 0x66f   : > { %1936 = vrcp.f32 %v916_v63 }
 0x670   : > { %v1190_v1 = vpop.xlane.xlu0 %1189 }
 0x674   : > { %v1193_v2 = vpop.xlane.xlu0 %1192 }
 0x675   : > { %v1194_v5 = vadd.f32 %v1193_v2, %v1190_v1 }
 0x677   : > { %1938 = vrcp.f32 %v1194_v5 }
 0x67c   : > { %v1937_v16 = vpop.eup %1936 }
 0x67d   : > { %v1022_v17 = vmul.f32 %v1937_v16, %v2305_v30 }
 0x67f   : > { %1568 = vrot.lane.b32.xlu1 %v1022_v17, %s1973_s28 }
 0x684   : > { %v1939_v19 = vpop.eup %1938 }
 0x685   : > { %v1294_v50 = vmul.f32 %v1939_v19, %v2336_v26 }
 0x687   : > { %1572 = vrot.lane.b32.xlu0 %v1294_v50, %s1977_s27 }
 0x6d6   : > { %v1462_v53 = vpop.xlane.xlu1 %1461 }
 0x6d7   : > { %v1465_v20 = vpop.xlane.xlu0 %1464 }
 0x6d8   : > { %v1466_v21 = vadd.f32 %v1465_v20, %v1462_v53 }
 0x6da   : > { %1940 = vrcp.f32 %v1466_v21  ;;  %v641_v32 = vpop.xlane.xlu1 %640 }
 0x6db   : > { %v644_v33 = vpop.xlane.xlu0 %643 }
 0x6dc   : > { %v645_v34 = vadd.f32 %v644_v33, %v641_v32 }
 0x6de   : > { %1942 = vrcp.f32 %v645_v34 }
 0x6e7   : > { %v1941_v24 = vpop.eup %1940 }
 0x6eb   : > { %v1943_v35 = vpop.eup %1942 }
 0x6ec   : > { %v742_v37 = vmul.f32 %v1943_v35, %v2236_v13 }
 0x6f1   : > { %v1569_v36 = vpop.permute.xlu1 %1568 }
 0x6f2   : > { %v1579_v39 = vsel %vm516_vm2, %v742_v37, %v1569_v36 }
 0x6f9   : > { %v1573_v38 = vpop.permute.xlu0 %1572 }
 0x6fa   : > { %v1581_v40 = vsel %vm1580_vm5, %v1579_v39, %v1573_v38 }
 0x70e   : > { %v1559_v22 = vpop.f32.mrf.mxu1 }
 0x70f   : > { %v1511_v14 = vpop.f32.mrf.mxu0 }
 0x710   : > { %v1560_v23 = vadd.f32 %v1559_v22, %v1511_v14  ;;  %v1878_v15 = vpop.f32.mrf.mxu1 }
 0x711   : > { %v1872_v25 = vpop.f32.mrf.mxu0 }
 0x712   : > { %v1566_v27 = vmul.f32 %v1941_v24, %v1560_v23  ;;  %v1562_v29 = vpop.f32.mrf.mxu1 }
 0x713   : > { %v1514_v30 = vpop.f32.mrf.mxu0 }
 0x714   : > { %1576 = vrot.lane.b32.xlu1 %v1566_v27, %s1980_s30  ;;  %v1879_v31 = vpop.f32.mrf.mxu1 }
 0x715   : > { %v1873_v26 = vpop.f32.mrf.mxu0 }
 0x786   : > { %v1577_v41 = vpop.permute.xlu1 %1576 }
 0x787   : > { %v1583_v0 = vsel %vm1582_vm6, %v1581_v40, %v1577_v41 }
 0x788   : > { %v1584_v42 = vpack.c.bf16 %v1583_v0, %v1583_v0 }
 0x78a   : > { %1586 = vst.msk [vmem:[%s470_s16] sm:$0xf] %vm1585_vm7, %v1584_v42 }
 0x78b PF: > { %s19_s11 = sadd.s32 1, %s1966_s11   ;;  %s2391_s30 = smov %s1962_s10 }
 0x78c   : > { %p16_p5 = scmp.ge.s32.totalorder %s19_s11, 4   ;;  %s2392_s10 = smov %s2394_s12 }
 0x78e   :  { %18 = sbr.rel (!%p16_p5) target bundleno = 2 (0x2), region = 98 }

// kernel: block_recurrent_forward.39
= control target key start
LH: loop header
LB: loop body
LE: loop exit
PB: predicated region body
PF: predicated region fallthrough
CT: control target
= control target key end

     0   :  { %vm79_vm0 = vcmask 1041408   ;;  %vm80_vm1 = vcmask 1042432   ;;  %v188_v0 = vmov 0.0   ;;  %v189_v2 = vmov 65535   ;;  %s250_s1 = inlined_call_operand.vmem [shape: bf16[85,32], index: 1, kind: input, shape index: {}]   ;;  %s251_s0 = inlined_call_operand.vmem [shape: bf16[16,85], index: 0, kind: input, shape index: {}]   ;;  %s252_s2 = inlined_call_operand.vmem [shape: f32[16,32], index: 2, kind: input, shape index: {}]   ;;  %s253_s3 = inlined_call_operand.vmem [shape: f32[16,32], index: 3, kind: output, shape index: {}]  }
   0x1   :  { %162 = vmatprep.subr.bf16.mxu0 %v188_v0  ;;  %v181_v1 = vld [vmem:[%s250_s1 + $0x28] ss:$0 sps:$4 sm:$0x77]   ;;  %v81_v3 = vsel %vm79_vm0, 4294967295, %v189_v2  ;;  %vm190_vm2 = vmmov 0   ;;  %v182_v6 = vld [vmem:[%s250_s1 + $0x20] sm:$0xff]  }
   0x2   :  { %v82_v4 = vsel %vm80_vm1, %v81_v3, 0  ;;  %174 = vmatprep.mubr.msk.bf16.mxu0 %vm190_vm2, %v188_v0  ;;  %vm19_vm3 = vcmask 261120   ;;  %v183_v7 = vld [vmem:[%s250_s1 + $0x18] sm:$0xff]   ;;  %v184_v8 = vld [vmem:[%s250_s1 + $0x10] sm:$0xff]   ;;  %v185_v9 = vld [vmem:[%s250_s1 + $0x8] sm:$0xff]   ;;  %vm75_vm4 = vcmask 695296  }
   0x3   :  { %v84_v5 = vand.u32 %v181_v1, %v82_v4  ;;  %20 = vst.msk [vmem:[#allocation2] sm:$0xff] %vm19_vm3, %v188_v0  ;;  %21 = vst.msk [vmem:[#allocation2 + $0x8] sm:$0xff] %vm19_vm3, %v188_v0  ;;  %v186_v10 = vld [vmem:[%s250_s1] sm:$0xff]   ;;  %v138_v23 = vld [vmem:[%s252_s2 + $0x8] sm:$0xff] }
   0x4   :  { %v187_v11 = vld [vmem:[%s251_s0] sm:$0xff]  }
   0x5   :  { %163 = vmatpush3.bf16.msra.mxu0 %v84_v5  ;;  %v137_v20 = vld [vmem:[%s252_s2] sm:$0xff] }
   0x6   :  { %164 = vmatprep.subr.bf16.mxu0 %v188_v0 }
   0x9   :  { %165 = vmatpush3.bf16.msra.mxu0 %v182_v6 }
   0xa   :  { %166 = vmatprep.subr.bf16.mxu0 %v188_v0  ;;  %v22_v12 = vld [vmem:[#allocation2] sm:$0xff]  ;;  %v23_v16 = vld [vmem:[#allocation2 + $0x8] sm:$0xff] }
   0xd   :  { %167 = vmatpush3.bf16.msra.mxu0 %v183_v7 }
   0xe   :  { %168 = vmatprep.subr.bf16.mxu0 %v188_v0 }
  0x11   :  { %169 = vmatpush3.bf16.msra.mxu0 %v184_v8 }
  0x12   :  { %170 = vmatprep.subr.bf16.mxu0 %v188_v0 }
  0x15   :  { %171 = vmatpush3.bf16.msra.mxu0 %v185_v9 }
  0x16   :  { %172 = vmatprep.subr.bf16.mxu0 %v188_v0 }
  0x19   :  { %173 = vmatpush3.bf16.msra.mxu0 %v186_v10 }
  0x1c   :  { %175 = vmatmul.mubr.msk.bf16.vlgmr.msra.gmra.mxu0 %vm75_vm4, %v187_v11 }
  0xdc   :  { %v120_v13 = vpop.f32.mrf.mxu0 }
  0xdd   :  { %v127_v14 = vadd.f32 %v120_v13, %v22_v12 }
  0xde   :  { %v176_v15 = vpop.f32.mrf.mxu0 }
  0xdf   :  { %130 = vst.msk [vmem:[#allocation2] sm:$0xff] %vm19_vm3, %v127_v14 }
  0xe0   :  { %v123_v17 = vpop.f32.mrf.mxu0 }
  0xe1   :  { %v128_v18 = vadd.f32 %v123_v17, %v23_v16 }
  0xe2   :  { %v177_v19 = vpop.f32.mrf.mxu0 }
  0xe3   :  { %131 = vst.msk [vmem:[#allocation2 + $0x8] sm:$0xff] %vm19_vm3, %v128_v18 }
  0xe6   :  { %v135_v21 = vld [vmem:[#allocation2] sm:$0xff] }
  0xe7   :  { %v139_v22 = vadd.f32 %v137_v20, %v135_v21 }
  0xe9   :  { %141 = vst.msk [vmem:[%s253_s3] sm:$0xff] %vm19_vm3, %v139_v22 }
  0xea   :  { %v136_v24 = vld [vmem:[#allocation2 + $0x8] sm:$0xff] }
  0xeb   :  { %v140_v25 = vadd.f32 %v138_v23, %v136_v24 }
  0xed   :  { %142 = vst.msk [vmem:[%s253_s3 + $0x8] sm:$0xff] %vm19_vm3, %v140_v25 }

// kernel: block_recurrent_forward.40
= control target key start
LH: loop header
LB: loop body
LE: loop exit
PB: predicated region body
PF: predicated region fallthrough
CT: control target
= control target key end

     0   :  { %vm20_vm0 = vcmask 261120   ;;  %v170_v14 = vmov 0.0   ;;  %vm171_vm1 = vmmov 0   ;;  %vm135_vm2 = vcmask 781312   ;;  %s226_s0 = inlined_call_operand.vmem [shape: f32[16,32], index: 0, kind: input, shape index: {}]   ;;  %s227_s3 = inlined_call_operand.vmem [shape: bf16[32,96], index: 3, kind: input, shape index: {}]   ;;  %s228_s1 = inlined_call_operand.vmem [shape: f32[1,32], index: 1, kind: input, shape index: {}]   ;;  %s229_s2 = inlined_call_operand.vmem [shape: f32[1,32], index: 2, kind: input, shape index: {}]   ;;  %s230_s4 = inlined_call_operand.vmem [shape: bf16[16,96], index: 4, kind: output, shape index: {}]  }
   0x1   :  { %v18_v0 = vld [vmem:[%s226_s0] sm:$0xff]  ;;  %v19_v1 = vld [vmem:[%s226_s0 + $0x8] sm:$0xff]  ;;  %154 = vmatprep.subr.bf16.mxu0 %v170_v14  ;;  %158 = vmatprep.mubr.msk.bf16.mxu0 %vm171_vm1, %v170_v14 }
   0x2   :  { %v21_v2 = vsel %vm20_vm0, %v18_v0, 0.0  ;;  %v24_v3 = vsel %vm20_vm0, %v19_v1, 0.0  ;;  %v164_v15 = vld [vmem:[%s227_s3 + $0x8] sm:$0xff]   ;;  %v165_v16 = vld [vmem:[%s227_s3] sm:$0xff]  }
   0x3   :  { %22 = vadd.xlane.f32.xlu0 %v21_v2  ;;  %155 = vmatpush3.bf16.msra.mxu0 %v164_v15  ;;  %v142_v25 = vld [vmem:[%s228_s1] ss:$0 sm:$0xff] }
   0x4   :  { %156 = vmatprep.subr.bf16.mxu0 %v170_v14  ;;  %v143_v29 = vld [vmem:[%s229_s2] ss:$0 sm:$0xff] }
   0x7   :  { %25 = vadd.xlane.f32.xlu0 %v24_v3  ;;  %157 = vmatpush3.bf16.msra.mxu0 %v165_v16 }
  0x8c   :  { %v23_v4 = vpop.xlane.xlu0 %22 }
  0x8d   :  { %v28_v5 = vmul.f32 0.03125, %v23_v4 }
  0x8f   :  { %v30_v6 = vsub.f32 %v18_v0, %v28_v5 }
  0x90   :  { %v26_v7 = vpop.xlane.xlu0 %25 }
  0x91   :  { %v29_v8 = vmul.f32 0.03125, %v26_v7  ;;  %v32_v9 = vmul.f32 %v30_v6, %v30_v6 }
  0x93   :  { %v31_v10 = vsub.f32 %v19_v1, %v29_v8  ;;  %v34_v11 = vsel %vm20_vm0, %v32_v9, 0.0 }
  0x94   :  { %35 = vadd.xlane.f32.xlu1 %v34_v11 }
  0x95   :  { %v33_v12 = vmul.f32 %v31_v10, %v31_v10 }
  0x97   :  { %v37_v13 = vsel %vm20_vm0, %v33_v12, 0.0 }
  0x98   :  { %38 = vadd.xlane.f32.xlu1 %v37_v13 }
 0x11d   :  { %v36_v17 = vpop.xlane.xlu1 %35 }
 0x11e   :  { %v40_v18 = vmul.f32 0.03125, %v36_v17 }
 0x120   :  { %v42_v19 = vadd.f32 1e-05, %v40_v18 }
 0x121   :  { %v39_v20 = vpop.xlane.xlu1 %38 }
 0x122   :  { %166 = vrsqrt.f32 %v42_v19  ;;  %v41_v21 = vmul.f32 0.03125, %v39_v20 }
 0x124   :  { %v43_v22 = vadd.f32 1e-05, %v41_v21 }
 0x126   :  { %168 = vrsqrt.f32 %v43_v22 }
 0x12f   :  { %v167_v23 = vpop.eup %166 }
 0x130   :  { %v46_v24 = vmul.f32 %v167_v23, %v30_v6 }
 0x132   :  { %v55_v28 = vmul.f32 %v142_v25, %v46_v24 }
 0x133   :  { %v169_v26 = vpop.eup %168 }
 0x134   :  { %v47_v27 = vmul.f32 %v169_v26, %v31_v10  ;;  %v64_v31 = vadd.f32 %v143_v29, %v55_v28 }
 0x136   :  { %v56_v30 = vmul.f32 %v142_v25, %v47_v27 }
 0x138   :  { %v65_v32 = vadd.f32 %v143_v29, %v56_v30 }
 0x13a   :  { %v66_v33 = vpack.c.bf16 %v65_v32, %v64_v31 }
 0x13c   :  { %159 = vmatmul.mubr.msk.bf16.vlgmr.msra.gmra.mxu0 %vm20_vm0, %v66_v33 }
 0x1fc   :  { %v120_v34 = vpop.f32.mrf.mxu0 }
 0x1fd   :  { %v149_v35 = vpack.c.bf16 %v120_v34, %v120_v34 }
 0x1fe   :  { %v160_v36 = vpop.f32.mrf.mxu0 }
 0x1ff   :  { %136 = vst.msk [vmem:[%s230_s4] sm:$0xf] %vm135_vm2, %v149_v35 }
 0x200   :  { %v123_v37 = vpop.f32.mrf.mxu0 }
 0x201   :  { %v150_v38 = vpack.c.bf16 %v123_v37, %v123_v37 }
 0x202   :  { %v161_v39 = vpop.f32.mrf.mxu0 }
 0x203   :  { %137 = vst.msk [vmem:[%s230_s4 + $0x4] sm:$0xf] %vm135_vm2, %v150_v38 }

// kernel: block_recurrent_forward.45
= control target key start
LH: loop header
LB: loop body
LE: loop exit
PB: predicated region body
PF: predicated region fallthrough
CT: control target
= control target key end

     0   :  { %vm20_vm0 = vcmask 254976   ;;  %s219_s0 = inlined_call_operand.vmem [shape: f32[2,32], index: 0, kind: input, shape index: {}]   ;;  %s220_s1 = inlined_call_operand.vmem [shape: f32[1,32], index: 1, kind: input, shape index: {}]   ;;  %s221_s2 = inlined_call_operand.vmem [shape: f32[1,32], index: 2, kind: input, shape index: {}]   ;;  %s222_s3 = inlined_call_operand.vmem [shape: bf16[32,10], index: 3, kind: input, shape index: {}]   ;;  %s223_s4 = inlined_call_operand.hbm [shape: f32[2,10], index: 4, kind: output, shape index: {}]  }
   0x1   :  { %v19_v0 = vld [vmem:[%s219_s0] sm:$0x3] }
   0x2   :  { %v21_v1 = vsel %vm20_vm0, %v19_v0, 0.0 }
   0x3   :  { %22 = vadd.xlane.f32.xlu0 %v21_v1 }
   0x4   :  { %9 = vsyncpa [#allocation3], 0  ;;  %v147_v7 = vld [vmem:[%s222_s3 + $0x8] sm:$0xff]   ;;  %v173_v8 = vmov 0.0   ;;  %vm174_vm1 = vmmov 0   ;;  %v148_v9 = vld [vmem:[%s222_s3] sm:$0xff]  }
   0x5   :  { %136 = vmatprep.subr.bf16.mxu0 %v173_v8  ;;  %140 = vmatprep.mubr.msk.bf16.mxu0 %vm174_vm1, %v173_v8  ;;  %v128_v14 = vld [vmem:[%s220_s1] ss:$0 sm:$0xff]  ;;  %vm68_vm2 = vcmask 261120   ;;  %s175_s3 = smov [#allocation2]   ;;  %vm112_vm3 = vcmask 74752  }
   0x6   :  { %137 = vmatpush3.bf16.msra.mxu0 %v147_v7  ;;  %v129_v16 = vld [vmem:[%s221_s2] ss:$0 sm:$0xff]  ;;  %s120_s24 = sshll.u32 %s175_s3, 4  ;;  %s121_s24 = int_to_ptr.vmem [resolvable:$true] %s120_s24 }
   0x7   :  { %138 = vmatprep.subr.bf16.mxu0 %v173_v8  ;;  %s151_s25 = scalar_lea.vmem %s121_s24, 32  ;;  %p156_p1 = scmp.lt.s32.totalorder %s121_s24, %s121_s24 }
   0x8   :  { %p152_p0 = scmp.ne.s32.totalorder %s121_s24, %s151_s25  ;;  %p157_p2 = scmp.lt.s32.totalorder %s151_s25, %s151_s25 }
   0xa   :  { %139 = vmatpush3.bf16.msra.mxu0 %v148_v9  ;;  %p158_p3 = por %p157_p2, %p156_p1 }
   0xc   :  { %p159_p4 = pnand %p158_p3, %p152_p0 }
  0x8c   :  { %v23_v2 = vpop.xlane.xlu0 %22 }
  0x8d   :  { %v25_v3 = vmul.f32 0.03125, %v23_v2 }
  0x8f   :  { %v26_v4 = vsub.f32 %v19_v0, %v25_v3 }
  0x91   :  { %v27_v5 = vmul.f32 %v26_v4, %v26_v4 }
  0x93   :  { %v28_v6 = vsel %vm20_vm0, %v27_v5, 0.0 }
  0x94   :  { %29 = vadd.xlane.f32.xlu0 %v28_v6 }
 0x11d   :  { %v30_v10 = vpop.xlane.xlu0 %29 }
 0x11e   :  { %v31_v11 = vmul.f32 0.03125, %v30_v10 }
 0x120   :  { %v32_v12 = vadd.f32 1e-05, %v31_v11 }
 0x122   :  { %149 = vrsqrt.f32 %v32_v12 }
 0x12f   :  { %v150_v13 = vpop.eup %149 }
 0x130   :  { %v34_v15 = vmul.f32 %v150_v13, %v26_v4 }
 0x132   :  { %v42_v17 = vmul.f32 %v128_v14, %v34_v15 }
 0x134   :  { %v50_v18 = vadd.f32 %v129_v16, %v42_v17 }
 0x136   :  { %v51_v19 = vpack.c.bf16 %v50_v18, %v50_v18 }
 0x138   :  { %141 = vmatmul.mubr.msk.bf16.vlgmr.msra.gmra.mxu0 %vm68_vm2, %v51_v19 }
 0x1f8   :  { %v106_v20 = vpop.f32.mrf.mxu0 }
 0x1f9   :  { %113 = vst.msk [vmem:[#allocation2] sm:$0x3] %vm112_vm3, %v106_v20 }
 0x1fa   :  { %v142_v21 = vpop.f32.mrf.mxu0 }
 0x1fb   :  { %162 = shalt.err (!%p159_p4)
}
 0x1fc   :  { %123 = dma.vmem_to_hbm [thread:$0]  %s121_s24, 32, %s223_s4, [#allocation3]   ;;  %v109_v22 = vpop.f32.mrf.mxu0 }
 0x1fe   :  { %v143_v23 = vpop.f32.mrf.mxu0 }
 0x1ff   :  { %171 = dma.done.wait [#allocation3], 32  }
 0x200   :  { %172 = vsyncadd [#allocation3], 4294967264 }
 0x201   :  { %127 = vsyncpa [#allocation3], 1 }

// kernel: block_recurrent_forward.26
= control target key start
LH: loop header
LB: loop body
LE: loop exit
PB: predicated region body
PF: predicated region fallthrough
CT: control target
= control target key end

     0   :  { %s1234_s18 = smov 0   ;;  %s1236_s19 = smov 0   ;;  %s1404_s0 = inlined_call_operand.vmem [shape: bf16[2,8,32], index: 0, kind: input, shape index: {}]   ;;  %s1405_s1 = inlined_call_operand.vmem [shape: bf16[2,8,32], index: 1, kind: input, shape index: {}]   ;;  %s1406_s2 = inlined_call_operand.vmem [shape: bf16[2,8,32], index: 2, kind: input, shape index: {}]   ;;  %s1407_s3 = inlined_call_operand.vmem [shape: f32[8,8], index: 3, kind: input, shape index: {}]   ;;  %s1408_s4 = inlined_call_operand.vmem [shape: f32[8,8], index: 4, kind: input, shape index: {}]   ;;  %s1409_s5 = inlined_call_operand.vmem [shape: bf16[2,8,32], index: 5, kind: output, shape index: {}]  }
   0x1   :  { %s1238_s20 = smov 0  }
   0x2 LB: > { %s27_s21 = sadd.s32 1, %s1184_s19  ;;  %p1031_p0 = scmp.ge.s32.totalorder %s1188_s20, 1  ;;  %s1188_s20 = sphi %s1238_s20, %s15_s20   ;;  %s1184_s19 = sphi %s1236_s19, %s1411_s19   ;;  %s1180_s18 = sphi %s1234_s18, %s1410_s18  }
   0x3   : > { %p29_p1 = scmp.ge.s32.totalorder %s27_s21, 2  ;;  %p233_p2 = scmp.lt.s32.totalorder %s1188_s20, 3 }
   0x5   : > { %s1413_s21 = smov (%p29_p1, %s27_s21), 0  ;;  %p234_p3 = pnand %p1031_p0, %p233_p2 }
   0x6   : > { %p279_p4 = scmp.lt.s32.totalorder (!%p234_p3), %s1180_s18, 1  ;;  %s1191_s29 = smov (!%p234_p3), 124  }
   0x7   : > { %237 = sbr.rel (%p234_p3) target bundleno = 1204 (0x4b4), region = 40  ;;  %s1193_s30 = smov (!%p234_p3), 4  }
   0x8   : > { %s1194_s6 = smov (!%p234_p3), 116   ;;  %s1195_s7 = smov (!%p234_p3), 108  }
   0x9   : > { %s1196_s8 = smov (!%p234_p3), 100   ;;  %s1197_s11 = smov (!%p234_p3), 8  }
   0xa   : > { %s1198_s12 = smov (!%p234_p3), 16   ;;  %s1199_s15 = smov (!%p234_p3), 24  }
   0xb   : > { %s1200_s16 = smov (!%p234_p3), 120   ;;  %s1201_s17 = smov (!%p234_p3), 112  }
   0xc   : > { %s1415_s18 = smov (!%p279_p4, %s1180_s18), 1  ;;  %v1190_v4 = vmov 0.0   ;;  %vm1192_vm0 = vmmov 0   ;;  %v314_v7 = vld [vmem:[%s1407_s3] sm:$0xff]  ;;  %vm329_vm1 = vcmask 31744   ;;  %vm350_vm2 = vcmask 64512  }
   0xd   : > { %s1252_s22 = sshll.u32 %s1415_s18, 2  ;;  %1063 = vmatprep.subr.bf16.mxu0 %v1190_v4  ;;  %1069 = vmatprep.subr.bf16.mxu1 %v1190_v4  ;;  %v315_v10 = vld [vmem:[%s1408_s4] sm:$0xff]  ;;  %s1202_s18 = smov 104   ;;  %vm412_vm4 = vcmask 1043456   ;;  %vm916_vm5 = vcmask 130048   ;;  %vm918_vm6 = vcmask 195584  }
   0xe   : > { %s292_s25 = scalar_lea.vmem %s1405_s1, %s1252_s22  ;;  %s285_s28 = scalar_lea.vmem %s1404_s0, %s1252_s22  ;;  %1065 = vmatprep.mubr.msk.bf16.mxu0 %vm1192_vm0, %v1190_v4  ;;  %1071 = vmatprep.mubr.msk.bf16.mxu1 %vm1192_vm0, %v1190_v4  ;;  %vm921_vm7 = vcmask 257024  }
   0xf   : > { %v317_v0 = vld [vmem:[%s292_s25] sm:$0xf]  ;;  %s299_s25 = scalar_lea.vmem %s1406_s2, %s1252_s22 }
  0x10   : > { %v316_v1 = vld [vmem:[%s285_s28] sm:$0xf]  ;;  %v1262_v2 = vunpack.c.l.bf16 %v317_v0  ;;  %s306_s28 = scalar_lea.vmem %s1409_s5, %s1252_s22 }
  0x11   : > { %v1264_v3 = vunpack.c.l.bf16 %v316_v1 }
  0x12   : > { %v336_v5 = vsub.f32 0.0, %v1262_v2  ;;  %v346_v13 = vmul.f32 %v1262_v2, %v314_v7 }
  0x13   : > { %v320_v6 = vsub.f32 0.0, %v1264_v3  ;;  %v331_v21 = vmul.f32 %v1264_v3, %v314_v7 }
  0x14   : > { %338 = vrot.lane.b32.xlu0 %v336_v5, %s1191_s29 }
  0x15   : > { %322 = vrot.lane.b32.xlu1 %v320_v6, %s1191_s29 }
  0x18   : > { %342 = vrot.lane.b32.xlu0 %v1262_v2, %s1193_s30 }
  0x19   : > { %326 = vrot.lane.b32.xlu1 %v1264_v3, %s1193_s30 }
  0x1c   : > { %477 = vrot.lane.b32.xlu0 %v336_v5, %s1194_s6 }
  0x1d   : > { %480 = vrot.lane.b32.xlu1 %v1262_v2, %s1191_s29 }
  0x20   : > { %458 = vrot.lane.b32.xlu0 %v320_v6, %s1194_s6 }
  0x21   : > { %461 = vrot.lane.b32.xlu1 %v1264_v3, %s1191_s29 }
  0x24   : > { %627 = vrot.lane.b32.xlu0 %v336_v5, %s1195_s7 }
  0x25   : > { %630 = vrot.lane.b32.xlu1 %v1262_v2, %s1194_s6 }
  0x28   : > { %609 = vrot.lane.b32.xlu0 %v320_v6, %s1195_s7 }
  0x29   : > { %612 = vrot.lane.b32.xlu1 %v1264_v3, %s1194_s6 }
  0x2c   : > { %774 = vrot.lane.b32.xlu0 %v336_v5, %s1196_s8 }
  0x2d   : > { %777 = vrot.lane.b32.xlu1 %v1262_v2, %s1195_s7 }
  0x30   : > { %756 = vrot.lane.b32.xlu0 %v320_v6, %s1196_s8 }
  0x31   : > { %759 = vrot.lane.b32.xlu1 %v1264_v3, %s1195_s7 }
  0x34   : > { %466 = vrot.lane.b32.xlu0 %v314_v7, %s1197_s11 }
  0x38   : > { %616 = vrot.lane.b32.xlu0 %v314_v7, %s1198_s12 }
  0x86   : > { %v339_v8 = vpop.permute.xlu0 %338 }
  0x87   : > { %v323_v9 = vpop.permute.xlu1 %322 }
  0x8a   : > { %v343_v11 = vpop.permute.xlu0 %342 }
  0x8b   : > { %v327_v12 = vpop.permute.xlu1 %326  ;;  %v345_v14 = vsel %vm329_vm1, %v339_v8, %v343_v11 }
  0x8c   : > { %v347_v15 = vmul.f32 %v345_v14, %v315_v10  ;;  %v330_v16 = vsel %vm329_vm1, %v323_v9, %v327_v12 }
  0x8d   : > { %v332_v22 = vmul.f32 %v330_v16, %v315_v10 }
  0x8e   : > { %v348_v17 = vadd.f32 %v347_v15, %v346_v13  ;;  %v478_v18 = vpop.permute.xlu0 %477 }
  0x8f   : > { %v481_v19 = vpop.permute.xlu1 %480  ;;  %v333_v29 = vadd.f32 %v332_v22, %v331_v21 }
  0x90   : > { %v483_v20 = vsel %vm329_vm1, %v478_v18, %v481_v19  ;;  %v349_v23 = vpack.c.bf16 %v348_v17, %v348_v17  ;;  %v1203_v17 = vmov -1e+30  }
  0x91   : > { %v485_v24 = vmul.f32 %v483_v20, %v315_v10  ;;  %v334_v34 = vpack.c.bf16 %v333_v29, %v333_v29 }
  0x92   : > { %v355_v25 = vsel %vm350_vm2, %v349_v23, 0  ;;  %v459_v26 = vpop.permute.xlu0 %458 }
  0x93   : > { %487 = vrot.lane.b32.xlu1 %v485_v24, %s1197_s11  ;;  %v462_v27 = vpop.permute.xlu1 %461  ;;  %1064 = vmatpush3.bf16.xpose.msra.mxu0 %v355_v25  ;;  %v318_v24 = vld [vmem:[%s299_s25] sm:$0xf] }
  0x94   : > { %v464_v28 = vsel %vm329_vm1, %v459_v26, %v462_v27  ;;  %1081 = vmatprep.subr.bf16.mxu0 %v1190_v4  ;;  %v414_v25 = vsel %vm412_vm4, %v318_v24, 0  ;;  %v1333_v26 = vcombine.low %v318_v24, %v318_v24 }
  0x95   : > { %v470_v30 = vmul.f32 %v464_v28, %v315_v10  ;;  %1070 = vmatpush3.bf16.msra.mxu1 %v414_v25 }
  0x96   : > { %v628_v31 = vpop.permute.xlu0 %627  ;;  %1075 = vmatprep.subr.bf16.mxu1 %v1190_v4 }
  0x97   : > { %472 = vrot.lane.b32.xlu1 %v470_v30, %s1197_s11  ;;  %v631_v32 = vpop.permute.xlu1 %630 }
  0x98   : > { %v633_v33 = vsel %vm329_vm1, %v628_v31, %v631_v32 }
  0x99   : > { %v635_v35 = vmul.f32 %v633_v33, %v315_v10 }
  0x9a   : > { %1066 = vmatmul.mubr.msk.bf16.vlgmr.msra.gmra.mxu0 %vm350_vm2, %v334_v34  ;;  %v610_v36 = vpop.permute.xlu0 %609 }
  0x9b   : > { %637 = vrot.lane.b32.xlu0 %v635_v35, %s1198_s12  ;;  %v613_v37 = vpop.permute.xlu1 %612  ;;  %763 = vrot.lane.b32.xlu1 %v314_v7, %s1199_s15 }
  0x9c   : > { %v615_v38 = vsel %vm329_vm1, %v610_v36, %v613_v37  ;;  %1083 = vmatprep.mubr.msk.bf16.mxu0 %vm1192_vm0, %v1190_v4 }
  0x9d   : > { %v620_v39 = vmul.f32 %v615_v38, %v315_v10 }
  0x9e   : > { %v775_v40 = vpop.permute.xlu0 %774 }
  0x9f   : > { %622 = vrot.lane.b32.xlu0 %v620_v39, %s1198_s12  ;;  %v778_v41 = vpop.permute.xlu1 %777 }
  0xa0   : > { %v780_v42 = vsel %vm329_vm1, %v775_v40, %v778_v41 }
  0xa1   : > { %v782_v43 = vmul.f32 %v780_v42, %v315_v10 }
  0xa2   : > { %v757_v44 = vpop.permute.xlu0 %756 }
  0xa3   : > { %784 = vrot.lane.b32.xlu1 %v782_v43, %s1199_s15  ;;  %v760_v45 = vpop.permute.xlu1 %759 }
  0xa4   : > { %v762_v46 = vsel %vm329_vm1, %v757_v44, %v760_v45 }
  0xa5   : > { %v767_v47 = vmul.f32 %v762_v46, %v315_v10 }
  0xa6   : > { %v467_v48 = vpop.permute.xlu0 %466 }
  0xa7   : > { %769 = vrot.lane.b32.xlu0 %v767_v47, %s1199_s15  ;;  %v484_v49 = vmul.f32 %v467_v48, %v1262_v2  ;;  %v469_v51 = vmul.f32 %v467_v48, %v1264_v3 }
  0xaa   : > { %v617_v53 = vpop.permute.xlu0 %616 }
  0xab   : > { %v634_v56 = vmul.f32 %v617_v53, %v1262_v2  ;;  %v619_v60 = vmul.f32 %v617_v53, %v1264_v3 }
 0x105   : > { %v488_v50 = vpop.permute.xlu1 %487 }
 0x106   : > { %v490_v52 = vadd.f32 %v488_v50, %v484_v49 }
 0x108   : > { %v491_v54 = vpack.c.bf16 %v490_v52, %v490_v52 }
 0x109   : > { %v473_v55 = vpop.permute.xlu1 %472 }
 0x10a   : > { %v475_v57 = vadd.f32 %v473_v55, %v469_v51  ;;  %496 = vrot.lane.b32.xlu0 %v491_v54, %s1200_s16 }
 0x10c   : > { %v476_v58 = vpack.c.bf16 %v475_v57, %v475_v57 }
 0x10d   : > { %v638_v59 = vpop.permute.xlu0 %637  ;;  %v764_v62 = vpop.permute.xlu1 %763 }
 0x10e   : > { %v640_v61 = vadd.f32 %v638_v59, %v634_v56  ;;  %493 = vrot.lane.b32.xlu0 %v476_v58, %s1200_s16  ;;  %v781_v5 = vmul.f32 %v764_v62, %v1262_v2  ;;  %v766_v8 = vmul.f32 %v764_v62, %v1264_v3  ;;  %v308_v2 = vlaneseq }
 0x110   : > { %v641_v63 = vpack.c.bf16 %v640_v61, %v640_v61  ;;  %v309_v14 = vshrl.u32 %v308_v2, 7  ;;  %v311_v15 = vand.u32 127, %v308_v2 }
 0x111   : > { %v623_v0 = vpop.permute.xlu0 %622 }
 0x112   : > { %v625_v1 = vadd.f32 %v623_v0, %v619_v60  ;;  %646 = vrot.lane.b32.xlu0 %v641_v63, %s1201_s17  ;;  %vm312_vm3 = vcmp.le.s32.totalorder %v311_v15, %v309_v14 }
 0x113   : > { %v1324_v3 = vsel %vm312_vm3, 0.0, %v1203_v17 }
 0x114   : > { %v626_v6 = vpack.c.bf16 %v625_v1, %v625_v1 }
 0x115   : > { %v785_v7 = vpop.permute.xlu1 %784 }
 0x116   : > { %v787_v9 = vadd.f32 %v785_v7, %v781_v5  ;;  %643 = vrot.lane.b32.xlu0 %v626_v6, %s1201_s17 }
 0x118   : > { %v788_v10 = vpack.c.bf16 %v787_v9, %v787_v9 }
 0x119   : > { %v770_v11 = vpop.permute.xlu0 %769 }
 0x11a   : > { %v772_v12 = vadd.f32 %v770_v11, %v766_v8  ;;  %793 = vrot.lane.b32.xlu0 %v788_v10, %s1202_s18 }
 0x11c   : > { %v773_v13 = vpack.c.bf16 %v772_v12, %v772_v12 }
 0x11e   : > { %790 = vrot.lane.b32.xlu0 %v773_v13, %s1202_s18 }
 0x15a   : > { %v391_v16 = vpop.f32.mrf.mxu0 }
 0x15b   : > { %v397_v18 = vmul.f32 0.35355338, %v391_v16 }
 0x15c   : > { %v1067_v19 = vpop.f32.mrf.mxu0 }
 0x15d   : > { %v398_v20 = vadd.f32 %v397_v18, %v1324_v3 }
 0x15e   : > { %v394_v21 = vpop.f32.mrf.mxu0 }
 0x15f   : > { %v399_v22 = vsel %vm350_vm2, %v398_v20, -inf }
 0x160   : > { %v1068_v23 = vpop.f32.mrf.mxu0  ;;  %400 = vmax.xlane.f32.xlu1 %v399_v22 }
 0x171   : > { %559 = vrot.lane.b32.xlu1 %v1333_v26, %s1200_s16 }
 0x17c   : > { %v497_v30 = vpop.permute.xlu0 %496 }
 0x17d   : > { %v502_v33 = vsel %vm350_vm2, %v497_v30, 0 }
 0x180   : > { %v494_v31 = vpop.permute.xlu0 %493 }
 0x184   : > { %v647_v35 = vpop.permute.xlu0 %646 }
 0x185   : > { %v652_v36 = vsel %vm350_vm2, %v647_v35, 0 }
 0x188   : > { %v644_v37 = vpop.permute.xlu0 %643 }
 0x18c   : > { %v794_v38 = vpop.permute.xlu0 %793 }
 0x18d   : > { %v799_v39 = vsel %vm350_vm2, %v794_v38, 0 }
 0x190   : > { %v791_v40 = vpop.permute.xlu0 %790 }
 0x1e9   : > { %v401_v27 = vpop.xlane.xlu1 %400 }
 0x1ea   : > { %v402_v28 = vsub.f32 %v398_v20, %v401_v27 }
 0x1ec   : > { %v403_v29 = vmul.f32 1.442695, %v402_v28 }
 0x1ed   : > { %v560_v41 = vpop.permute.xlu1 %559 }
 0x1ee   : > { %1150 = vpow2.f32 %v403_v29  ;;  %v565_v42 = vsel %vm412_vm4, %v560_v41, 0 }
 0x1ef   : > { %1082 = vmatpush3.bf16.msra.mxu0 %v565_v42 }
 0x1f0   : > { %1093 = vmatprep.subr.bf16.mxu0 %v1190_v4 }
 0x1fb   : > { %v1338_v32 = vpop.eup %1150 }
 0x1fc   : > { %v408_v34 = vpack.c.bf16 %v1338_v32, %v1338_v32  ;;  %v405_v27 = vsel %vm350_vm2, %v1338_v32, 0.0 }
 0x1fe   : > { %1072 = vmatmul.mubr.msk.bf16.vlgmr.msra.gmra.mxu1 %vm350_vm2, %v408_v34 }
 0x1ff   : > { %1076 = vmatpush3.bf16.xpose.msra.mxu1 %v502_v33  ;;  %1077 = vmatprep.mubr.msk.bf16.mxu1 %vm1192_vm0, %v1190_v4 }
 0x200   : > { %1087 = vmatprep.subr.bf16.mxu1 %v1190_v4 }
 0x206   : > { %1078 = vmatmul.mubr.msk.bf16.vlgmr.msra.gmra.mxu1 %vm350_vm2, %v494_v31 }
 0x207   : > { %1088 = vmatpush3.bf16.xpose.msra.mxu1 %v652_v36  ;;  %1089 = vmatprep.mubr.msk.bf16.mxu1 %vm1192_vm0, %v1190_v4 }
 0x208   : > { %1099 = vmatprep.subr.bf16.mxu1 %v1190_v4 }
 0x20e   : > { %1090 = vmatmul.mubr.msk.bf16.vlgmr.msra.gmra.mxu1 %vm350_vm2, %v644_v37 }
 0x20f   : > { %1100 = vmatpush3.bf16.xpose.msra.mxu1 %v799_v39  ;;  %1101 = vmatprep.mubr.msk.bf16.mxu1 %vm1192_vm0, %v1190_v4 }
 0x216   : > { %1102 = vmatmul.mubr.msk.bf16.vlgmr.msra.gmra.mxu1 %vm350_vm2, %v791_v40 }
 0x2be   : > { %v1359_v43 = vpop.f32.mrf.mxu1 }
 0x2c0   : > { %v1073_v44 = vpop.f32.mrf.mxu1 }
 0x2c2   : > { %v453_v45 = vpop.f32.mrf.mxu1 }
 0x2c4   : > { %v1074_v46 = vpop.f32.mrf.mxu1 }
 0x2c6   : > { %v538_v47 = vpop.f32.mrf.mxu1 }
 0x2c7   : > { %v544_v48 = vmul.f32 0.35355338, %v538_v47 }
 0x2c8   : > { %v1079_v49 = vpop.f32.mrf.mxu1 }
 0x2c9   : > { %v545_v50 = vadd.f32 %v544_v48, %v1324_v3 }
 0x2ca   : > { %v541_v51 = vpop.f32.mrf.mxu1 }
 0x2cb   : > { %v546_v52 = vsel %vm350_vm2, %v545_v50, -inf }
 0x2cc   : > { %547 = vmax.xlane.f32.xlu0 %v546_v52  ;;  %v1080_v53 = vpop.f32.mrf.mxu1 }
 0x2ce   : > { %v688_v54 = vpop.f32.mrf.mxu1 }
 0x2cf   : > { %v694_v55 = vmul.f32 0.35355338, %v688_v54 }
 0x2d0   : > { %v1091_v56 = vpop.f32.mrf.mxu1 }
 0x2d1   : > { %v695_v57 = vadd.f32 %v694_v55, %v1324_v3 }
 0x2d2   : > { %v691_v58 = vpop.f32.mrf.mxu1 }
 0x2d3   : > { %v696_v59 = vsel %vm350_vm2, %v695_v57, -inf }
 0x2d4   : > { %697 = vmax.xlane.f32.xlu1 %v696_v59  ;;  %v1092_v60 = vpop.f32.mrf.mxu1 }
 0x2d6   : > { %v835_v61 = vpop.f32.mrf.mxu1 }
 0x2d7   : > { %v841_v62 = vmul.f32 0.35355338, %v835_v61 }
 0x2d8   : > { %v1103_v63 = vpop.f32.mrf.mxu1 }
 0x2d9   : > { %v842_v0 = vadd.f32 %v841_v62, %v1324_v3 }
 0x2da   : > { %v838_v1 = vpop.f32.mrf.mxu1 }
 0x2db   : > { %v843_v5 = vsel %vm350_vm2, %v842_v0, -inf }
 0x2dc   : > { %844 = vmax.xlane.f32.xlu1 %v843_v5  ;;  %v1104_v6 = vpop.f32.mrf.mxu1 }
 0x2e2   : > { %706 = vrot.lane.b32.xlu0 %v1333_v26, %s1201_s17 }
 0x2ed   : > { %853 = vrot.lane.b32.xlu1 %v1333_v26, %s1202_s18 }
 0x355   : > { %v548_v7 = vpop.xlane.xlu0 %547 }
 0x356   : > { %v549_v8 = vsub.f32 %v545_v50, %v548_v7 }
 0x358   : > { %v550_v9 = vmul.f32 1.442695, %v549_v8 }
 0x359   : > { %v707_v2 = vpop.permute.xlu0 %706 }
 0x35a   : > { %1152 = vpow2.f32 %v550_v9  ;;  %v712_v17 = vsel %vm412_vm4, %v707_v2, 0 }
 0x35d   : > { %v698_v10 = vpop.xlane.xlu1 %697 }
 0x35e   : > { %v699_v11 = vsub.f32 %v695_v57, %v698_v10 }
 0x360   : > { %v700_v12 = vmul.f32 1.442695, %v699_v11 }
 0x362   : > { %1154 = vpow2.f32 %v700_v12 }
 0x365   : > { %v845_v13 = vpop.xlane.xlu1 %844 }
 0x366   : > { %v846_v14 = vsub.f32 %v842_v0, %v845_v13 }
 0x367   : > { %v1153_v15 = vpop.eup %1152 }
 0x368   : > { %v847_v16 = vmul.f32 1.442695, %v846_v14  ;;  %v552_v3 = vsel %vm350_vm2, %v1153_v15, 0.0  ;;  %v555_v18 = vpack.c.bf16 %v1153_v15, %v1153_v15 }
 0x369   : > { %553 = vadd.xlane.f32.xlu1 %v552_v3  ;;  %v854_v19 = vpop.permute.xlu1 %853 }
 0x36a   : > { %1156 = vpow2.f32 %v847_v16  ;;  %1084 = vmatmul.mubr.msk.bf16.vlgmr.msra.gmra.mxu0 %vm350_vm2, %v555_v18  ;;  %v859_v21 = vsel %vm412_vm4, %v854_v19, 0 }
 0x36b   : > { %1094 = vmatpush3.bf16.msra.mxu0 %v712_v17  ;;  %1095 = vmatprep.mubr.msk.bf16.mxu0 %vm1192_vm0, %v1190_v4 }
 0x36c   : > { %1105 = vmatprep.subr.bf16.mxu0 %v1190_v4 }
 0x36f   : > { %v1155_v20 = vpop.eup %1154 }
 0x370   : > { %v702_v22 = vsel %vm350_vm2, %v1155_v20, 0.0  ;;  %v705_v23 = vpack.c.bf16 %v1155_v20, %v1155_v20 }
 0x371   : > { %703 = vadd.xlane.f32.xlu0 %v702_v22 }
 0x372   : > { %1096 = vmatmul.mubr.msk.bf16.vlgmr.msra.gmra.mxu0 %vm350_vm2, %v705_v23 }
 0x373   : > { %1106 = vmatpush3.bf16.msra.mxu0 %v859_v21  ;;  %1107 = vmatprep.mubr.msk.bf16.mxu0 %vm1192_vm0, %v1190_v4 }
 0x377   : > { %v1157_v24 = vpop.eup %1156 }
 0x378   : > { %v849_v25 = vsel %vm350_vm2, %v1157_v24, 0.0  ;;  %v852_v26 = vpack.c.bf16 %v1157_v24, %v1157_v24 }
 0x379   : > { %850 = vadd.xlane.f32.xlu1 %v849_v25 }
 0x37a   : > { %1108 = vmatmul.mubr.msk.bf16.vlgmr.msra.gmra.mxu0 %vm350_vm2, %v852_v26 }
 0x37d   : > { %406 = vadd.xlane.f32.xlu1 %v405_v27 }
 0x3f2   : > { %v554_v28 = vpop.xlane.xlu1 %553 }
 0x3f3   : > { %1158 = vrcp.f32 %v554_v28 }
 0x3fa   : > { %v704_v29 = vpop.xlane.xlu0 %703 }
 0x3fb   : > { %1160 = vrcp.f32 %v704_v29 }
 0x400   : > { %v1159_v30 = vpop.eup %1158 }
 0x402   : > { %v851_v31 = vpop.xlane.xlu1 %850 }
 0x403   : > { %1162 = vrcp.f32 %v851_v31 }
 0x406   : > { %v407_v49 = vpop.xlane.xlu1 %406 }
 0x407   : > { %1164 = vrcp.f32 %v407_v49 }
 0x408   : > { %v1161_v37 = vpop.eup %1160 }
 0x410   : > { %v1163_v42 = vpop.eup %1162 }
 0x414   : > { %v1165_v50 = vpop.eup %1164 }
 0x415   : > { %v457_v52 = vmul.f32 %v1165_v50, %v1359_v43 }
 0x42a   : > { %v601_v33 = vpop.f32.mrf.mxu0 }
 0x42b   : > { %v608_v34 = vmul.f32 %v1159_v30, %v601_v33 }
 0x42c   : > { %v1085_v4 = vpop.f32.mrf.mxu0 }
 0x42d   : > { %904 = vrot.lane.b32.xlu1 %v608_v34, %s1197_s11 }
 0x42e   : > { %v604_v35 = vpop.f32.mrf.mxu0 }
 0x430   : > { %v1086_v36 = vpop.f32.mrf.mxu0 }
 0x432   : > { %v748_v38 = vpop.f32.mrf.mxu0 }
 0x433   : > { %v755_v39 = vmul.f32 %v1161_v37, %v748_v38 }
 0x434   : > { %v1097_v40 = vpop.f32.mrf.mxu0 }
 0x435   : > { %908 = vrot.lane.b32.xlu0 %v755_v39, %s1198_s12 }
 0x436   : > { %v751_v32 = vpop.f32.mrf.mxu0 }
 0x438   : > { %v1098_v41 = vpop.f32.mrf.mxu0 }
 0x43a   : > { %v895_v44 = vpop.f32.mrf.mxu0 }
 0x43b   : > { %v902_v45 = vmul.f32 %v1163_v42, %v895_v44 }
 0x43c   : > { %v1109_v46 = vpop.f32.mrf.mxu0 }
 0x43d   : > { %912 = vrot.lane.b32.xlu1 %v902_v45, %s1199_s15 }
 0x43e   : > { %v898_v47 = vpop.f32.mrf.mxu0 }
 0x440   : > { %v1110_v48 = vpop.f32.mrf.mxu0 }
 0x49f   : > { %v905_v51 = vpop.permute.xlu1 %904 }
 0x4a0   : > { %v915_v54 = vsel %vm350_vm2, %v457_v52, %v905_v51 }
 0x4a7   : > { %v909_v53 = vpop.permute.xlu0 %908 }
 0x4a8   : > { %v917_v55 = vsel %vm916_vm5, %v915_v54, %v909_v53 }
 0x4af   : > { %v913_v56 = vpop.permute.xlu1 %912 }
 0x4b0   : > { %v919_v57 = vsel %vm918_vm6, %v917_v55, %v913_v56 }
 0x4b1   : > { %v920_v58 = vpack.c.bf16 %v919_v57, %v919_v57 }
 0x4b3   : > { %922 = vst.msk [vmem:[%s306_s28] sm:$0xf] %vm921_vm7, %v920_v58 }
 0x4b4 PF: > { %s15_s20 = sadd.s32 1, %s1188_s20   ;;  %s1410_s18 = smov %s1184_s19 }
 0x4b5   : > { %p12_p5 = scmp.ge.s32.totalorder %s15_s20, 4   ;;  %s1411_s19 = smov %s1413_s21 }
 0x4b7   :  { %14 = sbr.rel (!%p12_p5) target bundleno = 2 (0x2), region = 76 }

</bundles_post_ra>
